<compile_context>
chip_gen: v5e
topology: v5e:2x2
jax: 0.10.0
libtpu: 0.0.40
codegen_flags: <defaults>
</compile_context>

<pallas_src>
import functools

import jax
import jax.numpy as jnp
from jax.experimental import pallas as pl
from jax.experimental.pallas import tpu as pltpu

EPS = 1e-6
HI = jax.lax.Precision.HIGHEST  # reference (ground truth) only


# --------------------------- parameter slab layout ---------------------------
# wslab (bf16): all 1x1 / projection matmul weights, row blocks padded to 16.
# vslab (f32):  per-channel vectors (22 cols) + depthwise 3x3 taps (9 cols).

W_BF16_BLOCKS = ("w1", "w4", "w3", "w5", "wsca", "wl1", "wr1", "wl2", "wr2")

V_COLS = (
    "ln1_w", "ln1_b", "b1", "b2", "bsca", "b3", "beta", "ln2_w", "ln2_b",
    "b4", "b5", "gamma",
    "lnl_w", "lnl_b", "lnr_w", "lnr_b", "bl1", "br1", "bl2", "br2",
    "sbeta", "sgamma",
)
N_VCOLS = len(V_COLS)   # 22


def _round_up(x, m):
    return ((x + m - 1) // m) * m


def _w_rows(name, C):
    return 2 * C if name in ("w1", "w4") else C


def _w_offsets(C):
    offs, r = {}, 0
    for name in W_BF16_BLOCKS:
        offs[name] = r
        r += _round_up(_w_rows(name, C), 16)   # bf16 sublane-tile aligned blocks
    return offs, r


def pack_params(blk, scam, C):
    """Pack NAFBlock (+ optional SCAM) params into a bf16 weight slab and an f32 slab."""
    C2 = 2 * C
    offs, total_rows = _w_offsets(C)

    def getw(name):
        if name in ("wl1", "wr1", "wl2", "wr2"):
            return (jnp.asarray(scam[name], jnp.float32) if scam is not None
                    else jnp.zeros((C, C), jnp.float32))
        return jnp.asarray(blk[name], jnp.float32)

    wslab = jnp.zeros((total_rows, C), jnp.float32)
    for name in W_BF16_BLOCKS:
        m = getw(name)
        wslab = wslab.at[offs[name]:offs[name] + m.shape[0], :].set(m)
    wslab = wslab.astype(jnp.bfloat16)

    def vcolumn(name):
        if name == "sbeta":
            v = scam["beta"] if scam is not None else jnp.zeros((C,), jnp.float32)
        elif name == "sgamma":
            v = scam["gamma"] if scam is not None else jnp.zeros((C,), jnp.float32)
        elif name in ("lnl_w", "lnl_b", "lnr_w", "lnr_b", "bl1", "br1", "bl2", "br2"):
            v = scam[name] if scam is not None else jnp.zeros((C,), jnp.float32)
        else:
            v = blk[name]
        v = jnp.asarray(v, jnp.float32).reshape(-1)
        return jnp.pad(v, (0, C2 - v.shape[0]))

    vcols = jnp.stack([vcolumn(n) for n in V_COLS], axis=1)           # (2C, 22)
    taps = jnp.asarray(blk["w2"], jnp.float32).reshape(C2, 9)         # (2C, 9): tap k = 3*dy+dx
    vslab = jnp.concatenate([vcols, taps], axis=1)                    # (2C, 31)
    return wslab, vslab


# ------------------------------ in-kernel helpers ----------------------------

def _mod_const(x, m):
    if m & (m - 1) == 0:
        return jnp.bitwise_and(x, m - 1)
    return jax.lax.rem(x, m)


def _div_const(x, d):
    if d & (d - 1) == 0:
        return jax.lax.shift_right_logical(x, d.bit_length() - 1)
    return x // d


def _wm(w_ref, offs, name, rows):
    r0 = offs[name]
    return w_ref[r0:r0 + rows, :]                       # bf16 (rows, C)


def _vc(v_ref, name, rows):
    j = V_COLS.index(name)
    return v_ref[0:rows, j:j + 1]                       # f32 (rows, 1) column


def _ln_cf(x, w_col, b_col):
    """LayerNorm2d over the channel (sublane) axis.  x: (C, L) f32."""
    mu = jnp.mean(x, axis=0, keepdims=True)
    xc = x - mu
    var = jnp.mean(xc * xc, axis=0, keepdims=True)
    return xc * jax.lax.rsqrt(var + EPS) * w_col + b_col


def _softmax_ax0(a, mask):
    """Masked softmax along the sublane axis (axis 0) of a 2-D f32 array."""
    neg = jnp.float32(-1e30)
    a = jnp.where(mask, a, neg)
    m = jnp.max(a, axis=0, keepdims=True)
    e = jnp.exp(a - m)
    e = jnp.where(mask, e, 0.0)
    s = jnp.sum(e, axis=0, keepdims=True)
    return e * pl.reciprocal(s, approx=True)


def _build_masks(n_img, H, W):
    """Per-grid-step iota masks, shared by both eyes (computed once)."""
    HW = H * W
    L = n_img * HW
    flat = jax.lax.broadcasted_iota(jnp.int32, (1, L), 1)   # global flat index
    fimg = _mod_const(flat, HW)                             # flat index within image
    col = _mod_const(flat, W)                               # column index (HW % W == 0)
    rmask = {0: fimg >= W, 1: None, 2: fimg < HW - W}       # source row stays in image
    cmask = {0: col >= 1, 1: None, 2: col <= W - 2}         # source col stays in row
    img_masks = [jnp.logical_and(flat >= i * HW, flat < (i + 1) * HW)
                 for i in range(n_img)]
    return rmask, cmask, img_masks


# --------------------------------- NAF body -----------------------------------

def _naf_body(x, w_ref, v_ref, masks, *, C, H, W, n_img):
    """Shared NAFBlock on n_img images folded along the lane axis.  x: (C, n_img*HW) f32."""
    f32, bf16 = jnp.float32, jnp.bfloat16
    HW = H * W
    L = n_img * HW
    C2 = 2 * C
    offs = _w_offsets(C)[0]
    rmask, cmask, img_masks = masks

    wm = lambda name, rows: _wm(w_ref, offs, name, rows)
    vc = lambda name, rows=C: _vc(v_ref, name, rows)

    # --- norm1 + conv1 (1x1, C -> 2C) ---
    y = _ln_cf(x, vc("ln1_w"), vc("ln1_b"))
    t = jnp.dot(wm("w1", C2), y.astype(bf16), preferred_element_type=f32) + vc("b1", C2)

    # --- conv2: depthwise 3x3, pad=1, via lane rolls + per-image boundary masks ---
    taps = v_ref[0:C2, N_VCOLS:N_VCOLS + 9]              # (2C, 9) f32
    conv = jnp.zeros((C2, L), f32)
    for dy in range(3):
        for dx in range(3):
            off = (dy - 1) * W + (dx - 1)                # src_flat = dst_flat + off
            src = t if off == 0 else pltpu.roll(t, (-off) % L, 1)
            mask = rmask[dy]
            if cmask[dx] is not None:
                mask = cmask[dx] if mask is None else jnp.logical_and(mask, cmask[dx])
            if mask is not None:
                src = jnp.where(mask, src, 0.0)
            k = 3 * dy + dx
            conv = conv + src * taps[:, k:k + 1]
    conv = conv + vc("b2", C2)

    # --- SimpleGate ---
    g = conv[:C, :] * conv[C:, :]                        # (C, L)

    # --- SCA: per-image global mean broadcast lane-dense, then 1x1 on MXU ---
    if n_img == 1:
        pooled_b = jnp.broadcast_to(jnp.mean(g, axis=1, keepdims=True), g.shape)
    else:
        inv_hw = jnp.float32(1.0 / HW)
        pooled_b = jnp.zeros_like(g)
        for mi in img_masks:
            pi = jnp.sum(jnp.where(mi, g, 0.0), axis=1, keepdims=True) * inv_hw
            pooled_b = jnp.where(mi, pi, pooled_b)
    sca = jnp.dot(wm("wsca", C), pooled_b.astype(bf16),
                  preferred_element_type=f32) + vc("bsca")
    g = g * sca

    # --- conv3 (1x1) + beta residual ---
    g2 = jnp.dot(wm("w3", C), g.astype(bf16), preferred_element_type=f32) + vc("b3")
    yb = x + g2 * vc("beta")

    # --- norm2 + conv4 + SimpleGate + conv5 + gamma residual ---
    z = _ln_cf(yb, vc("ln2_w"), vc("ln2_b"))
    f = jnp.dot(wm("w4", C2), z.astype(bf16), preferred_element_type=f32) + vc("b4", C2)
    f = f[:C, :] * f[C:, :]
    f2 = jnp.dot(wm("w5", C), f.astype(bf16), preferred_element_type=f32) + vc("b5")
    return yb + f2 * vc("gamma")


# --------------------------------- SCAM body ----------------------------------

def _scam_body(y, w_ref, v_ref, *, C, H, W, scale):
    """Stereo Cross Attention, channels-first, no HWC transposes.  y: (C, 2*HW) f32."""
    f32, bf16 = jnp.float32, jnp.bfloat16
    HW = H * W
    offs = _w_offsets(C)[0]
    wm = lambda name: _wm(w_ref, offs, name, C)
    vc = lambda name: _vc(v_ref, name, C)

    yl = y[:, :HW]
    yr = y[:, HW:]

    lnl = _ln_cf(yl, vc("lnl_w"), vc("lnl_b"))
    lnr = _ln_cf(yr, vc("lnr_w"), vc("lnr_b"))
    ql = (jnp.dot(wm("wl1"), lnl.astype(bf16), preferred_element_type=f32)
          + vc("bl1")) * jnp.float32(scale)             # fold attention scale into Q_l
    qr = jnp.dot(wm("wr1"), lnr.astype(bf16), preferred_element_type=f32) + vc("br1")
    vl = jnp.dot(wm("wl2"), yl.astype(bf16), preferred_element_type=f32) + vc("bl2")
    vr = jnp.dot(wm("wr2"), yr.astype(bf16), preferred_element_type=f32) + vc("br2")

    ql_bf, qr_bf = ql.astype(bf16), qr.astype(bf16)
    cdims = (((0,), (0,)), ((), ()))                     # contract channel dim of both
    attn_lr = jax.lax.dot_general(ql_bf, qr_bf, cdims, preferred_element_type=f32)  # (HWl, HWr)
    attn_rl = jax.lax.dot_general(qr_bf, ql_bf, cdims, preferred_element_type=f32)  # (HWr, HWl)

    # block-diagonal same-row mask (symmetric): p//W == q//W
    ri = _div_const(jax.lax.broadcasted_iota(jnp.int32, (HW, HW), 0), W)
    rj = _div_const(jax.lax.broadcasted_iota(jnp.int32, (HW, HW), 1), W)
    same_row = ri == rj

    # softmax along sublane axis for both directions (no swapaxes/transposes)
    a_l2r = _softmax_ax0(attn_lr, same_row)   # [p, q] = softmax_p attn[p, q]
    a_r2l = _softmax_ax0(attn_rl, same_row)   # [q, p] = softmax_q attn[p, q]

    f_l2r = jnp.dot(vl.astype(bf16), a_l2r.astype(bf16), preferred_element_type=f32)  # (C, HWr)
    f_r2l = jnp.dot(vr.astype(bf16), a_r2l.astype(bf16), preferred_element_type=f32)  # (C, HWl)

    out_l = yl + f_r2l * vc("sbeta")
    out_r = yr + f_l2r * vc("sgamma")
    return jnp.concatenate([out_l, out_r], axis=1)       # (C, 2*HW), lane-aligned concat


# --------------------------------- kernel -------------------------------------

def _sr_kernel(x_ref, w_ref, v_ref, o_ref, *, C, H, W, n_img, do_scam, scale):
    """NAFBlock on all folded views (+ SCAM if stereo fusion) for one batch element."""
    x = x_ref[0].astype(jnp.float32)                     # (C, n_img*HW)
    masks = _build_masks(n_img, H, W)
    y = _naf_body(x, w_ref, v_ref, masks, C=C, H=H, W=W, n_img=n_img)
    if do_scam:
        y = _scam_body(y, w_ref, v_ref, C=C, H=H, W=W, scale=scale)
    o_ref[0] = y.astype(o_ref.dtype)


def _nafblock_sr_call(x_all, wslab, vslab, C, H, W, n_img, do_scam):
    N = x_all.shape[0]
    L = n_img * H * W
    xspec = pl.BlockSpec((1, C, L), lambda n: (n, 0, 0))
    wspec = pl.BlockSpec(wslab.shape, lambda n: (0, 0))
    vspec = pl.BlockSpec(vslab.shape, lambda n: (0, 0))
    kern = functools.partial(_sr_kernel, C=C, H=H, W=W, n_img=n_img,
                             do_scam=do_scam, scale=float(C) ** (-0.5))
    return pl.pallas_call(
        kern,
        grid=(N,),
        in_specs=[xspec, wspec, vspec],
        out_specs=xspec,
        out_shape=jax.ShapeDtypeStruct((N, C, L), x_all.dtype),
        compiler_params=pltpu.CompilerParams(dimension_semantics=("parallel",)),
    )(x_all, wslab, vslab)


def nafblock_sr_forward(feats, blk_params, scam_params=None):
    """NAFBlockSR.forward: shared NAFBlock on every view (+ SCAM fusion for stereo).

    `feats` are NCHW arrays.  All views are folded along the lane axis into a
    single (N, C, n_views*H*W) slab and processed in one pallas_call.
    """
    N, C, H, W = feats[0].shape
    HW = H * W
    n_img = len(feats)
    wslab, vslab = pack_params(blk_params, scam_params, C)
    x_all = jnp.concatenate([f.reshape(N, C, HW) for f in feats], axis=-1)
    do_scam = scam_params is not None and n_img == 2
    out = _nafblock_sr_call(x_all, wslab, vslab, C, H, W, n_img, do_scam)
    return tuple(out[:, :, i * HW:(i + 1) * HW].reshape(N, C, H, W)
                 for i in range(n_img))


# ------------------------- deterministic parameter init ----------------------

def _nrm(k, shape, s=0.1):
    return (s * jax.random.normal(k, shape)).astype(jnp.float32)


def init_nafblock_params(key, c):
    c2 = 2 * c
    ks = jax.random.split(key, 14)
    return {
        "ln1_w": jnp.ones((c,), jnp.float32),
        "ln1_b": jnp.zeros((c,), jnp.float32),
        "w1": _nrm(ks[0], (c2, c)),          # conv1 1x1: [out, in]
        "b1": _nrm(ks[1], (c2,), 0.05),
        "w2": _nrm(ks[2], (c2, 3, 3)),       # depthwise 3x3: [ch, ky, kx]
        "b2": _nrm(ks[3], (c2,), 0.05),
        "wsca": _nrm(ks[4], (c, c)),
        "bsca": _nrm(ks[5], (c,), 0.05),
        "w3": _nrm(ks[6], (c, c)),
        "b3": _nrm(ks[7], (c,), 0.05),
        "beta": _nrm(ks[8], (c,)),           # torch zero-init; nonzero exercises branch
        "ln2_w": jnp.ones((c,), jnp.float32),
        "ln2_b": jnp.zeros((c,), jnp.float32),
        "w4": _nrm(ks[9], (c2, c)),
        "b4": _nrm(ks[10], (c2,), 0.05),
        "w5": _nrm(ks[11], (c, c)),
        "b5": _nrm(ks[12], (c,), 0.05),
        "gamma": _nrm(ks[13], (c,)),
    }


def init_scam_params(key, c):
    ks = jax.random.split(key, 10)
    return {
        "lnl_w": jnp.ones((c,), jnp.float32),
        "lnl_b": jnp.zeros((c,), jnp.float32),
        "lnr_w": jnp.ones((c,), jnp.float32),
        "lnr_b": jnp.zeros((c,), jnp.float32),
        "wl1": _nrm(ks[0], (c, c)),
        "bl1": _nrm(ks[1], (c,), 0.05),
        "wr1": _nrm(ks[2], (c, c)),
        "br1": _nrm(ks[3], (c,), 0.05),
        "wl2": _nrm(ks[4], (c, c)),
        "bl2": _nrm(ks[5], (c,), 0.05),
        "wr2": _nrm(ks[6], (c, c)),
        "br2": _nrm(ks[7], (c,), 0.05),
        "beta": _nrm(ks[8], (c,)),
        "gamma": _nrm(ks[9], (c,)),
    }


# ------------------------------ pure-JAX reference ---------------------------

def _ln_ref(x, w, b):
    mu = x.mean(axis=1, keepdims=True)
    xc = x - mu
    var = (xc * xc).mean(axis=1, keepdims=True)
    return xc / jnp.sqrt(var + EPS) * w.reshape(1, -1, 1, 1) + b.reshape(1, -1, 1, 1)


def nafblock_ref(x, p):
    N, C, H, W = x.shape
    C2 = 2 * C
    y = _ln_ref(x, p["ln1_w"], p["ln1_b"])
    t = jnp.einsum('nchw,dc->ndhw', y, p["w1"], precision=HI) + p["b1"].reshape(1, C2, 1, 1)
    tp = jnp.pad(t, ((0, 0), (0, 0), (1, 1), (1, 1)))
    conv = jnp.zeros_like(t)
    for dy in range(3):
        for dx in range(3):
            conv = conv + tp[:, :, dy:dy + H, dx:dx + W] * p["w2"][:, dy, dx].reshape(1, C2, 1, 1)
    conv = conv + p["b2"].reshape(1, C2, 1, 1)
    g = conv[:, :C] * conv[:, C:]
    pooled = g.mean(axis=(2, 3))                                        # (N, C)
    sca = jnp.einsum('nc,dc->nd', pooled, p["wsca"], precision=HI) + p["bsca"]
    g = g * sca[:, :, None, None]
    g2 = jnp.einsum('nchw,dc->ndhw', g, p["w3"], precision=HI) + p["b3"].reshape(1, C, 1, 1)
    yb = x + g2 * p["beta"].reshape(1, C, 1, 1)
    z = _ln_ref(yb, p["ln2_w"], p["ln2_b"])
    f = jnp.einsum('nchw,dc->ndhw', z, p["w4"], precision=HI) + p["b4"].reshape(1, C2, 1, 1)
    f = f[:, :C] * f[:, C:]
    f2 = jnp.einsum('nchw,dc->ndhw', f, p["w5"], precision=HI) + p["b5"].reshape(1, C, 1, 1)
    return yb + f2 * p["gamma"].reshape(1, C, 1, 1)


def scam_ref(xl, xr, p):
    N, C, H, W = xl.shape
    scale = C ** (-0.5)
    ql = jnp.einsum('nchw,dc->nhwd', _ln_ref(xl, p["lnl_w"], p["lnl_b"]), p["wl1"],
                    precision=HI) + p["bl1"]
    qr = jnp.einsum('nchw,dc->nhwd', _ln_ref(xr, p["lnr_w"], p["lnr_b"]), p["wr1"],
                    precision=HI) + p["br1"]
    vl = jnp.einsum('nchw,dc->nhwd', xl, p["wl2"], precision=HI) + p["bl2"]
    vr = jnp.einsum('nchw,dc->nhwd', xr, p["wr2"], precision=HI) + p["br2"]
    attn = jnp.einsum('nhic,nhjc->nhij', ql, qr, precision=HI) * scale
    f_r2l = jnp.einsum('nhij,nhjc->nhic', jax.nn.softmax(attn, axis=-1), vr, precision=HI)
    f_l2r = jnp.einsum('nhij,nhjc->nhic', jax.nn.softmax(jnp.swapaxes(attn, 2, 3), axis=-1),
                       vl, precision=HI)
    out_l = xl + jnp.transpose(f_r2l, (0, 3, 1, 2)) * p["beta"].reshape(1, C, 1, 1)
    out_r = xr + jnp.transpose(f_l2r, (0, 3, 1, 2)) * p["gamma"].reshape(1, C, 1, 1)
    return out_l, out_r


# ------------------------------------ main -----------------------------------

if __name__ == "__main__":
    key = jax.random.PRNGKey(0)
    k1, k2, k3, k4 = jax.random.split(key, 4)

    N, C, H, W = 2, 8, 16, 16                     # NCHW, matches the torch module
    x_l = jax.random.normal(k1, (N, C, H, W), jnp.float32)
    x_r = jax.random.normal(k2, (N, C, H, W), jnp.float32)

    blk_params = init_nafblock_params(k3, C)
    scam_params = init_scam_params(k4, C)         # fusion=True path (covers SCAM)

    # fused NAFBlock(l) + NAFBlock(r) + SCAM, one pallas_call
    out_l, out_r = nafblock_sr_forward((x_l, x_r), blk_params, scam_params)
    out_l = jax.block_until_ready(out_l)
    out_r = jax.block_until_ready(out_r)

    ref_l = nafblock_ref(x_l, blk_params)
    ref_r = nafblock_ref(x_r, blk_params)
    ref_l, ref_r = scam_ref(ref_l, ref_r, scam_params)
    err = max(float(jnp.max(jnp.abs(out_l - ref_l))),
              float(jnp.max(jnp.abs(out_r - ref_r))))
    assert err < 5e-2, f"fused max abs err {err}"

    # fusion=False path (NAFBlock only)
    (solo_l,) = nafblock_sr_forward((x_l,), blk_params, None)
    solo_l = jax.block_until_ready(solo_l)
    err2 = float(jnp.max(jnp.abs(solo_l - nafblock_ref(x_l, blk_params))))
    assert err2 < 5e-2, f"naf-only max abs err {err2}"

    print("KERNEL_OK")
</pallas_src>

<mosaic_0001>
module attributes {stable_mosaic.version = 11 : i64} {
  func.func @_sr_kernel(%arg0: i32, %arg1: memref<1x8x512xf32, #tpu.memory_space<vmem>>, %arg2: memref<144x8xbf16, #tpu.memory_space<vmem>>, %arg3: memref<16x31xf32, #tpu.memory_space<vmem>>, %arg4: memref<1x8x512xf32, #tpu.memory_space<vmem>>) attributes {dimension_semantics = [#tpu.dimension_semantics<parallel>], iteration_bounds = array<i64: 2>, scalar_prefetch = 0 : i64, scratch_operands = 0 : i64, tpu.core_type = #tpu.core_type<tc>, window_params = [{transform_indices = @transform_0, window_bounds = array<i64: 1, 8, 512>}, {pipeline_mode = #tpu.pipeline_mode<synchronous>, transform_indices = @transform_1, window_bounds = array<i64: 144, 8>}, {pipeline_mode = #tpu.pipeline_mode<synchronous>, transform_indices = @transform_2, window_bounds = array<i64: 16, 31>}, {transform_indices = @transform_3, window_bounds = array<i64: 1, 8, 512>}]} {
    %c0 = arith.constant 0 : index
    %c0_0 = arith.constant 0 : index
    %c0_1 = arith.constant 0 : index
    %0 = vector.load %arg1[%c0, %c0_0, %c0_1] : memref<1x8x512xf32, #tpu.memory_space<vmem>>, vector<1x8x512xf32>
    %1 = vector.shape_cast %0 : vector<1x8x512xf32> to vector<8x512xf32>
    %2 = tpu.iota {dimensions = array<i32: 1>} : vector<1x512xi32>
    %c255_i32 = arith.constant 255 : i32
    %3 = vector.broadcast %c255_i32 : i32 to vector<1x512xi32>
    %4 = arith.andi %2, %3 : vector<1x512xi32>
    %c15_i32 = arith.constant 15 : i32
    %5 = vector.broadcast %c15_i32 : i32 to vector<1x512xi32>
    %6 = arith.andi %2, %5 : vector<1x512xi32>
    %c16_i32 = arith.constant 16 : i32
    %7 = vector.broadcast %c16_i32 : i32 to vector<1x512xi32>
    %8 = arith.cmpi sge, %4, %7 : vector<1x512xi32>
    %c240_i32 = arith.constant 240 : i32
    %9 = vector.broadcast %c240_i32 : i32 to vector<1x512xi32>
    %10 = arith.cmpi slt, %4, %9 : vector<1x512xi32>
    %c1_i32 = arith.constant 1 : i32
    %11 = vector.broadcast %c1_i32 : i32 to vector<1x512xi32>
    %12 = arith.cmpi sge, %6, %11 : vector<1x512xi32>
    %c14_i32 = arith.constant 14 : i32
    %13 = vector.broadcast %c14_i32 : i32 to vector<1x512xi32>
    %14 = arith.cmpi sle, %6, %13 : vector<1x512xi32>
    %c0_i32 = arith.constant 0 : i32
    %15 = vector.broadcast %c0_i32 : i32 to vector<1x512xi32>
    %16 = arith.cmpi sge, %2, %15 : vector<1x512xi32>
    %c256_i32 = arith.constant 256 : i32
    %17 = vector.broadcast %c256_i32 : i32 to vector<1x512xi32>
    %18 = arith.cmpi slt, %2, %17 : vector<1x512xi32>
    %19 = arith.andi %16, %18 : vector<1x512xi1>
    %c256_i32_2 = arith.constant 256 : i32
    %20 = vector.broadcast %c256_i32_2 : i32 to vector<1x512xi32>
    %21 = arith.cmpi sge, %2, %20 : vector<1x512xi32>
    %c512_i32 = arith.constant 512 : i32
    %22 = vector.broadcast %c512_i32 : i32 to vector<1x512xi32>
    %23 = arith.cmpi slt, %2, %22 : vector<1x512xi32>
    %24 = arith.andi %21, %23 : vector<1x512xi1>
    %c0_3 = arith.constant 0 : index
    %c0_4 = arith.constant 0 : index
    %25 = vector.load %arg3[%c0_3, %c0_4] : memref<16x31xf32, #tpu.memory_space<vmem>>, vector<8x1xf32>
    %c0_5 = arith.constant 0 : index
    %c1 = arith.constant 1 : index
    %26 = vector.load %arg3[%c0_5, %c1] : memref<16x31xf32, #tpu.memory_space<vmem>>, vector<8x1xf32>
    %cst = arith.constant dense<0.000000e+00> : vector<512xf32>
    %27 = vector.multi_reduction <add>, %1, %cst [0] : vector<8x512xf32> to vector<512xf32>
    %28 = vector.shape_cast %27 : vector<512xf32> to vector<1x512xf32>
    %cst_6 = arith.constant 8.000000e+00 : f32
    %29 = vector.broadcast %cst_6 : f32 to vector<1x512xf32>
    %30 = arith.divf %28, %29 : vector<1x512xf32>
    %31 = vector.broadcast %30 : vector<1x512xf32> to vector<8x512xf32>
    %32 = arith.subf %1, %31 : vector<8x512xf32>
    %33 = arith.mulf %32, %32 : vector<8x512xf32>
    %cst_7 = arith.constant dense<0.000000e+00> : vector<512xf32>
    %34 = vector.multi_reduction <add>, %33, %cst_7 [0] : vector<8x512xf32> to vector<512xf32>
    %35 = vector.shape_cast %34 : vector<512xf32> to vector<1x512xf32>
    %cst_8 = arith.constant 8.000000e+00 : f32
    %36 = vector.broadcast %cst_8 : f32 to vector<1x512xf32>
    %37 = arith.divf %35, %36 : vector<1x512xf32>
    %cst_9 = arith.constant 9.99999997E-7 : f32
    %38 = vector.broadcast %cst_9 : f32 to vector<1x512xf32>
    %39 = arith.addf %37, %38 : vector<1x512xf32>
    %40 = math.rsqrt %39 : vector<1x512xf32>
    %41 = vector.broadcast %40 : vector<1x512xf32> to vector<8x512xf32>
    %42 = arith.mulf %32, %41 : vector<8x512xf32>
    %43 = vector.broadcast %25 : vector<8x1xf32> to vector<8x512xf32>
    %44 = arith.mulf %42, %43 : vector<8x512xf32>
    %45 = vector.broadcast %26 : vector<8x1xf32> to vector<8x512xf32>
    %46 = arith.addf %44, %45 : vector<8x512xf32>
    %c0_10 = arith.constant 0 : index
    %c0_11 = arith.constant 0 : index
    %47 = vector.load %arg2[%c0_10, %c0_11] : memref<144x8xbf16, #tpu.memory_space<vmem>>, vector<16x8xbf16>
    %48 = arith.truncf %46 : vector<8x512xf32> to vector<8x512xbf16>
    %cst_12 = arith.constant dense<0.000000e+00> : vector<16x512xf32>
    %49 = tpu.matmul %47, %48, %cst_12 {dimension_numbers = #tpu.dot_dimension_numbers<[1], [0], [0], [1], [0, 0, 1, 1], [], []>} : vector<16x8xbf16>, vector<8x512xbf16>, vector<16x512xf32> -> vector<16x512xf32>
    %c0_13 = arith.constant 0 : index
    %c2 = arith.constant 2 : index
    %50 = vector.load %arg3[%c0_13, %c2] : memref<16x31xf32, #tpu.memory_space<vmem>>, vector<16x1xf32>
    %51 = vector.broadcast %50 : vector<16x1xf32> to vector<16x512xf32>
    %52 = arith.addf %49, %51 : vector<16x512xf32>
    %c0_14 = arith.constant 0 : index
    %c22 = arith.constant 22 : index
    %53 = vector.load %arg3[%c0_14, %c22] : memref<16x31xf32, #tpu.memory_space<vmem>>, vector<16x9xf32>
    %cst_15 = arith.constant 0.000000e+00 : f32
    %54 = vector.broadcast %cst_15 : f32 to vector<16x512xf32>
    %c17_i32 = arith.constant 17 : i32
    %55 = tpu.dynamic_rotate %52 by %c17_i32 dim 1 : vector<16x512xf32>, i32 -> vector<16x512xf32>
    %56 = arith.andi %8, %12 : vector<1x512xi1>
    %cst_16 = arith.constant 0.000000e+00 : f32
    %57 = vector.shape_cast %56 : vector<1x512xi1> to vector<1x512xi1>
    %58 = vector.broadcast %57 : vector<1x512xi1> to vector<16x512xi1>
    %59 = vector.broadcast %cst_16 : f32 to vector<16x512xf32>
    %60 = arith.select %58, %55, %59 : vector<16x512xi1>, vector<16x512xf32>
    %61 = vector.extract_strided_slice %53 {offsets = [0, 0], sizes = [16, 1], strides = [1, 1]} : vector<16x9xf32> to vector<16x1xf32>
    %62 = vector.broadcast %61 : vector<16x1xf32> to vector<16x512xf32>
    %63 = arith.mulf %60, %62 : vector<16x512xf32>
    %64 = arith.addf %54, %63 : vector<16x512xf32>
    %c16_i32_17 = arith.constant 16 : i32
    %65 = tpu.dynamic_rotate %52 by %c16_i32_17 dim 1 : vector<16x512xf32>, i32 -> vector<16x512xf32>
    %cst_18 = arith.constant 0.000000e+00 : f32
    %66 = vector.shape_cast %8 : vector<1x512xi1> to vector<1x512xi1>
    %67 = vector.broadcast %66 : vector<1x512xi1> to vector<16x512xi1>
    %68 = vector.broadcast %cst_18 : f32 to vector<16x512xf32>
    %69 = arith.select %67, %65, %68 : vector<16x512xi1>, vector<16x512xf32>
    %70 = vector.extract_strided_slice %53 {offsets = [0, 1], sizes = [16, 1], strides = [1, 1]} : vector<16x9xf32> to vector<16x1xf32>
    %71 = vector.broadcast %70 : vector<16x1xf32> to vector<16x512xf32>
    %72 = arith.mulf %69, %71 : vector<16x512xf32>
    %73 = arith.addf %64, %72 : vector<16x512xf32>
    %c15_i32_19 = arith.constant 15 : i32
    %74 = tpu.dynamic_rotate %52 by %c15_i32_19 dim 1 : vector<16x512xf32>, i32 -> vector<16x512xf32>
    %75 = arith.andi %8, %14 : vector<1x512xi1>
    %cst_20 = arith.constant 0.000000e+00 : f32
    %76 = vector.shape_cast %75 : vector<1x512xi1> to vector<1x512xi1>
    %77 = vector.broadcast %76 : vector<1x512xi1> to vector<16x512xi1>
    %78 = vector.broadcast %cst_20 : f32 to vector<16x512xf32>
    %79 = arith.select %77, %74, %78 : vector<16x512xi1>, vector<16x512xf32>
    %80 = vector.extract_strided_slice %53 {offsets = [0, 2], sizes = [16, 1], strides = [1, 1]} : vector<16x9xf32> to vector<16x1xf32>
    %81 = vector.broadcast %80 : vector<16x1xf32> to vector<16x512xf32>
    %82 = arith.mulf %79, %81 : vector<16x512xf32>
    %83 = arith.addf %73, %82 : vector<16x512xf32>
    %c1_i32_21 = arith.constant 1 : i32
    %84 = tpu.dynamic_rotate %52 by %c1_i32_21 dim 1 : vector<16x512xf32>, i32 -> vector<16x512xf32>
    %cst_22 = arith.constant 0.000000e+00 : f32
    %85 = vector.shape_cast %12 : vector<1x512xi1> to vector<1x512xi1>
    %86 = vector.broadcast %85 : vector<1x512xi1> to vector<16x512xi1>
    %87 = vector.broadcast %cst_22 : f32 to vector<16x512xf32>
    %88 = arith.select %86, %84, %87 : vector<16x512xi1>, vector<16x512xf32>
    %89 = vector.extract_strided_slice %53 {offsets = [0, 3], sizes = [16, 1], strides = [1, 1]} : vector<16x9xf32> to vector<16x1xf32>
    %90 = vector.broadcast %89 : vector<16x1xf32> to vector<16x512xf32>
    %91 = arith.mulf %88, %90 : vector<16x512xf32>
    %92 = arith.addf %83, %91 : vector<16x512xf32>
    %93 = vector.extract_strided_slice %53 {offsets = [0, 4], sizes = [16, 1], strides = [1, 1]} : vector<16x9xf32> to vector<16x1xf32>
    %94 = vector.broadcast %93 : vector<16x1xf32> to vector<16x512xf32>
    %95 = arith.mulf %52, %94 : vector<16x512xf32>
    %96 = arith.addf %92, %95 : vector<16x512xf32>
    %c511_i32 = arith.constant 511 : i32
    %97 = tpu.dynamic_rotate %52 by %c511_i32 dim 1 : vector<16x512xf32>, i32 -> vector<16x512xf32>
    %cst_23 = arith.constant 0.000000e+00 : f32
    %98 = vector.shape_cast %14 : vector<1x512xi1> to vector<1x512xi1>
    %99 = vector.broadcast %98 : vector<1x512xi1> to vector<16x512xi1>
    %100 = vector.broadcast %cst_23 : f32 to vector<16x512xf32>
    %101 = arith.select %99, %97, %100 : vector<16x512xi1>, vector<16x512xf32>
    %102 = vector.extract_strided_slice %53 {offsets = [0, 5], sizes = [16, 1], strides = [1, 1]} : vector<16x9xf32> to vector<16x1xf32>
    %103 = vector.broadcast %102 : vector<16x1xf32> to vector<16x512xf32>
    %104 = arith.mulf %101, %103 : vector<16x512xf32>
    %105 = arith.addf %96, %104 : vector<16x512xf32>
    %c497_i32 = arith.constant 497 : i32
    %106 = tpu.dynamic_rotate %52 by %c497_i32 dim 1 : vector<16x512xf32>, i32 -> vector<16x512xf32>
    %107 = arith.andi %10, %12 : vector<1x512xi1>
    %cst_24 = arith.constant 0.000000e+00 : f32
    %108 = vector.shape_cast %107 : vector<1x512xi1> to vector<1x512xi1>
    %109 = vector.broadcast %108 : vector<1x512xi1> to vector<16x512xi1>
    %110 = vector.broadcast %cst_24 : f32 to vector<16x512xf32>
    %111 = arith.select %109, %106, %110 : vector<16x512xi1>, vector<16x512xf32>
    %112 = vector.extract_strided_slice %53 {offsets = [0, 6], sizes = [16, 1], strides = [1, 1]} : vector<16x9xf32> to vector<16x1xf32>
    %113 = vector.broadcast %112 : vector<16x1xf32> to vector<16x512xf32>
    %114 = arith.mulf %111, %113 : vector<16x512xf32>
    %115 = arith.addf %105, %114 : vector<16x512xf32>
    %c496_i32 = arith.constant 496 : i32
    %116 = tpu.dynamic_rotate %52 by %c496_i32 dim 1 : vector<16x512xf32>, i32 -> vector<16x512xf32>
    %cst_25 = arith.constant 0.000000e+00 : f32
    %117 = vector.shape_cast %10 : vector<1x512xi1> to vector<1x512xi1>
    %118 = vector.broadcast %117 : vector<1x512xi1> to vector<16x512xi1>
    %119 = vector.broadcast %cst_25 : f32 to vector<16x512xf32>
    %120 = arith.select %118, %116, %119 : vector<16x512xi1>, vector<16x512xf32>
    %121 = vector.extract_strided_slice %53 {offsets = [0, 7], sizes = [16, 1], strides = [1, 1]} : vector<16x9xf32> to vector<16x1xf32>
    %122 = vector.broadcast %121 : vector<16x1xf32> to vector<16x512xf32>
    %123 = arith.mulf %120, %122 : vector<16x512xf32>
    %124 = arith.addf %115, %123 : vector<16x512xf32>
    %c495_i32 = arith.constant 495 : i32
    %125 = tpu.dynamic_rotate %52 by %c495_i32 dim 1 : vector<16x512xf32>, i32 -> vector<16x512xf32>
    %126 = arith.andi %10, %14 : vector<1x512xi1>
    %cst_26 = arith.constant 0.000000e+00 : f32
    %127 = vector.shape_cast %126 : vector<1x512xi1> to vector<1x512xi1>
    %128 = vector.broadcast %127 : vector<1x512xi1> to vector<16x512xi1>
    %129 = vector.broadcast %cst_26 : f32 to vector<16x512xf32>
    %130 = arith.select %128, %125, %129 : vector<16x512xi1>, vector<16x512xf32>
    %131 = vector.extract_strided_slice %53 {offsets = [0, 8], sizes = [16, 1], strides = [1, 1]} : vector<16x9xf32> to vector<16x1xf32>
    %132 = vector.broadcast %131 : vector<16x1xf32> to vector<16x512xf32>
    %133 = arith.mulf %130, %132 : vector<16x512xf32>
    %134 = arith.addf %124, %133 : vector<16x512xf32>
    %c0_27 = arith.constant 0 : index
    %c3 = arith.constant 3 : index
    %135 = vector.load %arg3[%c0_27, %c3] : memref<16x31xf32, #tpu.memory_space<vmem>>, vector<16x1xf32>
    %136 = vector.broadcast %135 : vector<16x1xf32> to vector<16x512xf32>
    %137 = arith.addf %134, %136 : vector<16x512xf32>
    %138 = vector.extract_strided_slice %137 {offsets = [0, 0], sizes = [8, 512], strides = [1, 1]} : vector<16x512xf32> to vector<8x512xf32>
    %139 = vector.extract_strided_slice %137 {offsets = [8, 0], sizes = [8, 512], strides = [1, 1]} : vector<16x512xf32> to vector<8x512xf32>
    %140 = arith.mulf %138, %139 : vector<8x512xf32>
    %cst_28 = arith.constant 0.000000e+00 : f32
    %141 = vector.broadcast %cst_28 : f32 to vector<8x512xf32>
    %cst_29 = arith.constant 0.000000e+00 : f32
    %142 = vector.shape_cast %19 : vector<1x512xi1> to vector<1x512xi1>
    %143 = vector.broadcast %142 : vector<1x512xi1> to vector<8x512xi1>
    %144 = vector.broadcast %cst_29 : f32 to vector<8x512xf32>
    %145 = arith.select %143, %140, %144 : vector<8x512xi1>, vector<8x512xf32>
    %cst_30 = arith.constant dense<0.000000e+00> : vector<8xf32>
    %146 = vector.multi_reduction <add>, %145, %cst_30 [1] : vector<8x512xf32> to vector<8xf32>
    %147 = vector.shape_cast %146 : vector<8xf32> to vector<8x1xf32>
    %cst_31 = arith.constant 3.906250e-03 : f32
    %148 = vector.broadcast %cst_31 : f32 to vector<8x1xf32>
    %149 = arith.mulf %147, %148 : vector<8x1xf32>
    %150 = vector.shape_cast %19 : vector<1x512xi1> to vector<1x512xi1>
    %151 = vector.broadcast %150 : vector<1x512xi1> to vector<8x512xi1>
    %152 = vector.shape_cast %149 : vector<8x1xf32> to vector<8x1xf32>
    %153 = vector.broadcast %152 : vector<8x1xf32> to vector<8x512xf32>
    %154 = arith.select %151, %153, %141 : vector<8x512xi1>, vector<8x512xf32>
    %cst_32 = arith.constant 0.000000e+00 : f32
    %155 = vector.shape_cast %24 : vector<1x512xi1> to vector<1x512xi1>
    %156 = vector.broadcast %155 : vector<1x512xi1> to vector<8x512xi1>
    %157 = vector.broadcast %cst_32 : f32 to vector<8x512xf32>
    %158 = arith.select %156, %140, %157 : vector<8x512xi1>, vector<8x512xf32>
    %cst_33 = arith.constant dense<0.000000e+00> : vector<8xf32>
    %159 = vector.multi_reduction <add>, %158, %cst_33 [1] : vector<8x512xf32> to vector<8xf32>
    %160 = vector.shape_cast %159 : vector<8xf32> to vector<8x1xf32>
    %cst_34 = arith.constant 3.906250e-03 : f32
    %161 = vector.broadcast %cst_34 : f32 to vector<8x1xf32>
    %162 = arith.mulf %160, %161 : vector<8x1xf32>
    %163 = vector.shape_cast %24 : vector<1x512xi1> to vector<1x512xi1>
    %164 = vector.broadcast %163 : vector<1x512xi1> to vector<8x512xi1>
    %165 = vector.shape_cast %162 : vector<8x1xf32> to vector<8x1xf32>
    %166 = vector.broadcast %165 : vector<8x1xf32> to vector<8x512xf32>
    %167 = arith.select %164, %166, %154 : vector<8x512xi1>, vector<8x512xf32>
    %c64 = arith.constant 64 : index
    %c0_35 = arith.constant 0 : index
    %168 = vector.load %arg2[%c64, %c0_35] : memref<144x8xbf16, #tpu.memory_space<vmem>>, vector<8x8xbf16>
    %169 = arith.truncf %167 : vector<8x512xf32> to vector<8x512xbf16>
    %cst_36 = arith.constant dense<0.000000e+00> : vector<8x512xf32>
    %170 = tpu.matmul %168, %169, %cst_36 {dimension_numbers = #tpu.dot_dimension_numbers<[1], [0], [0], [1], [0, 0, 1, 1], [], []>} : vector<8x8xbf16>, vector<8x512xbf16>, vector<8x512xf32> -> vector<8x512xf32>
    %c0_37 = arith.constant 0 : index
    %c4 = arith.constant 4 : index
    %171 = vector.load %arg3[%c0_37, %c4] : memref<16x31xf32, #tpu.memory_space<vmem>>, vector<8x1xf32>
    %172 = vector.broadcast %171 : vector<8x1xf32> to vector<8x512xf32>
    %173 = arith.addf %170, %172 : vector<8x512xf32>
    %174 = arith.mulf %140, %173 : vector<8x512xf32>
    %c32 = arith.constant 32 : index
    %c0_38 = arith.constant 0 : index
    %175 = vector.load %arg2[%c32, %c0_38] : memref<144x8xbf16, #tpu.memory_space<vmem>>, vector<8x8xbf16>
    %176 = arith.truncf %174 : vector<8x512xf32> to vector<8x512xbf16>
    %cst_39 = arith.constant dense<0.000000e+00> : vector<8x512xf32>
    %177 = tpu.matmul %175, %176, %cst_39 {dimension_numbers = #tpu.dot_dimension_numbers<[1], [0], [0], [1], [0, 0, 1, 1], [], []>} : vector<8x8xbf16>, vector<8x512xbf16>, vector<8x512xf32> -> vector<8x512xf32>
    %c0_40 = arith.constant 0 : index
    %c5 = arith.constant 5 : index
    %178 = vector.load %arg3[%c0_40, %c5] : memref<16x31xf32, #tpu.memory_space<vmem>>, vector<8x1xf32>
    %179 = vector.broadcast %178 : vector<8x1xf32> to vector<8x512xf32>
    %180 = arith.addf %177, %179 : vector<8x512xf32>
    %c0_41 = arith.constant 0 : index
    %c6 = arith.constant 6 : index
    %181 = vector.load %arg3[%c0_41, %c6] : memref<16x31xf32, #tpu.memory_space<vmem>>, vector<8x1xf32>
    %182 = vector.broadcast %181 : vector<8x1xf32> to vector<8x512xf32>
    %183 = arith.mulf %180, %182 : vector<8x512xf32>
    %184 = arith.addf %1, %183 : vector<8x512xf32>
    %c0_42 = arith.constant 0 : index
    %c7 = arith.constant 7 : index
    %185 = vector.load %arg3[%c0_42, %c7] : memref<16x31xf32, #tpu.memory_space<vmem>>, vector<8x1xf32>
    %c0_43 = arith.constant 0 : index
    %c8 = arith.constant 8 : index
    %186 = vector.load %arg3[%c0_43, %c8] : memref<16x31xf32, #tpu.memory_space<vmem>>, vector<8x1xf32>
    %cst_44 = arith.constant dense<0.000000e+00> : vector<512xf32>
    %187 = vector.multi_reduction <add>, %184, %cst_44 [0] : vector<8x512xf32> to vector<512xf32>
    %188 = vector.shape_cast %187 : vector<512xf32> to vector<1x512xf32>
    %cst_45 = arith.constant 8.000000e+00 : f32
    %189 = vector.broadcast %cst_45 : f32 to vector<1x512xf32>
    %190 = arith.divf %188, %189 : vector<1x512xf32>
    %191 = vector.broadcast %190 : vector<1x512xf32> to vector<8x512xf32>
    %192 = arith.subf %184, %191 : vector<8x512xf32>
    %193 = arith.mulf %192, %192 : vector<8x512xf32>
    %cst_46 = arith.constant dense<0.000000e+00> : vector<512xf32>
    %194 = vector.multi_reduction <add>, %193, %cst_46 [0] : vector<8x512xf32> to vector<512xf32>
    %195 = vector.shape_cast %194 : vector<512xf32> to vector<1x512xf32>
    %cst_47 = arith.constant 8.000000e+00 : f32
    %196 = vector.broadcast %cst_47 : f32 to vector<1x512xf32>
    %197 = arith.divf %195, %196 : vector<1x512xf32>
    %cst_48 = arith.constant 9.99999997E-7 : f32
    %198 = vector.broadcast %cst_48 : f32 to vector<1x512xf32>
    %199 = arith.addf %197, %198 : vector<1x512xf32>
    %200 = math.rsqrt %199 : vector<1x512xf32>
    %201 = vector.broadcast %200 : vector<1x512xf32> to vector<8x512xf32>
    %202 = arith.mulf %192, %201 : vector<8x512xf32>
    %203 = vector.broadcast %185 : vector<8x1xf32> to vector<8x512xf32>
    %204 = arith.mulf %202, %203 : vector<8x512xf32>
    %205 = vector.broadcast %186 : vector<8x1xf32> to vector<8x512xf32>
    %206 = arith.addf %204, %205 : vector<8x512xf32>
    %c16 = arith.constant 16 : index
    %c0_49 = arith.constant 0 : index
    %207 = vector.load %arg2[%c16, %c0_49] : memref<144x8xbf16, #tpu.memory_space<vmem>>, vector<16x8xbf16>
    %208 = arith.truncf %206 : vector<8x512xf32> to vector<8x512xbf16>
    %cst_50 = arith.constant dense<0.000000e+00> : vector<16x512xf32>
    %209 = tpu.matmul %207, %208, %cst_50 {dimension_numbers = #tpu.dot_dimension_numbers<[1], [0], [0], [1], [0, 0, 1, 1], [], []>} : vector<16x8xbf16>, vector<8x512xbf16>, vector<16x512xf32> -> vector<16x512xf32>
    %c0_51 = arith.constant 0 : index
    %c9 = arith.constant 9 : index
    %210 = vector.load %arg3[%c0_51, %c9] : memref<16x31xf32, #tpu.memory_space<vmem>>, vector<16x1xf32>
    %211 = vector.broadcast %210 : vector<16x1xf32> to vector<16x512xf32>
    %212 = arith.addf %209, %211 : vector<16x512xf32>
    %213 = vector.extract_strided_slice %212 {offsets = [0, 0], sizes = [8, 512], strides = [1, 1]} : vector<16x512xf32> to vector<8x512xf32>
    %214 = vector.extract_strided_slice %212 {offsets = [8, 0], sizes = [8, 512], strides = [1, 1]} : vector<16x512xf32> to vector<8x512xf32>
    %215 = arith.mulf %213, %214 : vector<8x512xf32>
    %c48 = arith.constant 48 : index
    %c0_52 = arith.constant 0 : index
    %216 = vector.load %arg2[%c48, %c0_52] : memref<144x8xbf16, #tpu.memory_space<vmem>>, vector<8x8xbf16>
    %217 = arith.truncf %215 : vector<8x512xf32> to vector<8x512xbf16>
    %cst_53 = arith.constant dense<0.000000e+00> : vector<8x512xf32>
    %218 = tpu.matmul %216, %217, %cst_53 {dimension_numbers = #tpu.dot_dimension_numbers<[1], [0], [0], [1], [0, 0, 1, 1], [], []>} : vector<8x8xbf16>, vector<8x512xbf16>, vector<8x512xf32> -> vector<8x512xf32>
    %c0_54 = arith.constant 0 : index
    %c10 = arith.constant 10 : index
    %219 = vector.load %arg3[%c0_54, %c10] : memref<16x31xf32, #tpu.memory_space<vmem>>, vector<8x1xf32>
    %220 = vector.broadcast %219 : vector<8x1xf32> to vector<8x512xf32>
    %221 = arith.addf %218, %220 : vector<8x512xf32>
    %c0_55 = arith.constant 0 : index
    %c11 = arith.constant 11 : index
    %222 = vector.load %arg3[%c0_55, %c11] : memref<16x31xf32, #tpu.memory_space<vmem>>, vector<8x1xf32>
    %223 = vector.broadcast %222 : vector<8x1xf32> to vector<8x512xf32>
    %224 = arith.mulf %221, %223 : vector<8x512xf32>
    %225 = arith.addf %184, %224 : vector<8x512xf32>
    %226 = vector.extract_strided_slice %225 {offsets = [0, 0], sizes = [8, 256], strides = [1, 1]} : vector<8x512xf32> to vector<8x256xf32>
    %227 = vector.extract_strided_slice %225 {offsets = [0, 256], sizes = [8, 256], strides = [1, 1]} : vector<8x512xf32> to vector<8x256xf32>
    %c0_56 = arith.constant 0 : index
    %c12 = arith.constant 12 : index
    %228 = vector.load %arg3[%c0_56, %c12] : memref<16x31xf32, #tpu.memory_space<vmem>>, vector<8x1xf32>
    %c0_57 = arith.constant 0 : index
    %c13 = arith.constant 13 : index
    %229 = vector.load %arg3[%c0_57, %c13] : memref<16x31xf32, #tpu.memory_space<vmem>>, vector<8x1xf32>
    %cst_58 = arith.constant dense<0.000000e+00> : vector<256xf32>
    %230 = vector.multi_reduction <add>, %226, %cst_58 [0] : vector<8x256xf32> to vector<256xf32>
    %231 = vector.shape_cast %230 : vector<256xf32> to vector<1x256xf32>
    %cst_59 = arith.constant 8.000000e+00 : f32
    %232 = vector.broadcast %cst_59 : f32 to vector<1x256xf32>
    %233 = arith.divf %231, %232 : vector<1x256xf32>
    %234 = vector.broadcast %233 : vector<1x256xf32> to vector<8x256xf32>
    %235 = arith.subf %226, %234 : vector<8x256xf32>
    %236 = arith.mulf %235, %235 : vector<8x256xf32>
    %cst_60 = arith.constant dense<0.000000e+00> : vector<256xf32>
    %237 = vector.multi_reduction <add>, %236, %cst_60 [0] : vector<8x256xf32> to vector<256xf32>
    %238 = vector.shape_cast %237 : vector<256xf32> to vector<1x256xf32>
    %cst_61 = arith.constant 8.000000e+00 : f32
    %239 = vector.broadcast %cst_61 : f32 to vector<1x256xf32>
    %240 = arith.divf %238, %239 : vector<1x256xf32>
    %cst_62 = arith.constant 9.99999997E-7 : f32
    %241 = vector.broadcast %cst_62 : f32 to vector<1x256xf32>
    %242 = arith.addf %240, %241 : vector<1x256xf32>
    %243 = math.rsqrt %242 : vector<1x256xf32>
    %244 = vector.broadcast %243 : vector<1x256xf32> to vector<8x256xf32>
    %245 = arith.mulf %235, %244 : vector<8x256xf32>
    %246 = vector.broadcast %228 : vector<8x1xf32> to vector<8x256xf32>
    %247 = arith.mulf %245, %246 : vector<8x256xf32>
    %248 = vector.broadcast %229 : vector<8x1xf32> to vector<8x256xf32>
    %249 = arith.addf %247, %248 : vector<8x256xf32>
    %c0_63 = arith.constant 0 : index
    %c14 = arith.constant 14 : index
    %250 = vector.load %arg3[%c0_63, %c14] : memref<16x31xf32, #tpu.memory_space<vmem>>, vector<8x1xf32>
    %c0_64 = arith.constant 0 : index
    %c15 = arith.constant 15 : index
    %251 = vector.load %arg3[%c0_64, %c15] : memref<16x31xf32, #tpu.memory_space<vmem>>, vector<8x1xf32>
    %cst_65 = arith.constant dense<0.000000e+00> : vector<256xf32>
    %252 = vector.multi_reduction <add>, %227, %cst_65 [0] : vector<8x256xf32> to vector<256xf32>
    %253 = vector.shape_cast %252 : vector<256xf32> to vector<1x256xf32>
    %cst_66 = arith.constant 8.000000e+00 : f32
    %254 = vector.broadcast %cst_66 : f32 to vector<1x256xf32>
    %255 = arith.divf %253, %254 : vector<1x256xf32>
    %256 = vector.broadcast %255 : vector<1x256xf32> to vector<8x256xf32>
    %257 = arith.subf %227, %256 : vector<8x256xf32>
    %258 = arith.mulf %257, %257 : vector<8x256xf32>
    %cst_67 = arith.constant dense<0.000000e+00> : vector<256xf32>
    %259 = vector.multi_reduction <add>, %258, %cst_67 [0] : vector<8x256xf32> to vector<256xf32>
    %260 = vector.shape_cast %259 : vector<256xf32> to vector<1x256xf32>
    %cst_68 = arith.constant 8.000000e+00 : f32
    %261 = vector.broadcast %cst_68 : f32 to vector<1x256xf32>
    %262 = arith.divf %260, %261 : vector<1x256xf32>
    %cst_69 = arith.constant 9.99999997E-7 : f32
    %263 = vector.broadcast %cst_69 : f32 to vector<1x256xf32>
    %264 = arith.addf %262, %263 : vector<1x256xf32>
    %265 = math.rsqrt %264 : vector<1x256xf32>
    %266 = vector.broadcast %265 : vector<1x256xf32> to vector<8x256xf32>
    %267 = arith.mulf %257, %266 : vector<8x256xf32>
    %268 = vector.broadcast %250 : vector<8x1xf32> to vector<8x256xf32>
    %269 = arith.mulf %267, %268 : vector<8x256xf32>
    %270 = vector.broadcast %251 : vector<8x1xf32> to vector<8x256xf32>
    %271 = arith.addf %269, %270 : vector<8x256xf32>
    %c80 = arith.constant 80 : index
    %c0_70 = arith.constant 0 : index
    %272 = vector.load %arg2[%c80, %c0_70] : memref<144x8xbf16, #tpu.memory_space<vmem>>, vector<8x8xbf16>
    %273 = arith.truncf %249 : vector<8x256xf32> to vector<8x256xbf16>
    %cst_71 = arith.constant dense<0.000000e+00> : vector<8x256xf32>
    %274 = tpu.matmul %272, %273, %cst_71 {dimension_numbers = #tpu.dot_dimension_numbers<[1], [0], [0], [1], [0, 0, 1, 1], [], []>} : vector<8x8xbf16>, vector<8x256xbf16>, vector<8x256xf32> -> vector<8x256xf32>
    %c0_72 = arith.constant 0 : index
    %c16_73 = arith.constant 16 : index
    %275 = vector.load %arg3[%c0_72, %c16_73] : memref<16x31xf32, #tpu.memory_space<vmem>>, vector<8x1xf32>
    %276 = vector.broadcast %275 : vector<8x1xf32> to vector<8x256xf32>
    %277 = arith.addf %274, %276 : vector<8x256xf32>
    %cst_74 = arith.constant 0.353553385 : f32
    %278 = vector.broadcast %cst_74 : f32 to vector<8x256xf32>
    %279 = arith.mulf %277, %278 : vector<8x256xf32>
    %c96 = arith.constant 96 : index
    %c0_75 = arith.constant 0 : index
    %280 = vector.load %arg2[%c96, %c0_75] : memref<144x8xbf16, #tpu.memory_space<vmem>>, vector<8x8xbf16>
    %281 = arith.truncf %271 : vector<8x256xf32> to vector<8x256xbf16>
    %cst_76 = arith.constant dense<0.000000e+00> : vector<8x256xf32>
    %282 = tpu.matmul %280, %281, %cst_76 {dimension_numbers = #tpu.dot_dimension_numbers<[1], [0], [0], [1], [0, 0, 1, 1], [], []>} : vector<8x8xbf16>, vector<8x256xbf16>, vector<8x256xf32> -> vector<8x256xf32>
    %c0_77 = arith.constant 0 : index
    %c17 = arith.constant 17 : index
    %283 = vector.load %arg3[%c0_77, %c17] : memref<16x31xf32, #tpu.memory_space<vmem>>, vector<8x1xf32>
    %284 = vector.broadcast %283 : vector<8x1xf32> to vector<8x256xf32>
    %285 = arith.addf %282, %284 : vector<8x256xf32>
    %c112 = arith.constant 112 : index
    %c0_78 = arith.constant 0 : index
    %286 = vector.load %arg2[%c112, %c0_78] : memref<144x8xbf16, #tpu.memory_space<vmem>>, vector<8x8xbf16>
    %287 = arith.truncf %226 : vector<8x256xf32> to vector<8x256xbf16>
    %cst_79 = arith.constant dense<0.000000e+00> : vector<8x256xf32>
    %288 = tpu.matmul %286, %287, %cst_79 {dimension_numbers = #tpu.dot_dimension_numbers<[1], [0], [0], [1], [0, 0, 1, 1], [], []>} : vector<8x8xbf16>, vector<8x256xbf16>, vector<8x256xf32> -> vector<8x256xf32>
    %c0_80 = arith.constant 0 : index
    %c18 = arith.constant 18 : index
    %289 = vector.load %arg3[%c0_80, %c18] : memref<16x31xf32, #tpu.memory_space<vmem>>, vector<8x1xf32>
    %290 = vector.broadcast %289 : vector<8x1xf32> to vector<8x256xf32>
    %291 = arith.addf %288, %290 : vector<8x256xf32>
    %c128 = arith.constant 128 : index
    %c0_81 = arith.constant 0 : index
    %292 = vector.load %arg2[%c128, %c0_81] : memref<144x8xbf16, #tpu.memory_space<vmem>>, vector<8x8xbf16>
    %293 = arith.truncf %227 : vector<8x256xf32> to vector<8x256xbf16>
    %cst_82 = arith.constant dense<0.000000e+00> : vector<8x256xf32>
    %294 = tpu.matmul %292, %293, %cst_82 {dimension_numbers = #tpu.dot_dimension_numbers<[1], [0], [0], [1], [0, 0, 1, 1], [], []>} : vector<8x8xbf16>, vector<8x256xbf16>, vector<8x256xf32> -> vector<8x256xf32>
    %c0_83 = arith.constant 0 : index
    %c19 = arith.constant 19 : index
    %295 = vector.load %arg3[%c0_83, %c19] : memref<16x31xf32, #tpu.memory_space<vmem>>, vector<8x1xf32>
    %296 = vector.broadcast %295 : vector<8x1xf32> to vector<8x256xf32>
    %297 = arith.addf %294, %296 : vector<8x256xf32>
    %298 = arith.truncf %279 : vector<8x256xf32> to vector<8x256xbf16>
    %299 = arith.truncf %285 : vector<8x256xf32> to vector<8x256xbf16>
    %cst_84 = arith.constant dense<0.000000e+00> : vector<256x256xf32>
    %300 = tpu.matmul %298, %299, %cst_84 {dimension_numbers = #tpu.dot_dimension_numbers<[0], [0], [1], [1], [0, 1, 1, 1], [], []>} : vector<8x256xbf16>, vector<8x256xbf16>, vector<256x256xf32> -> vector<256x256xf32>
    %cst_85 = arith.constant dense<0.000000e+00> : vector<256x256xf32>
    %301 = tpu.matmul %299, %298, %cst_85 {dimension_numbers = #tpu.dot_dimension_numbers<[0], [0], [1], [1], [0, 1, 1, 1], [], []>} : vector<8x256xbf16>, vector<8x256xbf16>, vector<256x256xf32> -> vector<256x256xf32>
    %302 = tpu.iota {dimensions = array<i32: 0>} : vector<256x256xi32>
    %c4_i32 = arith.constant 4 : i32
    %303 = vector.broadcast %c4_i32 : i32 to vector<256x256xi32>
    %304 = arith.shrui %302, %303 : vector<256x256xi32>
    %305 = tpu.iota {dimensions = array<i32: 1>} : vector<256x256xi32>
    %c4_i32_86 = arith.constant 4 : i32
    %306 = vector.broadcast %c4_i32_86 : i32 to vector<256x256xi32>
    %307 = arith.shrui %305, %306 : vector<256x256xi32>
    %308 = arith.cmpi eq, %304, %307 : vector<256x256xi32>
    %cst_87 = arith.constant -1.000000e+30 : f32
    %309 = vector.broadcast %cst_87 : f32 to vector<256x256xf32>
    %310 = arith.select %308, %300, %309 : vector<256x256xi1>, vector<256x256xf32>
    %cst_88 = arith.constant dense<0xFF800000> : vector<256xf32>
    %311 = vector.multi_reduction <maximumf>, %310, %cst_88 [0] : vector<256x256xf32> to vector<256xf32>
    %312 = vector.shape_cast %311 : vector<256xf32> to vector<1x256xf32>
    %313 = vector.broadcast %312 : vector<1x256xf32> to vector<256x256xf32>
    %314 = arith.subf %310, %313 : vector<256x256xf32>
    %315 = math.exp %314 : vector<256x256xf32>
    %cst_89 = arith.constant 0.000000e+00 : f32
    %316 = vector.broadcast %cst_89 : f32 to vector<256x256xf32>
    %317 = arith.select %308, %315, %316 : vector<256x256xi1>, vector<256x256xf32>
    %cst_90 = arith.constant dense<0.000000e+00> : vector<256xf32>
    %318 = vector.multi_reduction <add>, %317, %cst_90 [0] : vector<256x256xf32> to vector<256xf32>
    %319 = vector.shape_cast %318 : vector<256xf32> to vector<1x256xf32>
    %320 = tpu.reciprocal %319 {approx = true} : vector<1x256xf32> -> vector<1x256xf32>
    %321 = vector.broadcast %320 : vector<1x256xf32> to vector<256x256xf32>
    %322 = arith.mulf %317, %321 : vector<256x256xf32>
    %cst_91 = arith.constant -1.000000e+30 : f32
    %323 = vector.broadcast %cst_91 : f32 to vector<256x256xf32>
    %324 = arith.select %308, %301, %323 : vector<256x256xi1>, vector<256x256xf32>
    %cst_92 = arith.constant dense<0xFF800000> : vector<256xf32>
    %325 = vector.multi_reduction <maximumf>, %324, %cst_92 [0] : vector<256x256xf32> to vector<256xf32>
    %326 = vector.shape_cast %325 : vector<256xf32> to vector<1x256xf32>
    %327 = vector.broadcast %326 : vector<1x256xf32> to vector<256x256xf32>
    %328 = arith.subf %324, %327 : vector<256x256xf32>
    %329 = math.exp %328 : vector<256x256xf32>
    %cst_93 = arith.constant 0.000000e+00 : f32
    %330 = vector.broadcast %cst_93 : f32 to vector<256x256xf32>
    %331 = arith.select %308, %329, %330 : vector<256x256xi1>, vector<256x256xf32>
    %cst_94 = arith.constant dense<0.000000e+00> : vector<256xf32>
    %332 = vector.multi_reduction <add>, %331, %cst_94 [0] : vector<256x256xf32> to vector<256xf32>
    %333 = vector.shape_cast %332 : vector<256xf32> to vector<1x256xf32>
    %334 = tpu.reciprocal %333 {approx = true} : vector<1x256xf32> -> vector<1x256xf32>
    %335 = vector.broadcast %334 : vector<1x256xf32> to vector<256x256xf32>
    %336 = arith.mulf %331, %335 : vector<256x256xf32>
    %337 = arith.truncf %291 : vector<8x256xf32> to vector<8x256xbf16>
    %338 = arith.truncf %322 : vector<256x256xf32> to vector<256x256xbf16>
    %cst_95 = arith.constant dense<0.000000e+00> : vector<8x256xf32>
    %339 = tpu.matmul %337, %338, %cst_95 {dimension_numbers = #tpu.dot_dimension_numbers<[1], [0], [0], [1], [0, 0, 1, 1], [], []>} : vector<8x256xbf16>, vector<256x256xbf16>, vector<8x256xf32> -> vector<8x256xf32>
    %340 = arith.truncf %297 : vector<8x256xf32> to vector<8x256xbf16>
    %341 = arith.truncf %336 : vector<256x256xf32> to vector<256x256xbf16>
    %cst_96 = arith.constant dense<0.000000e+00> : vector<8x256xf32>
    %342 = tpu.matmul %340, %341, %cst_96 {dimension_numbers = #tpu.dot_dimension_numbers<[1], [0], [0], [1], [0, 0, 1, 1], [], []>} : vector<8x256xbf16>, vector<256x256xbf16>, vector<8x256xf32> -> vector<8x256xf32>
    %c0_97 = arith.constant 0 : index
    %c20 = arith.constant 20 : index
    %343 = vector.load %arg3[%c0_97, %c20] : memref<16x31xf32, #tpu.memory_space<vmem>>, vector<8x1xf32>
    %344 = vector.broadcast %343 : vector<8x1xf32> to vector<8x256xf32>
    %345 = arith.mulf %342, %344 : vector<8x256xf32>
    %346 = arith.addf %226, %345 : vector<8x256xf32>
    %c0_98 = arith.constant 0 : index
    %c21 = arith.constant 21 : index
    %347 = vector.load %arg3[%c0_98, %c21] : memref<16x31xf32, #tpu.memory_space<vmem>>, vector<8x1xf32>
    %348 = vector.broadcast %347 : vector<8x1xf32> to vector<8x256xf32>
    %349 = arith.mulf %339, %348 : vector<8x256xf32>
    %350 = arith.addf %227, %349 : vector<8x256xf32>
    %351 = tpu.concatenate %346, %350 in 1 : vector<8x256xf32>, vector<8x256xf32> -> vector<8x512xf32>
    %c0_99 = arith.constant 0 : index
    %c0_100 = arith.constant 0 : index
    %c0_101 = arith.constant 0 : index
    %352 = vector.load %arg4[%c0_99, %c0_100, %c0_101] : memref<1x8x512xf32, #tpu.memory_space<vmem>>, vector<1x8x512xf32>
    %353 = vector.shape_cast %352 : vector<1x8x512xf32> to vector<8x512xf32>
    %354 = vector.shape_cast %351 : vector<8x512xf32> to vector<1x8x512xf32>
    tpu.vector_store %arg4[%c0_99, %c0_100, %c0_101], %354 {strides = array<i32>} : memref<1x8x512xf32, #tpu.memory_space<vmem>>, vector<1x8x512xf32>,
    return
  }
  func.func @transform_0(%arg0: i32) -> (i32, i32, i32) {
    %c0_i32 = arith.constant 0 : i32
    %c0_i32_0 = arith.constant 0 : i32
    %c0_i32_1 = arith.constant 0 : i32
    return %arg0, %c0_i32, %c0_i32_0 : i32, i32, i32
  }
  func.func @transform_1(%arg0: i32) -> (i32, i32) {
    %c0_i32 = arith.constant 0 : i32
    %c0_i32_0 = arith.constant 0 : i32
    %c0_i32_1 = arith.constant 0 : i32
    return %c0_i32, %c0_i32_0 : i32, i32
  }
  func.func @transform_2(%arg0: i32) -> (i32, i32) {
    %c0_i32 = arith.constant 0 : i32
    %c0_i32_0 = arith.constant 0 : i32
    %c0_i32_1 = arith.constant 0 : i32
    return %c0_i32, %c0_i32_0 : i32, i32
  }
  func.func @transform_3(%arg0: i32) -> (i32, i32, i32) {
    %c0_i32 = arith.constant 0 : i32
    %c0_i32_0 = arith.constant 0 : i32
    %c0_i32_1 = arith.constant 0 : i32
    return %arg0, %c0_i32, %c0_i32_0 : i32, i32, i32
  }
}

</mosaic_0001>

<bundles_post_ra>
// kernel: tpu_custom_call.1
= control target key start
LH: loop header
LB: loop body
LE: loop exit
PB: predicated region body
PF: predicated region fallthrough
CT: control target
= control target key end

     0   :  { %8 = vsyncpa [#allocation3], 0  ;;  %s7029_s0 = inlined_call_operand.vmem [shape: f32[2,8,512], index: 0, kind: input, shape index: {}]   ;;  %s7030_s1 = inlined_call_operand.vmem [shape: bf16[144,8], index: 1, kind: input, shape index: {}]   ;;  %s7031_s2 = inlined_call_operand.vmem [shape: f32[16,31], index: 2, kind: input, shape index: {}]   ;;  %s7032_s3 = inlined_call_operand.hbm [shape: f32[2,8,512], index: 3, kind: output, shape index: {}]  }
   0x1   :  { %10 = vsyncpa [#allocation3 + $0x1], 0  ;;  %s4383_s12 = smov 0   ;;  %s4385_s13 = smov 0  }
   0x2   :  { %s4387_s14 = smov 0   ;;  %s4389_s15 = smov 0  }
   0x3 LB: > { %s4404_s16 = sadd.s32 4294967295, %s4321_s15   ;;  %s3851_s17 = sadd.s32 4294967294, %s4321_s15   ;;  %s4321_s15 = sphi %s4389_s15, %s7494_s15   ;;  %s4317_s14 = sphi %s4387_s14, %s7493_s14   ;;  %s4313_s13 = sphi %s4385_s13, %s7492_s13   ;;  %s4309_s12 = sphi %s4383_s12, %s7491_s12  }
   0x4   : > { %s4408_s18 = sadd.s32 1, %s4321_s15   ;;  %s91_s19 = sadd.s32 1, %s4317_s14 }
   0x5   : > { %s88_s20 = ssub.s32 %s4321_s15, %s4408_s18  ;;  %p101_p0 = scmp.ne.s32.totalorder %s4317_s14, %s4313_s13 }
   0x6   : > { %p89_p1 = scmp.eq.s32.totalorder %s88_s20, 0  ;;  %p102_p2 = scmp.eq.s32.totalorder %s4404_s16, 1 }
   0x7   : > { %p107_p3 = scmp.ne.s32.totalorder %s4313_s13, %s4309_s12  ;;  %p108_p4 = scmp.eq.s32.totalorder %s3851_s17, 1 }
   0x8   : > { %s4419_s21 = scalar_select %p89_p1, %s4317_s14, %s91_s19  }
   0x9   : > { %p4421_p5 = por %p102_p2, %p101_p0  ;;  %p4425_p6 = por %p108_p4, %p107_p3 }
   0xa   : > { %p3854_p7 = scmp.ge.s32.totalorder %s4321_s15, 1  ;;  %p140_p8 = scmp.lt.s32.totalorder %s4321_s15, 3 }
   0xc   : > { %p141_p9 = pnand %p3854_p7, %p140_p8 }
   0xe   : > { %144 = sbr.rel (%p141_p9) target bundleno = 2374 (0x946), region = 32 }
  0x13   : > { %v4434_v0 = vld [vmem:[%s7031_s2] sm:$0xff]  ;;  %v4323_v1 = vmov 0   ;;  %v4324_v2 = vmov 2   ;;  %v4325_v3 = vmov 1   ;;  %p164_p10 = scmp.lt.s32.totalorder %s4404_s16, 1  ;;  %v4326_v4 = vmov 8.0  }
  0x14   : > { %4046 = vset.pattern.permute.xlu0 %v4323_v1  ;;  %4048 = vset.pattern.permute.xlu1 %v4324_v2  ;;  %4089 = vrcp.f32 %v4326_v4  ;;  %vm7043_vm13 = vcmask 1043456   ;;  %vm7042_vm14 = vcmask 64512   ;;  %s4337_s8 = smov 1   ;;  %s4338_s9 = smov 15  }
  0x15   : > { %349 = vperm.xlu0 %4046, %v4434_v0   ;;  %374 = vperm.xlu1 %4048, %v4434_v0   ;;  %s165_s26 = scalar_select %p164_p10, %s4404_s16, 1 }
  0x16   : > { %s4339_s10 = smov 17   ;;  %s4340_s11 = smov 113  }
  0x17   : > { %s3963_s27 = sshll.u32 %s165_s26, 5  ;;  %s4341_s17 = smov 16  }
  0x18   : > { %s4444_s30 = scalar_lea.vmem %s7029_s0, %s3963_s27  ;;  %s4342_s19 = smov 112  }
  0x19   : > { %v170_v5 = vld [vmem:[%s4444_s30] sm:$0xff]  ;;  %v171_v6 = vld [vmem:[%s4444_s30 + $0x8] sm:$0xff]  ;;  %v172_v7 = vld [vmem:[%s4444_s30 + $0x10] sm:$0xff]  ;;  %s4343_s20 = smov 127   ;;  %s4344_s24 = smov 111  }
  0x1a   : > { %v228_v8 = vrot.slane %v170_v5, 4  ;;  %v234_v9 = vrot.slane %v171_v6, 4  ;;  %v240_v10 = vrot.slane %v172_v7, 4  ;;  %v173_v11 = vld [vmem:[%s4444_s30 + $0x18] sm:$0xff]  ;;  %v4090_v13 = vpop.eup %4089  ;;  %s3966_s7 = sshll.u32 %s4404_s16, 5  ;;  %s4279_s26 = scalar_lea.hbm %s7032_s3, 64 }
  0x1b   : > { %v246_v12 = vrot.slane %v173_v11, 4  ;;  %v253_v17 = vmul.f32 8.0, %v4090_v13  ;;  %vm257_vm0 = vweird.f32 %v4090_v13 }
  0x1c   : > { %v229_v14 = vadd.f32 %v228_v8, %v170_v5  ;;  %v235_v15 = vadd.f32 %v234_v9, %v171_v6  ;;  %v241_v16 = vadd.f32 %v240_v10, %v172_v7 }
  0x1d   : > { %4047 = vset.pattern.permute.xlu0 %v4325_v3  ;;  %v247_v18 = vadd.f32 %v246_v12, %v173_v11  ;;  %v254_v22 = vsub.f32 1.0, %v253_v17 }
  0x1e   : > { %357 = vperm.xlu0 %4047, %v4434_v0   ;;  %v230_v19 = vrot.slane %v229_v14, 2  ;;  %v236_v20 = vrot.slane %v235_v15, 2  ;;  %v242_v21 = vrot.slane %v241_v16, 2 }
  0x1f   : > { %v248_v23 = vrot.slane %v247_v18, 2  ;;  %v255_v27 = vmul.f32 %v4090_v13, %v254_v22 }
  0x20   : > { %v231_v24 = vadd.f32 %v230_v19, %v229_v14  ;;  %v237_v25 = vadd.f32 %v236_v20, %v235_v15  ;;  %v243_v26 = vadd.f32 %v242_v21, %v241_v16  ;;  %v4479_v19 = vld [vmem:[%s7031_s2 + $0x8] sm:$0xff] }
  0x21   : > { %v249_v28 = vadd.f32 %v248_v23, %v247_v18  ;;  %v256_v32 = vadd.f32 %v4090_v13, %v255_v27  ;;  %379 = vperm.xlu1 %4048, %v4479_v19  }
  0x22   : > { %v232_v29 = vrot.slane %v231_v24, 1  ;;  %v238_v30 = vrot.slane %v237_v25, 1  ;;  %v244_v31 = vrot.slane %v243_v26, 1 }
  0x23   : > { %v250_v33 = vrot.slane %v249_v28, 1  ;;  %v4450_v37 = vsel %vm257_vm0, %v4090_v13, %v256_v32 }
  0x24   : > { %v233_v34 = vadd.f32 %v232_v29, %v231_v24  ;;  %v239_v35 = vadd.f32 %v238_v30, %v237_v25  ;;  %v245_v36 = vadd.f32 %v244_v31, %v243_v26  ;;  %7134 = vst [vmem:[#allocation5_spill] sm:$0xff] %v4450_v37  ;;  %v4327_v25 = vmov 23  }
  0x25   : > { %v251_v38 = vadd.f32 %v250_v33, %v249_v28 }
  0x26   : > { %v259_v39 = vmul.f32 %v4450_v37, %v233_v34  ;;  %v260_v40 = vmul.f32 %v4450_v37, %v239_v35  ;;  %v261_v41 = vmul.f32 %v4450_v37, %v245_v36  ;;  %v4328_v36 = vmov 24  }
  0x27   : > { %v262_v42 = vmul.f32 %v4450_v37, %v251_v38  ;;  %v4329_v38 = vmov 22  }
  0x28   : > { %v4456_v43 = vsub.f32 %v170_v5, %v259_v39  ;;  %v4458_v44 = vsub.f32 %v171_v6, %v260_v40  ;;  %v4460_v45 = vsub.f32 %v172_v7, %v261_v41  ;;  %4049 = vset.pattern.permute.xlu2 %v4329_v38  ;;  %4050 = vset.pattern.permute.xlu0 %v4329_v38 }
  0x29   : > { %v4462_v46 = vsub.f32 %v173_v11, %v262_v42  ;;  %4051 = vset.pattern.permute.xlu1 %v4327_v25  ;;  %506 = vperm.xlu2 %4049, %v4434_v0  }
  0x2a   : > { %v267_v47 = vmul.f32 %v4456_v43, %v4456_v43  ;;  %v268_v48 = vmul.f32 %v4458_v44, %v4458_v44  ;;  %v269_v49 = vmul.f32 %v4460_v45, %v4460_v45  ;;  %571 = vperm.xlu1 %4051, %v4434_v0   ;;  %510 = vperm.xlu0 %4050, %v4479_v19  }
  0x2b   : > { %v270_v50 = vmul.f32 %v4462_v46, %v4462_v46 }
  0x2c   : > { %v271_v51 = vrot.slane %v267_v47, 4  ;;  %v277_v52 = vrot.slane %v268_v48, 4  ;;  %v283_v53 = vrot.slane %v269_v49, 4 }
  0x2d   : > { %v289_v54 = vrot.slane %v270_v50, 4 }
  0x2e   : > { %v272_v55 = vadd.f32 %v271_v51, %v267_v47  ;;  %v278_v56 = vadd.f32 %v277_v52, %v268_v48  ;;  %v284_v57 = vadd.f32 %v283_v53, %v269_v49 }
  0x2f   : > { %v290_v58 = vadd.f32 %v289_v54, %v270_v50 }
  0x30   : > { %v273_v59 = vrot.slane %v272_v55, 2  ;;  %v279_v60 = vrot.slane %v278_v56, 2  ;;  %v285_v61 = vrot.slane %v284_v57, 2 }
  0x31   : > { %v291_v62 = vrot.slane %v290_v58, 2  ;;  %4052 = vset.pattern.permute.xlu2 %v4327_v25 }
  0x32   : > { %v274_v63 = vadd.f32 %v273_v59, %v272_v55  ;;  %v280_v1 = vadd.f32 %v279_v60, %v278_v56  ;;  %v286_v2 = vadd.f32 %v285_v61, %v284_v57  ;;  %4053 = vset.pattern.permute.xlu1 %v4328_v36  ;;  %v4330_v56 = vmov 25   ;;  %575 = vperm.xlu2 %4052, %v4479_v19  }
  0x33   : > { %v292_v3 = vadd.f32 %v291_v62, %v290_v58  ;;  %640 = vperm.xlu1 %4053, %v4434_v0   ;;  %4055 = vset.pattern.permute.xlu0 %v4330_v56 }
  0x34   : > { %v275_v4 = vrot.slane %v274_v63, 1  ;;  %v281_v5 = vrot.slane %v280_v1, 1  ;;  %v287_v6 = vrot.slane %v286_v2, 1  ;;  %705 = vperm.xlu0 %4055, %v4434_v0  }
  0x35   : > { %v293_v7 = vrot.slane %v292_v3, 1 }
  0x36   : > { %v276_v8 = vadd.f32 %v275_v4, %v274_v63  ;;  %v282_v9 = vadd.f32 %v281_v5, %v280_v1  ;;  %v288_v10 = vadd.f32 %v287_v6, %v286_v2 }
  0x37   : > { %v294_v11 = vadd.f32 %v293_v7, %v292_v3  ;;  %v4331_v3 = vmov 26  }
  0x38   : > { %v295_v12 = vmul.f32 %v276_v8, %v4450_v37  ;;  %v296_v13 = vmul.f32 %v282_v9, %v4450_v37  ;;  %v297_v14 = vmul.f32 %v288_v10, %v4450_v37  ;;  %v4332_v8 = vmov 27  }
  0x39   : > { %v298_v15 = vmul.f32 %v294_v11, %v4450_v37 }
  0x3a   : > { %v299_v16 = vadd.f32 1e-06, %v295_v12  ;;  %v300_v17 = vadd.f32 1e-06, %v296_v13  ;;  %v301_v18 = vadd.f32 1e-06, %v297_v14  ;;  %4054 = vset.pattern.permute.xlu2 %v4328_v36 }
  0x3b   : > { %v302_v20 = vadd.f32 1e-06, %v298_v15  ;;  %4056 = vset.pattern.permute.xlu1 %v4330_v56  ;;  %644 = vperm.xlu2 %4054, %v4479_v19  }
  0x3c   : > { %4091 = vrsqrt.f32 %v299_v16  ;;  %vm309_vm1 = vweird.f32 %v299_v16  ;;  %vm319_vm3 = vweird.f32 %v300_v17  ;;  %vm329_vm5 = vweird.f32 %v301_v18  ;;  %709 = vperm.xlu1 %4056, %v4479_v19   ;;  %4060 = vset.pattern.permute.xlu0 %v4332_v8 }
  0x3d   : > { %4093 = vrsqrt.f32 %v300_v17  ;;  %vm339_vm8 = vweird.f32 %v302_v20  ;;  %798 = vperm.xlu0 %4060, %v4479_v19  }
  0x3e   : > { %4095 = vrsqrt.f32 %v301_v18 }
  0x3f   : > { %4097 = vrsqrt.f32 %v302_v20 }
  0x42   : > { %v4092_v21 = vpop.eup %4091 }
  0x43   : > { %v4094_v22 = vpop.eup %4093  ;;  %v304_v26 = vmul.f32 %v4092_v21, %v299_v16  ;;  %vm310_vm2 = vweird.f32 %v4092_v21  ;;  %4057 = vset.pattern.permute.xlu2 %v4331_v3 }
  0x44   : > { %v4096_v23 = vpop.eup %4095  ;;  %v314_v27 = vmul.f32 %v4094_v22, %v300_v17  ;;  %vm320_vm4 = vweird.f32 %v4094_v22  ;;  %vm4486_vm7 = vmor %vm309_vm1, %vm310_vm2  ;;  %4058 = vset.pattern.permute.xlu1 %v4331_v3  ;;  %729 = vperm.xlu2 %4057, %v4434_v0  }
  0x45   : > { %v4098_v24 = vpop.eup %4097  ;;  %v324_v28 = vmul.f32 %v4096_v23, %v301_v18  ;;  %v305_v30 = vmul.f32 %v4092_v21, %v304_v26  ;;  %vm330_vm6 = vweird.f32 %v4096_v23  ;;  %vm4490_vm10 = vmor %vm319_vm3, %vm320_vm4  ;;  %733 = vperm.xlu1 %4058, %v4479_v19   ;;  %v3964_v18 = vld [vmem:[%s7030_s1] sm:$0xff] }
  0x46   : > { %v334_v29 = vmul.f32 %v4098_v24, %v302_v20  ;;  %v315_v31 = vmul.f32 %v4094_v22, %v314_v27  ;;  %vm340_vm9 = vweird.f32 %v4098_v24  ;;  %vm4494_vm11 = vmor %vm329_vm5, %vm330_vm6  ;;  %v4333_v20 = vmov 28  }
  0x47   : > { %v325_v32 = vmul.f32 %v4096_v23, %v324_v28  ;;  %v306_v34 = vmul.f32 0.5, %v305_v30  ;;  %vm341_vm12 = vmor %vm339_vm8, %vm340_vm9  ;;  %4062 = vset.pattern.permute.xlu0 %v4333_v20 }
  0x48   : > { %v335_v33 = vmul.f32 %v4098_v24, %v334_v29  ;;  %v316_v35 = vmul.f32 0.5, %v315_v31  ;;  %867 = vperm.xlu0 %4062, %v4479_v19  }
  0x49   : > { %v326_v39 = vmul.f32 0.5, %v325_v32  ;;  %v307_v41 = vsub.f32 1.5, %v306_v34 }
  0x4a   : > { %v336_v40 = vmul.f32 0.5, %v335_v33  ;;  %v317_v42 = vsub.f32 1.5, %v316_v35 }
  0x4b   : > { %v327_v47 = vsub.f32 1.5, %v326_v39  ;;  %v308_v50 = vmul.f32 %v4092_v21, %v307_v41 }
  0x4c   : > { %v337_v48 = vsub.f32 1.5, %v336_v40  ;;  %v318_v52 = vmul.f32 %v4094_v22, %v317_v42  ;;  %4059 = vset.pattern.permute.xlu2 %v4332_v8 }
  0x4d   : > { %v328_v53 = vmul.f32 %v4096_v23, %v327_v47  ;;  %v312_v58 = vsel %vm4486_vm7, %v4092_v21, %v308_v50  ;;  %v4334_v21 = vmov 29   ;;  %794 = vperm.xlu2 %4059, %v4434_v0  }
  0x4e   : > { %v338_v55 = vmul.f32 %v4098_v24, %v337_v48  ;;  %v322_v59 = vsel %vm4490_vm10, %v4094_v22, %v318_v52  ;;  %v343_v62 = vmul.f32 %v312_v58, %v4456_v43  ;;  %v4335_v22 = vmov 30  }
  0x4f   : > { %v332_v60 = vsel %vm4494_vm11, %v4096_v23, %v328_v53  ;;  %v344_v63 = vmul.f32 %v322_v59, %v4458_v44  ;;  %v4336_v23 = vmov 3  }
  0x50   : > { %v342_v61 = vsel %vm341_vm12, %v4098_v24, %v338_v55  ;;  %v345_v1 = vmul.f32 %v332_v60, %v4460_v45  ;;  %4064 = vset.pattern.permute.xlu0 %v4334_v21 }
  0x51   : > { %v346_v2 = vmul.f32 %v342_v61, %v4462_v46  ;;  %932 = vperm.xlu0 %4064, %v4479_v19  }
  0x55   : > { %4061 = vset.pattern.permute.xlu2 %v4333_v20 }
  0x56   : > { %863 = vperm.xlu2 %4061, %v4434_v0  }
  0x59   : > { %4066 = vset.pattern.permute.xlu0 %v4335_v22 }
  0x5a   : > { %1001 = vperm.xlu0 %4066, %v4479_v19  }
  0x5e   : > { %4063 = vset.pattern.permute.xlu2 %v4334_v21 }
  0x5f   : > { %928 = vperm.xlu2 %4063, %v4434_v0  }
  0x62   : > { %4068 = vset.pattern.permute.xlu0 %v4336_v23 }
  0x67   : > { %4065 = vset.pattern.permute.xlu2 %v4335_v22 }
  0x68   : > { %997 = vperm.xlu2 %4065, %v4434_v0  }
  0x70   : > { %4067 = vset.pattern.permute.xlu2 %v4336_v23 }
  0x71   : > { %1021 = vperm.xlu2 %4067, %v4434_v0  }
  0x83   : > { %v4542_v27 = vpop.permute.xlu2 %506 }
  0x87   : > { %v350_v57 = vpop.permute.xlu0 %349  ;;  %v375_v24 = vpop.permute.xlu1 %374 }
  0x88   : > { %v352_v4 = vmul.f32 %v350_v57, %v343_v62  ;;  %v353_v5 = vmul.f32 %v350_v57, %v344_v63  ;;  %v354_v6 = vmul.f32 %v350_v57, %v345_v1  ;;  %v355_v7 = vmul.f32 %v350_v57, %v346_v2 }
  0x8c   : > { %v4552_v30 = vpop.permute.xlu2 %575 }
  0x90   : > { %v358_v43 = vpop.permute.xlu0 %357 }
  0x91   : > { %v360_v44 = vadd.f32 %v358_v43, %v352_v4  ;;  %v361_v45 = vadd.f32 %v358_v43, %v353_v5  ;;  %v362_v9 = vadd.f32 %v358_v43, %v354_v6  ;;  %v363_v46 = vadd.f32 %v358_v43, %v355_v7 }
  0x92   : > { %v7033_v6 = vlaneseq }
  0x93   : > { %v366_v10 = vpack.c.bf16 %v360_v44, %v360_v44  ;;  %v367_v11 = vpack.c.bf16 %v361_v45, %v361_v45  ;;  %v368_v12 = vpack.c.bf16 %v362_v9, %v362_v9  ;;  %v369_v13 = vpack.c.bf16 %v363_v46, %v363_v46  ;;  %v380_v38 = vpop.permute.xlu1 %379 }
  0x94   : > { %v4690_v8 = vand.u32 127, %v7033_v6 }
  0x95   : > { %v393_v14 = vsel %vm7043_vm13, %v366_v10, 0  ;;  %v396_v15 = vsel %vm7043_vm13, %v367_v11, 0  ;;  %v399_v16 = vsel %vm7043_vm13, %v368_v12, 0  ;;  %v402_v17 = vsel %vm7043_vm13, %v369_v13, 0  ;;  %v4562_v32 = vpop.permute.xlu2 %644 }
  0x96   : > { %411 = vmatpush.bf16.msra.mxu0 %v393_v14  ;;  %425 = vmatpush.bf16.msra.mxu1 %v396_v15  ;;  %vm610_vm15 = vcmp.lt.s32.totalorder %v4690_v8, 15  ;;  %vm7056_vm0 = vcmp.lt.s32.totalorder %v4690_v8, 17  ;;  %vm7054_vm7 = vcmp.lt.s32.totalorder %v4690_v8, 16 }
  0x97   : > { %439 = vmatpush.bf16.msra.mxu2 %v399_v16  ;;  %453 = vmatpush.bf16.msra.mxu3 %v402_v17  ;;  %v4728_v16 = vadd.s32 128, %v4690_v8  ;;  %v179_v17 = vand.u32 255, %v4690_v8 }
  0x99   : > { %3862 = vmatmul.msk.bf16.vlgmr.msra.gmra.mxu0 %vm7042_vm14, %v3964_v18  ;;  %3863 = vmatmul.msk.bf16.vlgmr.msra.gmra.mxu1 %vm7042_vm14, %v3964_v18  ;;  %7152 = vst [vmem:[#allocation17_spill] sm:$0xff] %v4728_v16  ;;  %vm4749_vm2 = vcmp.ge.s32.totalorder %v179_v17, 16 }
  0x9a   : > { %3864 = vmatmul.msk.bf16.vlgmr.msra.gmra.mxu2 %vm7042_vm14, %v3964_v18  ;;  %3865 = vmatmul.msk.bf16.vlgmr.msra.gmra.mxu3 %vm7042_vm14, %v3964_v18  ;;  %v183_v18 = vand.u32 15, %v4690_v8  ;;  %vm679_vm14 = vcmp.lt.s32.totalorder %v4690_v8, 1 }
  0x9c   : > { %v4598_v47 = vpop.permute.xlu0 %510  ;;  %v4628_v53 = vpop.permute.xlu1 %571  ;;  %vm4745_vm1 = vcmp.ge.s32.totalorder %v183_v18, 1  ;;  %vm4753_vm3 = vcmp.le.s32.totalorder %v183_v18, 14 }
  0x9d   : > { %vm7045_vm5 = vmand %vm4749_vm2, %vm4745_vm1 }
  0x9e   : > { %v4576_v35 = vpop.permute.xlu2 %729  ;;  %vm7044_vm8 = vmand %vm4749_vm2, %vm4753_vm3 }
  0xa5   : > { %v4640_v57 = vpop.permute.xlu1 %640 }
  0xa6   : > { %v4614_v50 = vpop.permute.xlu0 %705 }
  0xa7   : > { %v4588_v40 = vpop.permute.xlu2 %794 }
  0xae   : > { %v4656_v63 = vpop.permute.xlu1 %709 }
  0xaf   : > { %v4626_v52 = vpop.permute.xlu0 %798 }
  0xb0   : > { %v4596_v41 = vpop.permute.xlu2 %863  ;;  %7145 = vst [vmem:[#allocation10_spill] sm:$0xff] %v4626_v52 }
  0xb1   : > { %7141 = vst [vmem:[#allocation6_spill] sm:$0xff] %v4596_v41 }
  0xb7   : > { %v4673_v3 = vpop.permute.xlu1 %733 }
  0xb9   : > { %v4608_v49 = vpop.permute.xlu2 %928 }
  0xba   : > { %7143 = vst [vmem:[#allocation8_spill] sm:$0xff] %v4608_v49  ;;  %v4638_v56 = vpop.permute.xlu0 %867 }
  0xbb   : > { %7147 = vst [vmem:[#allocation12_spill] sm:$0xff] %v4638_v56 }
  0xc2   : > { %v4618_v51 = vpop.permute.xlu2 %997 }
  0xc3   : > { %7144 = vst [vmem:[#allocation9_spill] sm:$0xff] %v4618_v51  ;;  %v4654_v62 = vpop.permute.xlu0 %932 }
  0xc4   : > { %7149 = vst [vmem:[#allocation14_spill] sm:$0xff] %v4654_v62 }
  0xcb   : > { %v4636_v54 = vpop.permute.xlu2 %1021 }
  0xcc   : > { %7146 = vst [vmem:[#allocation11_spill] sm:$0xff] %v4636_v54  ;;  %v4669_v2 = vpop.permute.xlu0 %1001  ;;  %v177_v54 = vadd.s32 256, %v4690_v8 }
  0xcd   : > { %7150 = vst [vmem:[#allocation15_spill] sm:$0xff] %v4669_v2 }
 0x116   : > { %v427_v25 = vpop.f32.mrf.mxu1  ;;  %v413_v28 = vpop.f32.mrf.mxu0 }
 0x117   : > { %v4534_v26 = vadd.f32 %v427_v25, %v375_v24  ;;  %v4544_v0 = vadd.f32 %v413_v28, %v375_v24  ;;  %v184_v25 = vand.u32 15, %v4728_v16 }
 0x119   : > { %667 = vrot.lane.b32.xlu0 %v4534_v26, %s4337_s8  ;;  %598 = vrot.lane.b32.xlu1 %v4534_v26, %s4338_s9  ;;  %vm4757_vm4 = vcmp.ge.s32.totalorder %v184_v25, 1  ;;  %vm4765_vm6 = vcmp.le.s32.totalorder %v184_v25, 14 }
 0x11a   : > { %464 = vrot.lane.b32.xlu2 %v4534_v26, %s4339_s10 }
 0x11d   : > { %v455_v29 = vpop.f32.mrf.mxu3  ;;  %v441_v33 = vpop.f32.mrf.mxu2 }
 0x11e   : > { %v4554_v31 = vadd.f32 %v455_v29, %v375_v24  ;;  %v4570_v34 = vadd.f32 %v441_v33, %v375_v24  ;;  %v429_v36 = vpop.f32.mrf.mxu1  ;;  %v415_v42 = vpop.f32.mrf.mxu0 }
 0x11f   : > { %v4580_v39 = vadd.f32 %v429_v36, %v380_v38  ;;  %v4600_v48 = vadd.f32 %v415_v42, %v380_v38 }
 0x121   : > { %594 = vrot.lane.b32.xlu0 %v4544_v0, %s4338_s9  ;;  %817 = vrot.lane.b32.xlu1 %v4544_v0, %s4340_s11  ;;  %7142 = vst [vmem:[#allocation7_spill] sm:$0xff] %v4600_v48 }
 0x122   : > { %533 = vrot.lane.b32.xlu2 %v4534_v26, %s4341_s17 }
 0x125   : > { %v457_v55 = vpop.f32.mrf.mxu3  ;;  %v443_v59 = vpop.f32.mrf.mxu2 }
 0x126   : > { %v4642_v58 = vadd.f32 %v457_v55, %v380_v38  ;;  %v4652_v61 = vadd.f32 %v443_v59, %v380_v38 }
 0x128   : > { %7148 = vst [vmem:[#allocation13_spill] sm:$0xff] %v4652_v61 }
 0x129   : > { %472 = vrot.lane.b32.xlu0 %v4554_v31, %s4339_s10  ;;  %886 = vrot.lane.b32.xlu1 %v4544_v0, %s4342_s19 }
 0x12a   : > { %752 = vrot.lane.b32.xlu2 %v4544_v0, %s4343_s20 }
 0x131   : > { %541 = vrot.lane.b32.xlu0 %v4554_v31, %s4341_s17  ;;  %951 = vrot.lane.b32.xlu1 %v4544_v0, %s4344_s24 }
 0x132   : > { %606 = vrot.lane.b32.xlu2 %v4554_v31, %s4338_s9 }
 0x139   : > { %602 = vrot.lane.b32.xlu0 %v4570_v34, %s4338_s9  ;;  %460 = vrot.lane.b32.xlu1 %v4544_v0, %s4339_s10 }
 0x13a   : > { %671 = vrot.lane.b32.xlu2 %v4570_v34, %s4337_s8 }
 0x141   : > { %764 = vrot.lane.b32.xlu0 %v4554_v31, %s4343_s20  ;;  %529 = vrot.lane.b32.xlu1 %v4544_v0, %s4341_s17 }
 0x142   : > { %466 = vrot.lane.b32.xlu2 %v4580_v39, %s4339_s10 }
 0x149   : > { %829 = vrot.lane.b32.xlu0 %v4554_v31, %s4340_s11  ;;  %468 = vrot.lane.b32.xlu1 %v4570_v34, %s4339_s10 }
 0x14a   : > { %600 = vrot.lane.b32.xlu2 %v4580_v39, %s4338_s9 }
 0x151   : > { %894 = vrot.lane.b32.xlu0 %v4570_v34, %s4342_s19  ;;  %537 = vrot.lane.b32.xlu1 %v4570_v34, %s4341_s17 }
 0x152   : > { %819 = vrot.lane.b32.xlu2 %v4600_v48, %s4340_s11 }
 0x159   : > { %963 = vrot.lane.b32.xlu0 %v4554_v31, %s4344_s24  ;;  %675 = vrot.lane.b32.xlu1 %v4554_v31, %s4337_s8 }
 0x15a   : > { %888 = vrot.lane.b32.xlu2 %v4600_v48, %s4342_s19 }
 0x161   : > { %535 = vrot.lane.b32.xlu0 %v4580_v39, %s4341_s17  ;;  %760 = vrot.lane.b32.xlu1 %v4570_v34, %s4343_s20 }
 0x162   : > { %953 = vrot.lane.b32.xlu2 %v4600_v48, %s4344_s24 }
 0x169   : > { %754 = vrot.lane.b32.xlu0 %v4600_v48, %s4343_s20  ;;  %825 = vrot.lane.b32.xlu1 %v4570_v34, %s4340_s11 }
 0x16a   : > { %462 = vrot.lane.b32.xlu2 %v4600_v48, %s4339_s10 }
 0x171   : > { %608 = vrot.lane.b32.xlu0 %v4642_v58, %s4338_s9  ;;  %898 = vrot.lane.b32.xlu1 %v4554_v31, %s4342_s19 }
 0x172   : > { %531 = vrot.lane.b32.xlu2 %v4600_v48, %s4341_s17 }
 0x174   : > { %v4650_v60 = vpop.permute.xlu2 %464 }
 0x179   : > { %673 = vrot.lane.b32.xlu0 %v4652_v61, %s4337_s8  ;;  %959 = vrot.lane.b32.xlu1 %v4570_v34, %s4344_s24 }
 0x17a   : > { %470 = vrot.lane.b32.xlu2 %v4652_v61, %s4339_s10 }
 0x17c   : > { %v4664_v1 = vpop.permute.xlu2 %533 }
 0x181   : > { %1025 = vperm.xlu0 %4068, %v4479_v19   ;;  %669 = vrot.lane.b32.xlu1 %v4580_v39, %s4337_s8 }
 0x182   : > { %539 = vrot.lane.b32.xlu2 %v4652_v61, %s4341_s17 }
 0x184   : > { %v4675_v4 = vpop.permute.xlu2 %752 }
 0x189   : > { %821 = vrot.lane.b32.xlu0 %v4534_v26, %s4340_s11  ;;  %596 = vrot.lane.b32.xlu1 %v4600_v48, %s4338_s9 }
 0x18a   : > { %665 = vrot.lane.b32.xlu2 %v4600_v48, %s4337_s8 }
 0x18b   : > { %v4683_v19 = vpop.permute.xlu0 %667  ;;  %v4685_v5 = vpop.permute.xlu1 %598 }
 0x18c   : > { %v4687_v7 = vpop.permute.xlu2 %606 }
 0x191   : > { %892 = vrot.lane.b32.xlu0 %v4580_v39, %s4342_s19  ;;  %474 = vrot.lane.b32.xlu1 %v4642_v58, %s4339_s10  ;;  %s3787_s10 = scalar_lea.hbm %s7032_s3, %s3966_s7 }
 0x192   : > { %677 = vrot.lane.b32.xlu2 %v4642_v58, %s4337_s8 }
 0x193   : > { %v595_v43 = vpop.permute.xlu0 %594  ;;  %v4699_v44 = vpop.permute.xlu1 %817 }
 0x194   : > { %v615_v45 = vsel %vm610_vm15, %v595_v43, %v4685_v5  ;;  %v617_v9 = vsel %vm610_vm15, %v4687_v7, %v595_v43  ;;  %v4707_v46 = vpop.permute.xlu2 %671 }
 0x195   : > { %v632_v17 = vsel %vm4765_vm6, %v615_v45, 0.0 }
 0x199   : > { %543 = vrot.lane.b32.xlu1 %v4642_v58, %s4341_s17  ;;  %s3791_s17 = sshll.u32 %s3787_s10, 4  ;;  %s3792_s17 = int_to_ptr.hbm [resolvable:$true] %s3791_s17 }
 0x19a   : > { %762 = vrot.lane.b32.xlu2 %v4652_v61, %s4343_s20 }
 0x19b   : > { %v473_v10 = vpop.permute.xlu0 %472  ;;  %v4713_v11 = vpop.permute.xlu1 %886 }
 0x19c   : > { %7151 = vst [vmem:[#allocation16_spill] sm:$0xff] %v4713_v11  ;;  %v4715_v12 = vpop.permute.xlu2 %466 }
 0x1a1   : > { %604 = vrot.lane.b32.xlu1 %v4652_v61, %s4338_s9 }
 0x1a2   : > { %827 = vrot.lane.b32.xlu2 %v4652_v61, %s4340_s11 }
 0x1a3   : > { %v4721_v13 = vpop.permute.xlu0 %541  ;;  %v4723_v14 = vpop.permute.xlu1 %951 }
 0x1a4   : > { %v4725_v15 = vpop.permute.xlu2 %600 }
 0x1a9   : > { %663 = vrot.lane.b32.xlu1 %v4544_v0, %s4337_s8 }
 0x1aa   : > { %900 = vrot.lane.b32.xlu2 %v4642_v58, %s4342_s19 }
 0x1ab   : > { %v603_v20 = vpop.permute.xlu0 %602  ;;  %v461_v21 = vpop.permute.xlu1 %460 }
 0x1ac   : > { %v481_v22 = vsel %vm7056_vm0, %v461_v21, %v4650_v60  ;;  %v483_v23 = vsel %vm7056_vm0, %v473_v10, %v461_v21  ;;  %v4742_v24 = vpop.permute.xlu2 %819 }
 0x1ad   : > { %v498_v42 = vsel %vm4757_vm4, %v481_v22, 0.0  ;;  %v497_v55 = vsel %vm7045_vm5, %v483_v23, 0.0  ;;  %v631_v23 = vsel %vm7044_vm8, %v617_v9, 0.0  ;;  %v4812_v9 = vadd.s32 384, %v4690_v8 }
 0x1ae   : > { %v514_v25 = vmul.f32 %v4542_v27, %v498_v42  ;;  %v513_v37 = vmul.f32 %v4542_v27, %v497_v55  ;;  %v647_v16 = vmul.f32 %v4640_v57, %v631_v23 }
 0x1af   : > { %v186_v23 = vand.u32 15, %v4812_v9 }
 0x1b1   : > { %766 = vrot.lane.b32.xlu1 %v4642_v58, %s4343_s20  ;;  %vm4844_vm12 = vcmp.ge.s32.totalorder %v186_v23, 1  ;;  %vm4853_vm8 = vcmp.le.s32.totalorder %v186_v23, 14 }
 0x1b2   : > { %961 = vrot.lane.b32.xlu2 %v4652_v61, %s4344_s24 }
 0x1b3   : > { %v4785_v59 = vpop.permute.xlu0 %764  ;;  %v530_v43 = vpop.permute.xlu1 %529 }
 0x1b4   : > { %v550_v18 = vsel %vm7054_vm7, %v530_v43, %v4664_v1  ;;  %v552_v21 = vsel %vm7054_vm7, %v4721_v13, %v530_v43  ;;  %v4795_v22 = vpop.permute.xlu2 %888  ;;  %v648_v43 = vmul.f32 %v4640_v57, %v632_v17  ;;  %v185_v17 = vand.u32 15, %v177_v54 }
 0x1b5   : > { %7163 = vst [vmem:[#allocation18_spill] sm:$0xff] %v4795_v22  ;;  %v562_v45 = vsel %vm4749_vm2, %v552_v21, 0.0  ;;  %v579_v6 = vmul.f32 %v4628_v53, %v550_v18  ;;  %v181_v18 = vand.u32 255, %v177_v54 }
 0x1b6   : > { %v578_v48 = vmul.f32 %v4628_v53, %v562_v45  ;;  %vm4836_vm10 = vcmp.le.s32.totalorder %v185_v17, 14  ;;  %vm4840_vm11 = vcmp.ge.s32.totalorder %v185_v17, 1  ;;  %v613_v45 = vsel %vm610_vm15, %v4685_v5, %v603_v20 }
 0x1b7   : > { %v587_v2 = vadd.f32 %v579_v6, %v514_v25  ;;  %vm4832_vm9 = vcmp.ge.s32.totalorder %v181_v18, 16  ;;  %v682_v18 = vsel %vm679_vm14, %v4683_v19, %v4707_v46 }
 0x1b8   : > { %v586_v62 = vadd.f32 %v578_v48, %v513_v37  ;;  %vm7053_vm13 = vmand %vm4832_vm9, %vm4840_vm11 }
 0x1b9   : > { %v4814_v42 = vadd.f32 %v648_v43, %v587_v2  ;;  %831 = vrot.lane.b32.xlu1 %v4642_v58, %s4340_s11  ;;  %vm7052_vm5 = vmand %vm4832_vm9, %vm4836_vm10 }
 0x1ba   : > { %758 = vrot.lane.b32.xlu2 %v4580_v39, %s4343_s20  ;;  %v4820_v55 = vadd.f32 %v647_v16, %v586_v62  ;;  %v611_v16 = vsel %vm610_vm15, %v603_v20, %v4687_v7  ;;  %v633_v17 = vsel %vm7052_vm5, %v613_v45, 0.0  ;;  %vm7055_vm5 = vcmp.lt.s32.totalorder %v4690_v8, 127  ;;  %v7200_v62 = vld [vmem:[#allocation9_spill] sm:$0xff] }
 0x1bb   : > { %v4822_v21 = vpop.permute.xlu0 %829  ;;  %v469_v6 = vpop.permute.xlu1 %468  ;;  %v649_v22 = vmul.f32 %v4640_v57, %v633_v17 }
 0x1bc   : > { %v477_v37 = vsel %vm7056_vm0, %v469_v6, %v473_v10  ;;  %v479_v48 = vsel %vm7056_vm0, %v4650_v60, %v469_v6  ;;  %v4829_v2 = vpop.permute.xlu2 %953  ;;  %v634_v6 = vsel %vm4853_vm8, %v611_v16, 0.0 }
 0x1bd   : > { %7164 = vst [vmem:[#allocation19_spill] sm:$0xff] %v4829_v2  ;;  %v500_v43 = vsel %vm4844_vm12, %v477_v37, 0.0  ;;  %v499_v5 = vsel %vm7053_vm13, %v479_v48, 0.0 }
 0x1be   : > { %v516_v2 = vmul.f32 %v4542_v27, %v500_v43 }
 0x1c1   : > { %896 = vrot.lane.b32.xlu1 %v4652_v61, %s4342_s19 }
 0x1c2   : > { %890 = vrot.lane.b32.xlu2 %v4534_v26, %s4342_s19  ;;  %s4273_s19 = sshra.s32 %s3792_s17, 4  ;;  %s4274_s19 = int_to_ptr.hbm [resolvable:$true] %s4273_s19 }
 0x1c3   : > { %v4882_v7 = vpop.permute.xlu0 %894  ;;  %v538_v20 = vpop.permute.xlu1 %537  ;;  %p4280_p0 = scmp.lt.s32.totalorder %s4274_s19, %s7032_s3 }
 0x1c4   : > { %7175 = vst [vmem:[#allocation20_spill] sm:$0xff] %v4882_v7  ;;  %v546_v37 = vsel %vm7054_vm7, %v538_v20, %v4721_v13  ;;  %v548_v48 = vsel %vm7054_vm7, %v4664_v1, %v538_v20  ;;  %v4897_v23 = vpop.permute.xlu2 %462  ;;  %v515_v13 = vmul.f32 %v4542_v27, %v499_v5  ;;  %v698_v1 = vsel %vm4840_vm11, %v682_v18, 0.0 }
 0x1c5   : > { %v564_v51 = vsel %vm4832_vm9, %v548_v48, 0.0  ;;  %v581_v45 = vmul.f32 %v4628_v53, %v546_v37  ;;  %v482_v16 = vsel %vm7056_vm0, %v4897_v23, %v4715_v12  ;;  %v650_v20 = vmul.f32 %v4640_v57, %v634_v6 }
 0x1c6   : > { %v580_v56 = vmul.f32 %v4628_v53, %v564_v51  ;;  %v714_v37 = vmul.f32 %v4614_v50, %v698_v1  ;;  %v739_v5 = vmul.f32 %v4576_v35, %v4554_v31  ;;  %v182_v1 = vand.u32 255, %v4812_v9 }
 0x1c7   : > { %v589_v43 = vadd.f32 %v581_v45, %v516_v2  ;;  %vm7057_vm0 = vcmp.lt.s32.totalorder %v4690_v8, 112 }
 0x1c8   : > { %v588_v48 = vadd.f32 %v580_v56, %v515_v13  ;;  %v738_v56 = vmul.f32 %v4576_v35, %v4570_v34  ;;  %vm4964_vm13 = vcmp.lt.s32.totalorder %v182_v1, 240 }
 0x1c9   : > { %v658_v61 = vadd.f32 %v650_v20, %v589_v43  ;;  %965 = vrot.lane.b32.xlu1 %v4642_v58, %s4344_s24 }
 0x1ca   : > { %v657_v52 = vadd.f32 %v649_v22, %v588_v48  ;;  %957 = vrot.lane.b32.xlu2 %v4580_v39, %s4344_s24  ;;  %v775_v48 = vsel %vm7055_vm5, %v4785_v59, %v4675_v4 }
 0x1cb   : > { %v4918_v27 = vpop.permute.xlu0 %963  ;;  %v4920_v51 = vpop.permute.xlu1 %675 }
 0x1cc   : > { %v680_v53 = vsel %vm679_vm14, %v4707_v46, %v4920_v51  ;;  %v722_v57 = vadd.f32 %v714_v37, %v657_v52  ;;  %v502_v46 = vsel %vm4757_vm4, %v482_v16, 0.0  ;;  %v4937_v45 = vpop.permute.xlu2 %531 }
 0x1cd   : > { %v699_v2 = vsel %vm4844_vm12, %v680_v53, 0.0  ;;  %v518_v16 = vmul.f32 %v4598_v47, %v502_v46 }
 0x1ce   : > { %v715_v22 = vmul.f32 %v4614_v50, %v699_v2  ;;  %v746_v18 = vadd.f32 %v738_v56, %v722_v57  ;;  %v788_v57 = vsel %vm4853_vm8, %v775_v48, 0.0 }
 0x1d0   : > { %v723_v17 = vadd.f32 %v715_v22, %v658_v61 }
 0x1d1   : > { %756 = vrot.lane.b32.xlu1 %v4534_v26, %s4343_s20  ;;  %s4275_s20 = scalar_lea.hbm %s4274_s19, 32 }
 0x1d2   : > { %v747_v6 = vadd.f32 %v739_v5, %v723_v17  ;;  %v804_v17 = vmul.f32 %v4588_v40, %v788_v57  ;;  %p4276_p11 = scmp.ne.s32.totalorder %s4274_s19, %s4275_s20  ;;  %p4281_p1 = scmp.lt.s32.totalorder %s4279_s26, %s4275_s20 }
 0x1d3   : > { %v4940_v34 = vpop.permute.xlu0 %535  ;;  %v4942_v52 = vpop.permute.xlu1 %760 }
 0x1d4   : > { %v551_v31 = vsel %vm7054_vm7, %v4937_v45, %v4940_v34  ;;  %v769_v61 = vsel %vm7055_vm5, %v4942_v52, %v4785_v59  ;;  %vm7061_vm7 = vcmp.lt.s32.totalorder %v4690_v8, 113  ;;  %vm7060_vm5 = vmand %vm4964_vm13, %vm4844_vm12  ;;  %v471_v1 = vpop.permute.xlu2 %470  ;;  %p4277_p12 = pnand %p4276_p11, %p4421_p5  ;;  %p4282_p2 = por %p4281_p1, %p4280_p0 }
 0x1d5   : > { %v583_v13 = vmul.f32 %v4552_v30, %v551_v31  ;;  %v787_v43 = vsel %vm4836_vm10, %v769_v61, 0.0  ;;  %v840_v2 = vsel %vm7061_vm7, %v4822_v21, %v4699_v44  ;;  %v812_v61 = vadd.f32 %v804_v17, %v747_v6 }
 0x1d6   : > { %v803_v37 = vmul.f32 %v4588_v40, %v787_v43  ;;  %v857_v31 = vsel %vm7060_vm5, %v840_v2, 0.0  ;;  %vm7180_vm5 = vmand %vm4749_vm2, %vm4745_vm1  ;;  %p4278_p13 = pneg %p4277_p12 }
 0x1d7   : > { %v591_v20 = vadd.f32 %v583_v13, %v518_v16 }
 0x1d8   : > { %v811_v22 = vadd.f32 %v803_v37, %v746_v18  ;;  %p4283_p3 = pnand %p4282_p2, %p4278_p13 }
 0x1d9   : > { %823 = vrot.lane.b32.xlu1 %v4580_v39, %s4340_s11 }
 0x1db   : > { %v4969_v9 = vpop.permute.xlu1 %825 }
 0x1dc   : > { %v834_v56 = vsel %vm7061_vm7, %v4969_v9, %v4822_v21  ;;  %v873_v21 = vmul.f32 %v4596_v41, %v857_v31  ;;  %v540_v2 = vpop.permute.xlu2 %539  ;;  %vm7181_vm7 = vcmp.lt.s32.totalorder %v4690_v8, 16 }
 0x1dd   : > { %v856_v59 = vsel %vm4840_vm11, %v834_v56, 0.0 }
 0x1de   : > { %v872_v5 = vmul.f32 %v4596_v41, %v856_v59  ;;  %v881_v37 = vadd.f32 %v873_v21, %v812_v61 }
 0x1e0   : > { %v880_v46 = vadd.f32 %v872_v5, %v811_v22 }
 0x1e1   : > { %955 = vrot.lane.b32.xlu1 %v4534_v26, %s4344_s24 }
 0x1e3   : > { %v899_v16 = vpop.permute.xlu1 %898 }
 0x1e4   : > { %v903_v18 = vsel %vm7057_vm0, %v4882_v7, %v899_v16  ;;  %v909_v13 = vsel %vm7057_vm0, %v899_v16, %v4713_v11  ;;  %v5016_v5 = vpop.permute.xlu2 %665  ;;  %vm7179_vm0 = vcmp.lt.s32.totalorder %v4690_v8, 17 }
 0x1e5   : > { %v922_v43 = vsel %vm4964_vm13, %v909_v13, 0.0  ;;  %v937_v48 = vmul.f32 %v4608_v49, %v903_v18  ;;  %v5030_v18 = vpop.permute.xlu0 %754 }
 0x1e6   : > { %v938_v6 = vmul.f32 %v4608_v49, %v922_v43 }
 0x1e7   : > { %v5008_v56 = vadd.f32 %v937_v48, %v880_v46 }
 0x1e8   : > { %v5010_v57 = vadd.f32 %v938_v6, %v881_v37 }
 0x1eb   : > { %v5012_v59 = vpop.permute.xlu1 %959 }
 0x1ec   : > { %v5038_v49 = vpop.permute.xlu2 %677 }
 0x1f3   : > { %v5014_v22 = vpop.permute.xlu1 %669 }
 0x1f4   : > { %v685_v17 = vsel %vm679_vm14, %v5016_v5, %v5014_v22 }
 0x1f5   : > { %v701_v61 = vsel %vm4757_vm4, %v685_v17, 0.0  ;;  %v609_v17 = vpop.permute.xlu0 %608 }
 0x1f6   : > { %v717_v13 = vmul.f32 %v4656_v63, %v701_v61 }
 0x1fb   : > { %v597_v31 = vpop.permute.xlu1 %596 }
 0x1fc   : > { %v616_v46 = vsel %vm610_vm15, %v597_v31, %v4725_v15 }
 0x1fd   : > { %v636_v16 = vsel %vm4765_vm6, %v616_v46, 0.0  ;;  %v618_v46 = vsel %vm610_vm15, %v609_v17, %v597_v31 }
 0x1fe   : > { %v652_v21 = vmul.f32 %v4562_v32, %v636_v16 }
 0x200   : > { %v660_v43 = vadd.f32 %v652_v21, %v591_v20 }
 0x202   : > { %v5033_v48 = vadd.f32 %v717_v13, %v660_v43  ;;  %v5059_v43 = vpop.permute.xlu2 %762 }
 0x203   : > { %v475_v37 = vpop.permute.xlu1 %474 }
 0x204   : > { %7178 = vst [vmem:[#allocation21_spill] sm:$0xff] %v5033_v48  ;;  %v484_v6 = vsel %vm7179_vm0, %v475_v37, %v4897_v23  ;;  %vm7182_vm0 = vmand %vm4749_vm2, %vm4753_vm3 }
 0x205   : > { %v501_v61 = vsel %vm7180_vm5, %v484_v6, 0.0  ;;  %v635_v23 = vsel %vm7182_vm0, %v618_v46, 0.0  ;;  %vm7184_vm5 = vcmp.lt.s32.totalorder %v4690_v8, 17 }
 0x206   : > { %v517_v21 = vmul.f32 %v4598_v47, %v501_v61  ;;  %v651_v6 = vmul.f32 %v4562_v32, %v635_v23  ;;  %vm7186_vm0 = vmmov %vm7184_vm5 }
 0x20a   : > { %v5064_v48 = vpop.permute.xlu2 %827 }
 0x20b   : > { %v544_v20 = vpop.permute.xlu1 %543 }
 0x20c   : > { %v553_v16 = vsel %vm7181_vm7, %v544_v20, %v4937_v45 }
 0x20d   : > { %v566_v31 = vsel %vm4749_vm2, %v553_v16, 0.0  ;;  %vm7183_vm2 = vmmov %vm7181_vm7 }
 0x20e   : > { %v582_v13 = vmul.f32 %v4552_v30, %v566_v31  ;;  %v736_v31 = vmul.f32 %v4576_v35, %v4544_v0  ;;  %v478_v0 = vsel %vm7184_vm5, %v471_v1, %v475_v37  ;;  %vm7185_vm7 = vmmov %vm7183_vm2  ;;  %vm7189_vm5 = vcmp.lt.s32.totalorder %v4690_v8, 127 }
 0x20f   : > { %v504_v37 = vsel %vm4844_vm12, %v478_v0, 0.0 }
 0x210   : > { %v590_v11 = vadd.f32 %v582_v13, %v517_v21 }
 0x212   : > { %v5062_v7 = vadd.f32 %v651_v6, %v590_v11  ;;  %v901_v6 = vpop.permute.xlu2 %900 }
 0x213   : > { %v605_v45 = vpop.permute.xlu1 %604 }
 0x21b   : > { %v664_v41 = vpop.permute.xlu1 %663 }
 0x21c   : > { %v684_v29 = vsel %vm679_vm14, %v664_v41, %v4683_v19  ;;  %v686_v46 = vsel %vm679_vm14, %v4920_v51, %v664_v41  ;;  %v737_v19 = vmul.f32 %v4576_v35, %v4534_v26  ;;  %v612_v26 = vsel %vm610_vm15, %v605_v45, %v609_v17 }
 0x21d   : > { %v696_v61 = vsel %vm4745_vm1, %v686_v46, 0.0  ;;  %v697_v16 = vsel %vm4757_vm4, %v684_v29, 0.0  ;;  %v547_v35 = vsel %vm7185_vm7, %v540_v2, %v544_v20  ;;  %v674_v46 = vpop.permute.xlu0 %673  ;;  %v638_v17 = vsel %vm4853_vm8, %v612_v26, 0.0  ;;  %vm7190_vm7 = vmmov %vm7189_vm5 }
 0x21e   : > { %v712_v11 = vmul.f32 %v4614_v50, %v696_v61  ;;  %v713_v23 = vmul.f32 %v4614_v50, %v697_v16  ;;  %v549_v50 = vsel %vm7183_vm2, %v4940_v34, %v540_v2  ;;  %v585_v2 = vmul.f32 %v4552_v30, %v547_v35  ;;  %vm7187_vm2 = vmand %vm4832_vm9, %vm4840_vm11 }
 0x21f   : > { %v568_v34 = vsel %vm4832_vm9, %v549_v50, 0.0  ;;  %v681_v20 = vsel %vm679_vm14, %v674_v46, %v5038_v49  ;;  %v654_v61 = vmul.f32 %v4562_v32, %v638_v17  ;;  %v683_v25 = vsel %vm679_vm14, %v5014_v22, %v674_v46 }
 0x220   : > { %v720_v21 = vadd.f32 %v712_v11, %v4820_v55  ;;  %v721_v41 = vadd.f32 %v713_v23, %v4814_v42  ;;  %v480_v42 = vsel %vm7186_vm0, %v4715_v12, %v471_v1  ;;  %v614_v55 = vsel %vm610_vm15, %v4725_v15, %v605_v45  ;;  %vm7188_vm15 = vmand %vm4832_vm9, %vm4836_vm10 }
 0x221   : > { %v503_v12 = vsel %vm7187_vm2, %v480_v42, 0.0  ;;  %v637_v15 = vsel %vm7188_vm15, %v614_v55, 0.0  ;;  %v584_v1 = vmul.f32 %v4552_v30, %v568_v34  ;;  %v520_v45 = vmul.f32 %v4598_v47, %v504_v37  ;;  %vm979_vm2 = vmand %vm4964_vm13, %vm4853_vm8 }
 0x222   : > { %v5084_v51 = vadd.f32 %v737_v19, %v721_v41  ;;  %v5086_v13 = vadd.f32 %v736_v31, %v720_v21  ;;  %v519_v11 = vmul.f32 %v4598_v47, %v503_v12  ;;  %v653_v31 = vmul.f32 %v4562_v32, %v637_v15  ;;  %v5133_v19 = vpop.permute.xlu2 %961 }
 0x223   : > { %v767_v29 = vpop.permute.xlu1 %766  ;;  %v593_v23 = vadd.f32 %v585_v2, %v520_v45  ;;  %v703_v30 = vsel %vm4844_vm12, %v681_v20, 0.0  ;;  %vm967_vm9 = vcmp.lt.s32.totalorder %v4690_v8, 111  ;;  %v702_v50 = vsel %vm4840_vm11, %v683_v25, 0.0  ;;  %v7196_v25 = vld [vmem:[#allocation18_spill] sm:$0xff] }
 0x224   : > { %v592_v21 = vadd.f32 %v584_v1, %v519_v11  ;;  %v776_v47 = vsel %vm7189_vm5, %v767_v29, %v5030_v18  ;;  %v719_v22 = vmul.f32 %v4656_v63, %v703_v30  ;;  %v770_v32 = vsel %vm7190_vm7, %v5059_v43, %v767_v29  ;;  %vm7193_vm5 = vmand %vm4964_vm13, %vm4844_vm12  ;;  %v7194_v1 = vld [vmem:[#allocation10_spill] sm:$0xff]  ;;  %v7198_v30 = vld [vmem:[#allocation12_spill] sm:$0xff] }
 0x225   : > { %v662_v41 = vadd.f32 %v654_v61, %v593_v23  ;;  %vm7191_vm0 = vcmp.lt.s32.totalorder %v4690_v8, 113  ;;  %v974_v35 = vsel %vm967_vm9, %v4918_v27, %v4723_v14  ;;  %v792_v42 = vsel %vm4853_vm8, %v776_v47, 0.0  ;;  %v5175_v12 = vpop.permute.xlu0 %1025  ;;  %v7195_v61 = vld [vmem:[#allocation13_spill] sm:$0xff] }
 0x226   : > { %v661_v0 = vadd.f32 %v653_v31, %v592_v21  ;;  %v968_v29 = vsel %vm967_vm9, %v5012_v59, %v4918_v27  ;;  %v718_v55 = vmul.f32 %v4656_v63, %v702_v50  ;;  %vm7192_vm15 = vmmov %vm7191_vm0  ;;  %v791_v37 = vsel %vm4836_vm10, %v770_v32, 0.0 }
 0x227   : > { %v727_v34 = vadd.f32 %v719_v22, %v662_v41  ;;  %v743_v15 = vmul.f32 %v4673_v3, %v4642_v58  ;;  %v808_v20 = vmul.f32 %v7194_v1, %v792_v42  ;;  %v991_v45 = vsel %vm979_vm2, %v974_v35, 0.0  ;;  %vm7209_vm8 = vmmov %vm7191_vm0 }
 0x228   : > { %v726_v27 = vadd.f32 %v718_v55, %v661_v0  ;;  %v990_v10 = vsel %vm4836_vm10, %v968_v29, 0.0  ;;  %vm7197_vm12 = vcmp.lt.s32.totalorder %v4690_v8, 112  ;;  %v807_v31 = vmul.f32 %v7194_v1, %v791_v37 }
 0x229   : > { %v910_v58 = vsel %vm7197_vm12, %v901_v6, %v7196_v25  ;;  %v751_v23 = vadd.f32 %v743_v15, %v727_v34  ;;  %vm7199_vm7 = vmmov %vm7197_vm12  ;;  %v1007_v32 = vmul.f32 %v7200_v62, %v991_v45  ;;  %v687_v42 = vsel %vm679_vm14, %v5038_v49, %v5016_v5  ;;  %v7201_v34 = vld [vmem:[#allocation14_spill] sm:$0xff] }
 0x22a   : > { %v759_v41 = vpop.permute.xlu2 %758  ;;  %v926_v35 = vsel %vm4964_vm13, %v910_v58, 0.0 }
 0x22b   : > { %v832_v16 = vpop.permute.xlu1 %831  ;;  %v816_v22 = vadd.f32 %v808_v20, %v751_v23  ;;  %v942_v15 = vmul.f32 %v7201_v34, %v926_v35 }
 0x22c   : > { %v841_v26 = vsel %vm7191_vm0, %v832_v16, %v4742_v24  ;;  %v835_v46 = vsel %vm7192_vm15, %v5064_v48, %v832_v16  ;;  %v742_v16 = vmul.f32 %v4673_v3, %v7195_v61  ;;  %v700_v61 = vsel %vm4745_vm1, %v687_v42, 0.0  ;;  %vm7214_vm15 = vmmov %vm7209_vm8 }
 0x22d   : > { %v861_v17 = vsel %vm7193_vm5, %v841_v26, 0.0  ;;  %v860_v11 = vsel %vm4840_vm11, %v835_v46, 0.0  ;;  %v1006_v26 = vmul.f32 %v7200_v62, %v990_v10  ;;  %v7202_v46 = vld [vmem:[#allocation17_spill] sm:$0xff]  ;;  %v7203_v10 = vld [vmem:[#allocation19_spill] sm:$0xff]  ;;  %v716_v60 = vmul.f32 %v4656_v63, %v700_v61  ;;  %vm7217_vm5 = vmmov %vm7199_vm7 }
 0x22e   : > { %v877_v21 = vmul.f32 %v7198_v30, %v861_v17  ;;  %v750_v50 = vadd.f32 %v742_v16, %v726_v27  ;;  %v876_v0 = vmul.f32 %v7198_v30, %v860_v11  ;;  %v180_v37 = vand.u32 255, %v7202_v46  ;;  %v822_v11 = vpop.permute.xlu0 %821  ;;  %vm7218_vm12 = vmmov %vm7217_vm5 }
 0x22f   : > { %v1015_v27 = vadd.f32 %v1007_v32, %v5010_v57  ;;  %v1014_v5 = vadd.f32 %v1006_v26, %v5008_v56  ;;  %v836_v35 = vsel %vm7209_vm8, %v822_v11, %v4969_v9 }
 0x230   : > { %v815_v29 = vadd.f32 %v807_v31, %v750_v50  ;;  %v885_v55 = vadd.f32 %v877_v21, %v816_v22  ;;  %v7204_v31 = vld [vmem:[#allocation15_spill] sm:$0xff]  ;;  %vm5230_vm14 = vcmp.lt.s32.totalorder %v180_v37, 240 }
 0x231   : > { %vm843_vm13 = vmand %vm5230_vm14, %vm4757_vm4  ;;  %vm7226_vm4 = vcmask 64512  }
 0x232   : > { %v884_v20 = vadd.f32 %v876_v0, %v815_v29  ;;  %v950_v23 = vadd.f32 %v942_v15, %v885_v55  ;;  %v891_v22 = vpop.permute.xlu2 %890  ;;  %v7208_v0 = vld [vmem:[#allocation11_spill] sm:$0xff]  ;;  %v724_v29 = vadd.f32 %v716_v60, %v5062_v7  ;;  %v855_v7 = vsel %vm843_vm13, %v836_v35, 0.0 }
 0x233   : > { %v5173_v2 = vpop.permute.xlu1 %896  ;;  %v1030_v32 = vadd.f32 %v7208_v0, %v1014_v5  ;;  %v1031_v26 = vadd.f32 %v7208_v0, %v1015_v27 }
 0x234   : > { %v904_v47 = vsel %vm7199_vm7, %v5173_v2, %v901_v6  ;;  %vm7220_vm7 = vmmov %vm7217_vm5 }
 0x235   : > { %v941_v6 = vmul.f32 %v7201_v34, %v904_v47 }
 0x237   : > { %v949_v58 = vadd.f32 %v941_v6, %v884_v20 }
 0x23a   : > { %v958_v60 = vpop.permute.xlu2 %957 }
 0x23b   : > { %v966_v17 = vpop.permute.xlu1 %965  ;;  %v973_v28 = vsel %vm967_vm9, %v7203_v10, %v958_v60 }
 0x23c   : > { %v969_v45 = vsel %vm967_vm9, %v5133_v19, %v966_v17  ;;  %v975_v49 = vsel %vm967_vm9, %v966_v17, %v7203_v10  ;;  %v992_v10 = vsel %vm4753_vm3, %v973_v28, 0.0 }
 0x23d   : > { %v994_v16 = vsel %vm4836_vm10, %v969_v45, 0.0  ;;  %v995_v57 = vsel %vm979_vm2, %v975_v49, 0.0  ;;  %vm7207_vm10 = vcmp.lt.s32.totalorder %v4690_v8, 127  ;;  %v741_v49 = vmul.f32 %v4673_v3, %v4580_v39 }
 0x23e   : > { %v1010_v21 = vmul.f32 %v7204_v31, %v994_v16  ;;  %v1011_v47 = vmul.f32 %v7204_v31, %v995_v57  ;;  %v774_v54 = vsel %vm7207_vm10, %v5030_v18, %v759_v41  ;;  %vm7210_vm11 = vmmov %vm7207_vm10  ;;  %v838_v16 = vsel %vm7214_vm15, %v4699_v44, %v822_v11  ;;  %v7215_v57 = vld [vmem:[#allocation6_spill] sm:$0xff] }
 0x23f   : > { %v772_v18 = vsel %vm7210_vm11, %v759_v41, %v5059_v43  ;;  %v789_v55 = vsel %vm4753_vm3, %v774_v54, 0.0  ;;  %vm7211_vm0 = vmmov %vm7207_vm10  ;;  %v7213_v41 = vld [vmem:[#allocation7_spill] sm:$0xff]  ;;  %v854_v44 = vsel %vm4745_vm1, %v838_v16, 0.0 }
 0x240   : > { %v1018_v53 = vadd.f32 %v1010_v21, %v949_v58  ;;  %v1019_v50 = vadd.f32 %v1011_v47, %v950_v23  ;;  %vm7212_vm2 = vmmov %vm7211_vm0  ;;  %v740_v27 = vmul.f32 %v4673_v3, %v7213_v41  ;;  %v805_v61 = vmul.f32 %v7194_v1, %v789_v55  ;;  %v893_v23 = vpop.permute.xlu0 %892  ;;  %v7222_v55 = vld [vmem:[#allocation16_spill] sm:$0xff] }
 0x241   : > { %v871_v58 = vmul.f32 %v7215_v57, %v855_v7  ;;  %v906_v39 = vsel %vm7217_vm5, %v893_v23, %v5173_v2  ;;  %v908_v11 = vsel %vm7218_vm12, %v7196_v25, %v893_v23  ;;  %vm7221_vm10 = vmmov %vm7209_vm8  ;;  %v870_v36 = vmul.f32 %v7215_v57, %v854_v44 }
 0x242   : > { %v1034_v63 = vadd.f32 %v5175_v12, %v1018_v53  ;;  %v1035_v42 = vadd.f32 %v5175_v12, %v1019_v50  ;;  %v748_v5 = vadd.f32 %v740_v27, %v724_v29  ;;  %v7216_v53 = vld [vmem:[#allocation21_spill] sm:$0xff]  ;;  %vm977_vm11 = vmand %vm5230_vm14, %vm4765_vm6  ;;  %v939_v29 = vmul.f32 %v7201_v34, %v908_v11 }
 0x243   : > { %v757_v6 = vpop.permute.xlu1 %756  ;;  %v749_v50 = vadd.f32 %v741_v49, %v7216_v53  ;;  %v4345_v11 = vmov 4   ;;  %vm7233_vm15 = vmmov %vm7226_vm4 }
 0x244   : > { %v771_v37 = vsel %vm7211_vm0, %v757_v6, %v4942_v52  ;;  %v773_v9 = vsel %vm7212_vm2, %v4675_v4, %v757_v6  ;;  %v5261_v17 = vmul.f32 %v1034_v63, %v1030_v32  ;;  %v5263_v43 = vmul.f32 %v1035_v42, %v1031_v26  ;;  %v7219_v26 = vld [vmem:[#allocation20_spill] sm:$0xff]  ;;  %4069 = vset.pattern.permute.xlu2 %v4345_v11 }
 0x245   : > { %v790_v52 = vsel %vm4765_vm6, %v772_v18, 0.0  ;;  %v786_v15 = vsel %vm4765_vm6, %v771_v37, 0.0  ;;  %v785_v4 = vsel %vm4753_vm3, %v773_v9, 0.0  ;;  %v924_v18 = vsel %vm5230_vm14, %v906_v39, 0.0  ;;  %vm7227_vm6 = vmmov %vm7226_vm4 }
 0x246   : > { %v802_v20 = vmul.f32 %v4588_v40, %v786_v15  ;;  %v1076_v45 = vadd.f32 %v5263_v43, %v5261_v17  ;;  %v806_v21 = vmul.f32 %v7194_v1, %v790_v52  ;;  %v801_v54 = vmul.f32 %v4588_v40, %v785_v4 }
 0x247   : > { %v813_v1 = vadd.f32 %v805_v61, %v748_v5  ;;  %v905_v40 = vsel %vm7220_vm7, %v891_v22, %v7219_v26 }
 0x248   : > { %v810_v47 = vadd.f32 %v802_v20, %v5084_v51  ;;  %1077 = vadd.xlane.f32.xlu0 %v1076_v45  ;;  %v814_v32 = vadd.f32 %v806_v21, %v749_v50  ;;  %v809_v25 = vadd.f32 %v801_v54, %v5086_v13  ;;  %v920_v37 = vsel %vm5230_vm14, %v905_v40, 0.0  ;;  %vm7229_vm14 = vmmov %vm7226_vm4 }
 0x24a   : > { %v879_v3 = vadd.f32 %v871_v58, %v810_v47  ;;  %v878_v27 = vadd.f32 %v870_v36, %v809_v25 }
 0x24b   : > { %v824_v51 = vpop.permute.xlu1 %823 }
 0x24c   : > { %v837_v2 = vsel %vm7221_vm10, %v824_v51, %v5064_v48  ;;  %v839_v35 = vsel %vm7209_vm8, %v4742_v24, %v824_v51  ;;  %v971_v24 = vsel %vm967_vm9, %v958_v60, %v5133_v19  ;;  %v940_v19 = vmul.f32 %v7201_v34, %v924_v18  ;;  %vm7237_vm10 = vmmov %vm7226_vm4 }
 0x24d   : > { %v858_v63 = vsel %vm4745_vm1, %v839_v35, 0.0  ;;  %v859_v42 = vsel %vm843_vm13, %v837_v2, 0.0  ;;  %vm7223_vm1 = vmmov %vm7217_vm5  ;;  %v1008_v34 = vmul.f32 %v7204_v31, %v992_v10  ;;  %v4346_v2 = vmov 5  }
 0x24e   : > { %v874_v48 = vmul.f32 %v7198_v30, %v858_v63  ;;  %v875_v13 = vmul.f32 %v7198_v30, %v859_v42  ;;  %v907_v6 = vsel %vm7223_vm1, %v7222_v55, %v891_v22  ;;  %v993_v30 = vsel %vm977_vm11, %v971_v24, 0.0  ;;  %v7224_v22 = vld [vmem:[#allocation8_spill] sm:$0xff]  ;;  %vm7230_vm13 = vmmov %vm7226_vm4  ;;  %v1164_v55 = vld [vmem:[%s7030_s1 + $0x10] sm:$0xf] }
 0x24f   : > { %v935_v15 = vmul.f32 %v7224_v22, %v907_v6  ;;  %v936_v4 = vmul.f32 %v7224_v22, %v920_v37  ;;  %v1009_v45 = vmul.f32 %v7204_v31, %v993_v30  ;;  %vm7234_vm5 = vmmov %vm7226_vm4 }
 0x250   : > { %v882_v9 = vadd.f32 %v874_v48, %v813_v1  ;;  %v883_v41 = vadd.f32 %v875_v13, %v814_v32  ;;  %v5372_v1 = vld [vmem:[%s7031_s2] sm:$0xff]  ;;  %vm7238_vm8 = vmmov %vm7226_vm4 }
 0x251   : > { %v943_v61 = vadd.f32 %v935_v15, %v878_v27  ;;  %v944_v16 = vadd.f32 %v936_v4, %v879_v3  ;;  %1090 = vperm.xlu2 %4069, %v5372_v1  }
 0x252   : > { %v947_v7 = vadd.f32 %v939_v29, %v882_v9  ;;  %v948_v52 = vadd.f32 %v940_v19, %v883_v41  ;;  %v4347_v29 = vmov 6  }
 0x253   : > { %v956_v20 = vpop.permute.xlu1 %955 }
 0x254   : > { %v970_v49 = vsel %vm967_vm9, %v956_v20, %v5012_v59  ;;  %v972_v5 = vsel %vm967_vm9, %v4723_v14, %v956_v20  ;;  %v1016_v59 = vadd.f32 %v1008_v34, %v947_v7  ;;  %v1017_v21 = vadd.f32 %v1009_v45, %v948_v52 }
 0x255   : > { %v988_v57 = vsel %vm4753_vm3, %v972_v5, 0.0  ;;  %v989_v58 = vsel %vm977_vm11, %v970_v49, 0.0  ;;  %vm7225_vm3 = vcmask 1043456   ;;  %v4349_v20 = vmov 8  }
 0x256   : > { %v1004_v31 = vmul.f32 %v7200_v62, %v988_v57  ;;  %v1005_v23 = vmul.f32 %v7200_v62, %v989_v58  ;;  %v1032_v33 = vadd.f32 %v5175_v12, %v1016_v59  ;;  %v1033_v56 = vadd.f32 %v5175_v12, %v1017_v21  ;;  %v1084_v12 = vld [vmem:[%s7030_s1 + $0x20] sm:$0xf]  ;;  %vm7228_vm9 = vmmov %vm7225_vm3  ;;  %v4253_v59 = vld [vmem:[%s4444_s30 + $0x18] sm:$0xff] }
 0x257   : > { %vm7231_vm0 = vmmov %vm7225_vm3 }
 0x258   : > { %v1012_v47 = vadd.f32 %v1004_v31, %v943_v61  ;;  %v1013_v54 = vadd.f32 %v1005_v23, %v944_v16  ;;  %vm7232_vm2 = vmmov %vm7231_vm0  ;;  %v4252_v31 = vld [vmem:[%s4444_s30 + $0x10] sm:$0xff] }
 0x259   : > { %4070 = vset.pattern.permute.xlu2 %v4346_v2  ;;  %vm7235_vm12 = vmmov %vm7231_vm0  ;;  %v4255_v2 = vld [vmem:[%s4444_s30 + $0x8] sm:$0xff] }
 0x25a   : > { %v1028_v14 = vadd.f32 %v7208_v0, %v1012_v47  ;;  %v1029_v53 = vadd.f32 %v7208_v0, %v1013_v54  ;;  %1170 = vperm.xlu2 %4070, %v5372_v1   ;;  %vm7236_vm7 = vmmov %vm7231_vm0 }
 0x25c   : > { %v1036_v50 = vmul.f32 %v1032_v33, %v1028_v14  ;;  %v1037_v38 = vmul.f32 %v1033_v56, %v1029_v53 }
 0x25e   : > { %v1052_v39 = vadd.f32 %v1037_v38, %v1036_v50 }
 0x260   : > { %1055 = vadd.xlane.f32.xlu1 %v1052_v39 }
 0x262   : > { %4071 = vset.pattern.permute.xlu2 %v4347_v29 }
 0x263   : > { %1241 = vperm.xlu2 %4071, %v5372_v1  }
 0x2ab   : > { %v1091_v40 = vpop.permute.xlu2 %1090 }
 0x2b4   : > { %v1171_v34 = vpop.permute.xlu2 %1170 }
 0x2bb   : > { %v1078_v3 = vpop.xlane.xlu0 %1077 }
 0x2bc   : > { %v1079_v44 = vmul.f32 0.00390625, %v1078_v3 }
 0x2bd   : > { %v1242_v45 = vpop.permute.xlu2 %1241 }
 0x2be   : > { %v1087_v62 = vpack.c.bf16 %v1079_v44, %v1079_v44 }
 0x2c0   : > { %v1103_v0 = vsel %vm7225_vm3, %v1087_v62, 0 }
 0x2c1   : > { %1141 = vmatpush.bf16.msrb.mxu2 %v1103_v0  ;;  %1154 = vmatpush.bf16.msrb.mxu3 %v1103_v0 }
 0x2c4   : > { %3868 = vmatmul.msk.bf16.vlgmr.msrb.gmra.mxu2 %vm7226_vm4, %v1084_v12  ;;  %3869 = vmatmul.msk.bf16.vlgmr.msrb.gmra.mxu3 %vm7227_vm6, %v1084_v12 }
 0x2d3   : > { %v1056_v60 = vpop.xlane.xlu1 %1055 }
 0x2d4   : > { %v1057_v51 = vmul.f32 0.00390625, %v1056_v60 }
 0x2d6   : > { %v1085_v32 = vpack.c.bf16 %v1057_v51, %v1057_v51 }
 0x2d8   : > { %v1097_v26 = vsel %vm7228_vm9, %v1085_v32, 0 }
 0x2d9   : > { %1115 = vmatpush.bf16.msrb.mxu0 %v1097_v26  ;;  %1128 = vmatpush.bf16.msrb.mxu1 %v1097_v26  ;;  %v4254_v26 = vld [vmem:[%s4444_s30] sm:$0xff]  ;;  %s161_s30 = sand.u32 1, %s4313_s13  }
 0x2da   : > { %s3855_s5 = sshll.u32 %s161_s30, 5  ;;  %s3776_s16 = scalar_lea.sflag [#allocation3], %s161_s30 }
 0x2db   : > { %s6984_s6 = scalar_lea.vmem [#allocation2], %s3855_s5 }
 0x2dc   : > { %3866 = vmatmul.msk.bf16.vlgmr.msrb.gmra.mxu0 %vm7229_vm14, %v1084_v12  ;;  %3867 = vmatmul.msk.bf16.vlgmr.msrb.gmra.mxu1 %vm7230_vm13, %v1084_v12  ;;  %s3789_s11 = sshll.u32 %s6984_s6, 4  ;;  %s3790_s11 = int_to_ptr.vmem [resolvable:$true] %s3789_s11 }
 0x347   : > { %v1143_v35 = vpop.f32.mrf.mxu2  ;;  %v1156_v18 = vpop.f32.mrf.mxu3 }
 0x348   : > { %v1144_v25 = vadd.f32 %v1143_v35, %v1091_v40  ;;  %v1157_v63 = vadd.f32 %v1156_v18, %v1091_v40 }
 0x34a   : > { %v1162_v42 = vmul.f32 %v1144_v25, %v5261_v17  ;;  %v1163_v24 = vmul.f32 %v1157_v63, %v5263_v43  ;;  %v4348_v17 = vmov 7  }
 0x34b   : > { %4072 = vset.pattern.permute.xlu2 %v4348_v17 }
 0x34c   : > { %v1167_v28 = vpack.c.bf16 %v1162_v42, %v1162_v42  ;;  %v1168_v48 = vpack.c.bf16 %v1163_v24, %v1163_v24  ;;  %1365 = vperm.xlu2 %4072, %v5372_v1   ;;  %v7239_v24 = vld [vmem:[#allocation5_spill] sm:$0xff] }
 0x34e   : > { %v1183_v13 = vsel %vm7231_vm0, %v1167_v28, 0  ;;  %v1186_v36 = vsel %vm7232_vm2, %v1168_v48, 0 }
 0x34f   : > { %1221 = vmatpush.bf16.msra.mxu2 %v1183_v13  ;;  %1234 = vmatpush.bf16.msra.mxu3 %v1186_v36  ;;  %v1145_v6 = vpop.f32.mrf.mxu2  ;;  %v1158_v37 = vpop.f32.mrf.mxu3 }
 0x352   : > { %3872 = vmatmul.msk.bf16.vlgmr.msra.gmra.mxu2 %vm7233_vm15, %v1164_v55  ;;  %3873 = vmatmul.msk.bf16.vlgmr.msra.gmra.mxu3 %vm7234_vm5, %v1164_v55  ;;  %vm7240_vm15 = vmmov %vm7231_vm0 }
 0x354   : > { %4073 = vset.pattern.permute.xlu2 %v4349_v20 }
 0x355   : > { %1373 = vperm.xlu2 %4073, %v5372_v1  }
 0x359   : > { %v1117_v43 = vpop.f32.mrf.mxu0  ;;  %v1130_v19 = vpop.f32.mrf.mxu1 }
 0x35a   : > { %v1118_v9 = vadd.f32 %v1117_v43, %v1091_v40  ;;  %v1131_v41 = vadd.f32 %v1130_v19, %v1091_v40 }
 0x35c   : > { %v1160_v10 = vmul.f32 %v1118_v9, %v1036_v50  ;;  %v1161_v30 = vmul.f32 %v1131_v41, %v1037_v38 }
 0x35e   : > { %v1165_v27 = vpack.c.bf16 %v1160_v10, %v1160_v10  ;;  %v1166_v7 = vpack.c.bf16 %v1161_v30, %v1161_v30 }
 0x360   : > { %v1177_v52 = vsel %vm7235_vm12, %v1165_v27, 0  ;;  %v1180_v22 = vsel %vm7236_vm7, %v1166_v7, 0 }
 0x361   : > { %v1119_v15 = vpop.f32.mrf.mxu0  ;;  %v1132_v4 = vpop.f32.mrf.mxu1  ;;  %1195 = vmatpush.bf16.msra.mxu0 %v1177_v52  ;;  %1208 = vmatpush.bf16.msra.mxu1 %v1180_v22 }
 0x364   : > { %3870 = vmatmul.msk.bf16.vlgmr.msra.gmra.mxu0 %vm7237_vm10, %v1164_v55  ;;  %3871 = vmatmul.msk.bf16.vlgmr.msra.gmra.mxu1 %vm7238_vm8, %v1164_v55  ;;  %vm7241_vm10 = vmmov %vm7238_vm8 }
 0x3d5   : > { %v1223_v49 = vpop.f32.mrf.mxu2  ;;  %v1236_v5 = vpop.f32.mrf.mxu3 }
 0x3d6   : > { %v1224_v61 = vadd.f32 %v1223_v49, %v1171_v34  ;;  %v1237_v16 = vadd.f32 %v1236_v5, %v1171_v34 }
 0x3d8   : > { %v1246_v57 = vmul.f32 %v1242_v45, %v1224_v61  ;;  %v1247_v58 = vmul.f32 %v1242_v45, %v1237_v16 }
 0x3da   : > { %v5402_v23 = vadd.f32 %v4252_v31, %v1246_v57  ;;  %v5405_v21 = vadd.f32 %v4253_v59, %v1247_v58 }
 0x3dc   : > { %v1264_v47 = vrot.slane %v5402_v23, 4  ;;  %v1270_v54 = vrot.slane %v5405_v21, 4 }
 0x3dd   : > { %v1238_v14 = vpop.f32.mrf.mxu3  ;;  %v1225_v53 = vpop.f32.mrf.mxu2 }
 0x3de   : > { %v1265_v33 = vadd.f32 %v1264_v47, %v5402_v23  ;;  %v1271_v56 = vadd.f32 %v1270_v54, %v5405_v21 }
 0x3e0   : > { %v1266_v50 = vrot.slane %v1265_v33, 2  ;;  %v1272_v38 = vrot.slane %v1271_v56, 2 }
 0x3e1   : > { %v1197_v39 = vpop.f32.mrf.mxu0  ;;  %v1210_v3 = vpop.f32.mrf.mxu1 }
 0x3e2   : > { %v1198_v44 = vadd.f32 %v1197_v39, %v1171_v34  ;;  %v1211_v11 = vadd.f32 %v1210_v3, %v1171_v34  ;;  %v1267_v62 = vadd.f32 %v1266_v50, %v1265_v33  ;;  %v1273_v0 = vadd.f32 %v1272_v38, %v1271_v56 }
 0x3e4   : > { %v1244_v12 = vmul.f32 %v1242_v45, %v1198_v44  ;;  %v1245_v60 = vmul.f32 %v1242_v45, %v1211_v11  ;;  %v1268_v51 = vrot.slane %v1267_v62, 1  ;;  %v1274_v32 = vrot.slane %v1273_v0, 1 }
 0x3e6   : > { %v5412_v40 = vadd.f32 %v4254_v26, %v1244_v12  ;;  %v5415_v35 = vadd.f32 %v4255_v2, %v1245_v60  ;;  %v1269_v18 = vadd.f32 %v1268_v51, %v1267_v62  ;;  %v1275_v25 = vadd.f32 %v1274_v32, %v1273_v0 }
 0x3e8   : > { %v1252_v63 = vrot.slane %v5412_v40, 4  ;;  %v1258_v42 = vrot.slane %v5415_v35, 4  ;;  %v1278_v28 = vmul.f32 %v1269_v18, %v7239_v24  ;;  %v1279_v48 = vmul.f32 %v1275_v25, %v7239_v24 }
 0x3e9   : > { %v1199_v13 = vpop.f32.mrf.mxu0  ;;  %v1212_v36 = vpop.f32.mrf.mxu1 }
 0x3ea   : > { %v1253_v29 = vadd.f32 %v1252_v63, %v5412_v40  ;;  %v1259_v55 = vadd.f32 %v1258_v42, %v5415_v35  ;;  %v5424_v6 = vsub.f32 %v5402_v23, %v1278_v28  ;;  %v5427_v37 = vsub.f32 %v5405_v21, %v1279_v48  ;;  %v5448_v13 = vpop.permute.xlu2 %1365 }
 0x3ec   : > { %v1254_v17 = vrot.slane %v1253_v29, 2  ;;  %v1260_v43 = vrot.slane %v1259_v55, 2  ;;  %v1286_v19 = vmul.f32 %v5424_v6, %v5424_v6  ;;  %v1287_v9 = vmul.f32 %v5427_v37, %v5427_v37 }
 0x3ee   : > { %v1255_v41 = vadd.f32 %v1254_v17, %v1253_v29  ;;  %v1261_v10 = vadd.f32 %v1260_v43, %v1259_v55  ;;  %v1300_v30 = vrot.slane %v1286_v19, 4  ;;  %v1306_v27 = vrot.slane %v1287_v9, 4 }
 0x3f0   : > { %v1301_v7 = vadd.f32 %v1300_v30, %v1286_v19  ;;  %v1307_v52 = vadd.f32 %v1306_v27, %v1287_v9  ;;  %v1256_v22 = vrot.slane %v1255_v41, 1  ;;  %v1262_v15 = vrot.slane %v1261_v10, 1 }
 0x3f1   : > { %v4350_v9 = vmov 9  }
 0x3f2   : > { %v1302_v4 = vrot.slane %v1301_v7, 2  ;;  %v1308_v20 = vrot.slane %v1307_v52, 2  ;;  %v1257_v34 = vadd.f32 %v1256_v22, %v1255_v41  ;;  %v1263_v45 = vadd.f32 %v1262_v15, %v1261_v10  ;;  %4075 = vset.pattern.permute.xlu0 %v4350_v9  ;;  %4074 = vset.pattern.permute.xlu2 %v4350_v9  ;;  %v4256_v10 = vld [vmem:[%s7031_s2 + $0x8] sm:$0xff] }
 0x3f3   : > { %1391 = vperm.xlu0 %4075, %v4256_v10   ;;  %1387 = vperm.xlu2 %4074, %v5372_v1  }
 0x3f4   : > { %v1303_v49 = vadd.f32 %v1302_v4, %v1301_v7  ;;  %v1309_v5 = vadd.f32 %v1308_v20, %v1307_v52  ;;  %v1276_v61 = vmul.f32 %v1257_v34, %v7239_v24  ;;  %v1277_v16 = vmul.f32 %v1263_v45, %v7239_v24 }
 0x3f6   : > { %v1304_v57 = vrot.slane %v1303_v49, 1  ;;  %v1310_v58 = vrot.slane %v1309_v5, 1  ;;  %v5436_v31 = vsub.f32 %v5412_v40, %v1276_v61  ;;  %v5439_v59 = vsub.f32 %v5415_v35, %v1277_v16 }
 0x3f8   : > { %v1305_v47 = vadd.f32 %v1304_v57, %v1303_v49  ;;  %v1311_v54 = vadd.f32 %v1310_v58, %v1309_v5  ;;  %v1284_v14 = vmul.f32 %v5436_v31, %v5436_v31  ;;  %v1285_v53 = vmul.f32 %v5439_v59, %v5439_v59  ;;  %v1374_v49 = vpop.permute.xlu2 %1373 }
 0x3fa   : > { %v1314_v33 = vmul.f32 %v1305_v47, %v7239_v24  ;;  %v1315_v56 = vmul.f32 %v1311_v54, %v7239_v24  ;;  %v1288_v50 = vrot.slane %v1284_v14, 4  ;;  %v1294_v38 = vrot.slane %v1285_v53, 4 }
 0x3fc   : > { %v1318_v39 = vadd.f32 1e-06, %v1314_v33  ;;  %v1319_v3 = vadd.f32 1e-06, %v1315_v56  ;;  %v1289_v44 = vadd.f32 %v1288_v50, %v1284_v14  ;;  %v1295_v11 = vadd.f32 %v1294_v38, %v1285_v53  ;;  %v3965_v38 = vld [vmem:[%s7030_s1 + $0x8] sm:$0xff] }
 0x3fe   : > { %4099 = vrsqrt.f32 %v1318_v39  ;;  %v1290_v62 = vrot.slane %v1289_v44, 2  ;;  %v1296_v0 = vrot.slane %v1295_v11, 2  ;;  %vm1346_vm3 = vweird.f32 %v1318_v39 }
 0x3ff   : > { %4101 = vrsqrt.f32 %v1319_v3  ;;  %vm1356_vm6 = vweird.f32 %v1319_v3 }
 0x400   : > { %v1291_v12 = vadd.f32 %v1290_v62, %v1289_v44  ;;  %v1297_v60 = vadd.f32 %v1296_v0, %v1295_v11 }
 0x402   : > { %v1292_v51 = vrot.slane %v1291_v12, 1  ;;  %v1298_v32 = vrot.slane %v1297_v60, 1 }
 0x404   : > { %v4100_v26 = vpop.eup %4099  ;;  %v1293_v2 = vadd.f32 %v1292_v51, %v1291_v12  ;;  %v1299_v63 = vadd.f32 %v1298_v32, %v1297_v60 }
 0x405   : > { %v4102_v18 = vpop.eup %4101  ;;  %v1341_v25 = vmul.f32 %v4100_v26, %v1318_v39  ;;  %vm1347_vm11 = vweird.f32 %v4100_v26 }
 0x406   : > { %v1351_v42 = vmul.f32 %v4102_v18, %v1319_v3  ;;  %v1312_v28 = vmul.f32 %v1293_v2, %v7239_v24  ;;  %v1313_v36 = vmul.f32 %v1299_v63, %v7239_v24  ;;  %vm1357_vm1 = vweird.f32 %v4102_v18  ;;  %vm1348_vm4 = vmor %vm1346_vm3, %vm1347_vm11 }
 0x407   : > { %v1342_v48 = vmul.f32 %v4100_v26, %v1341_v25  ;;  %vm1358_vm9 = vmor %vm1356_vm6, %vm1357_vm1 }
 0x408   : > { %v1352_v29 = vmul.f32 %v4102_v18, %v1351_v42  ;;  %v1316_v55 = vadd.f32 1e-06, %v1312_v28  ;;  %v1317_v43 = vadd.f32 1e-06, %v1313_v36  ;;  %vm7242_vm11 = vmmov %vm7231_vm0 }
 0x409   : > { %v1343_v17 = vmul.f32 0.5, %v1342_v48  ;;  %vm7243_vm1 = vmmov %vm7231_vm0  ;;  %v4353_v48 = vmov 14  }
 0x40a   : > { %v1353_v19 = vmul.f32 0.5, %v1352_v29  ;;  %4103 = vrsqrt.f32 %v1316_v55  ;;  %vm1326_vm2 = vweird.f32 %v1316_v55  ;;  %vm1336_vm12 = vweird.f32 %v1317_v43  ;;  %vm7244_vm3 = vmmov %vm7238_vm8 }
 0x40b   : > { %v1344_v41 = vsub.f32 1.5, %v1343_v17  ;;  %4105 = vrsqrt.f32 %v1317_v43  ;;  %vm7246_vm6 = vmmov %vm7231_vm0 }
 0x40c   : > { %v1354_v30 = vsub.f32 1.5, %v1353_v19 }
 0x40d   : > { %v1345_v27 = vmul.f32 %v4100_v26, %v1344_v41 }
 0x40e   : > { %v1355_v7 = vmul.f32 %v4102_v18, %v1354_v30 }
 0x40f   : > { %v1349_v52 = vsel %vm1348_vm4, %v4100_v26, %v1345_v27  ;;  %vm7245_vm4 = vmmov %vm7244_vm3 }
 0x410   : > { %v4104_v22 = vpop.eup %4103  ;;  %v1359_v15 = vsel %vm1358_vm9, %v4102_v18, %v1355_v7  ;;  %v1362_v4 = vmul.f32 %v1349_v52, %v5424_v6  ;;  %vm7247_vm9 = vmmov %vm7231_vm0 }
 0x411   : > { %v4106_v20 = vpop.eup %4105  ;;  %v1363_v34 = vmul.f32 %v1359_v15, %v5427_v37  ;;  %v1321_v45 = vmul.f32 %v4104_v22, %v1316_v55  ;;  %vm1327_vm14 = vweird.f32 %v4104_v22 }
 0x412   : > { %v1331_v5 = vmul.f32 %v4106_v20, %v1317_v43  ;;  %v1370_v61 = vmul.f32 %v5448_v13, %v1362_v4  ;;  %vm1337_vm13 = vweird.f32 %v4106_v20  ;;  %vm1328_vm5 = vmor %vm1326_vm2, %vm1327_vm14 }
 0x413   : > { %v1322_v16 = vmul.f32 %v4104_v22, %v1321_v45  ;;  %v1371_v57 = vmul.f32 %v5448_v13, %v1363_v34  ;;  %vm1338_vm7 = vmor %vm1336_vm12, %vm1337_vm13 }
 0x414   : > { %v1332_v58 = vmul.f32 %v4106_v20, %v1331_v5  ;;  %v1378_v47 = vadd.f32 %v1374_v49, %v1370_v61  ;;  %vm7248_vm14 = vmmov %vm7244_vm3 }
 0x415   : > { %v1323_v54 = vmul.f32 0.5, %v1322_v16  ;;  %v1379_v14 = vadd.f32 %v1374_v49, %v1371_v57  ;;  %v1474_v57 = vld [vmem:[%s7030_s1 + $0x18] sm:$0xf]  ;;  %vm7249_vm13 = vmmov %vm7244_vm3 }
 0x416   : > { %v1333_v53 = vmul.f32 0.5, %v1332_v58  ;;  %v1384_v33 = vpack.c.bf16 %v1378_v47, %v1378_v47  ;;  %vm7250_vm2 = vmmov %vm7231_vm0 }
 0x417   : > { %v1324_v56 = vsub.f32 1.5, %v1323_v54  ;;  %v1385_v6 = vpack.c.bf16 %v1379_v14, %v1379_v14 }
 0x418   : > { %v1334_v50 = vsub.f32 1.5, %v1333_v53  ;;  %v1409_v37 = vsel %vm7231_vm0, %v1384_v33, 0 }
 0x419   : > { %v1325_v39 = vmul.f32 %v4104_v22, %v1324_v56  ;;  %1449 = vmatpush.bf16.msrb.mxu2 %v1409_v37  ;;  %v1412_v3 = vsel %vm7240_vm15, %v1385_v6, 0  ;;  %v4356_v56 = vmov 15   ;;  %vm7251_vm15 = vmmov %vm7244_vm3 }
 0x41a   : > { %v1335_v44 = vmul.f32 %v4106_v20, %v1334_v50  ;;  %1463 = vmatpush.bf16.msrb.mxu3 %v1412_v3 }
 0x41b   : > { %v1329_v11 = vsel %vm1328_vm5, %v4104_v22, %v1325_v39  ;;  %v4355_v22 = vmov 13   ;;  %vm7252_vm5 = vmmov %vm7244_vm3 }
 0x41c   : > { %v1339_v62 = vsel %vm1338_vm7, %v4106_v20, %v1335_v44  ;;  %v1360_v0 = vmul.f32 %v1329_v11, %v5436_v31  ;;  %3880 = vmatmul.msk.bf16.vlgmr.msrb.gmra.mxu2 %vm7241_vm10, %v3965_v38  ;;  %v4351_v31 = vmov 10  }
 0x41d   : > { %v1361_v12 = vmul.f32 %v1339_v62, %v5439_v59  ;;  %3881 = vmatmul.msk.bf16.vlgmr.msrb.gmra.mxu3 %vm7238_vm8, %v3965_v38  ;;  %4076 = vset.pattern.permute.xlu1 %v4351_v31  ;;  %v4352_v59 = vmov 11  }
 0x41e   : > { %v1368_v60 = vmul.f32 %v5448_v13, %v1360_v0  ;;  %4077 = vset.pattern.permute.xlu2 %v4352_v59  ;;  %1480 = vperm.xlu1 %4076, %v5372_v1  }
 0x41f   : > { %v1369_v51 = vmul.f32 %v5448_v13, %v1361_v12  ;;  %1551 = vperm.xlu2 %4077, %v5372_v1   ;;  %v4354_v13 = vmov 12  }
 0x420   : > { %v1376_v32 = vadd.f32 %v1374_v49, %v1368_v60 }
 0x421   : > { %v1377_v26 = vadd.f32 %v1374_v49, %v1369_v51 }
 0x422   : > { %v1382_v2 = vpack.c.bf16 %v1376_v32, %v1376_v32 }
 0x423   : > { %v1383_v18 = vpack.c.bf16 %v1377_v26, %v1377_v26 }
 0x424   : > { %v1403_v25 = vsel %vm7242_vm11, %v1382_v2, 0 }
 0x425   : > { %1421 = vmatpush.bf16.msrb.mxu0 %v1403_v25  ;;  %v1406_v63 = vsel %vm7243_vm1, %v1383_v18, 0 }
 0x426   : > { %1435 = vmatpush.bf16.msrb.mxu1 %v1406_v63  ;;  %4080 = vset.pattern.permute.xlu1 %v4353_v48 }
 0x427   : > { %4078 = vset.pattern.permute.xlu2 %v4354_v13  ;;  %1687 = vperm.xlu1 %4080, %v5372_v1  }
 0x428   : > { %3878 = vmatmul.msk.bf16.vlgmr.msrb.gmra.mxu0 %vm7244_vm3, %v3965_v38  ;;  %1619 = vperm.xlu2 %4078, %v5372_v1  }
 0x429   : > { %3879 = vmatmul.msk.bf16.vlgmr.msrb.gmra.mxu1 %vm7245_vm4, %v3965_v38 }
 0x430   : > { %4079 = vset.pattern.permute.xlu2 %v4355_v22 }
 0x431   : > { %1625 = vperm.xlu2 %4079, %v5372_v1  }
 0x439   : > { %4081 = vset.pattern.permute.xlu2 %v4356_v56 }
 0x43a   : > { %1693 = vperm.xlu2 %4081, %v5372_v1  }
 0x44d   : > { %v1388_v36 = vpop.permute.xlu2 %1387 }
 0x465   : > { %v1392_v55 = vpop.permute.xlu0 %1391 }
 0x479   : > { %v1552_v50 = vpop.permute.xlu2 %1551 }
 0x490   : > { %v1481_v6 = vpop.permute.xlu1 %1480 }
 0x49f   : > { %v1451_v42 = vpop.f32.mrf.mxu2 }
 0x4a0   : > { %v1465_v28 = vpop.f32.mrf.mxu3  ;;  %v1452_v43 = vadd.f32 %v1451_v42, %v1388_v36 }
 0x4a1   : > { %v1466_v9 = vadd.f32 %v1465_v28, %v1388_v36 }
 0x4a5   : > { %v1423_v29 = vpop.f32.mrf.mxu0 }
 0x4a6   : > { %v1437_v17 = vpop.f32.mrf.mxu1  ;;  %v1424_v20 = vadd.f32 %v1423_v29, %v1388_v36 }
 0x4a7   : > { %v1453_v19 = vpop.f32.mrf.mxu2  ;;  %v1438_v5 = vadd.f32 %v1437_v17, %v1388_v36 }
 0x4a8   : > { %v1454_v41 = vadd.f32 %v1453_v19, %v1392_v55  ;;  %v1467_v10 = vpop.f32.mrf.mxu3 }
 0x4a9   : > { %v1468_v30 = vadd.f32 %v1467_v10, %v1392_v55 }
 0x4aa   : > { %v1472_v27 = vmul.f32 %v1454_v41, %v1452_v43 }
 0x4ab   : > { %v1473_v7 = vmul.f32 %v1468_v30, %v1466_v9 }
 0x4ac   : > { %v1477_v52 = vpack.c.bf16 %v1472_v27, %v1472_v27 }
 0x4ad   : > { %v1478_v15 = vpack.c.bf16 %v1473_v7, %v1473_v7  ;;  %v1425_v4 = vpop.f32.mrf.mxu0 }
 0x4ae   : > { %v1426_v34 = vadd.f32 %v1425_v4, %v1392_v55  ;;  %v1439_v45 = vpop.f32.mrf.mxu1  ;;  %v1493_v49 = vsel %vm7246_vm6, %v1477_v52, 0 }
 0x4af   : > { %v1440_v61 = vadd.f32 %v1439_v45, %v1392_v55  ;;  %1531 = vmatpush.bf16.msra.mxu2 %v1493_v49  ;;  %v1496_v16 = vsel %vm7247_vm9, %v1478_v15, 0 }
 0x4b0   : > { %v1470_v58 = vmul.f32 %v1426_v34, %v1424_v20  ;;  %1544 = vmatpush.bf16.msra.mxu3 %v1496_v16 }
 0x4b1   : > { %v1471_v47 = vmul.f32 %v1440_v61, %v1438_v5 }
 0x4b2   : > { %v1475_v54 = vpack.c.bf16 %v1470_v58, %v1470_v58  ;;  %3884 = vmatmul.msk.bf16.vlgmr.msra.gmra.mxu2 %vm7248_vm14, %v1474_v57 }
 0x4b3   : > { %v1476_v14 = vpack.c.bf16 %v1471_v47, %v1471_v47  ;;  %3885 = vmatmul.msk.bf16.vlgmr.msra.gmra.mxu3 %vm7249_vm13, %v1474_v57 }
 0x4b4   : > { %v1487_v53 = vsel %vm7231_vm0, %v1475_v54, 0 }
 0x4b5   : > { %1505 = vmatpush.bf16.msra.mxu0 %v1487_v53  ;;  %v1490_v33 = vsel %vm7250_vm2, %v1476_v14, 0  ;;  %vm7257_vm2 = vmmov %vm7231_vm0 }
 0x4b6   : > { %1518 = vmatpush.bf16.msra.mxu1 %v1490_v33 }
 0x4b8   : > { %3882 = vmatmul.msk.bf16.vlgmr.msra.gmra.mxu0 %vm7251_vm15, %v1474_v57  ;;  %vm7258_vm15 = vmmov %vm7231_vm0 }
 0x4b9   : > { %3883 = vmatmul.msk.bf16.vlgmr.msra.gmra.mxu1 %vm7252_vm5, %v1474_v57  ;;  %vm7259_vm5 = vmmov %vm7231_vm0 }
 0x535   : > { %v1507_v37 = vpop.f32.mrf.mxu0  ;;  %v1533_v38 = vpop.f32.mrf.mxu2 }
 0x536   : > { %v1520_v39 = vpop.f32.mrf.mxu1  ;;  %v1546_v3 = vpop.f32.mrf.mxu3  ;;  %v1508_v44 = vadd.f32 %v1507_v37, %v1481_v6  ;;  %v1534_v11 = vadd.f32 %v1533_v38, %v1481_v6 }
 0x537   : > { %v1521_v62 = vadd.f32 %v1520_v39, %v1481_v6  ;;  %v1547_v0 = vadd.f32 %v1546_v3, %v1481_v6 }
 0x538   : > { %v1554_v12 = vmul.f32 %v1552_v50, %v1508_v44  ;;  %v1556_v60 = vmul.f32 %v1552_v50, %v1534_v11 }
 0x539   : > { %v1555_v51 = vmul.f32 %v1552_v50, %v1521_v62  ;;  %v1557_v32 = vmul.f32 %v1552_v50, %v1547_v0 }
 0x53a   : > { %v5492_v26 = vadd.f32 %v1554_v12, %v5412_v40  ;;  %v5495_v2 = vadd.f32 %v1556_v60, %v5402_v23 }
 0x53b   : > { %v5498_v18 = vadd.f32 %v1555_v51, %v5415_v35  ;;  %v5501_v25 = vadd.f32 %v1557_v32, %v5405_v21 }
 0x53c   : > { %7253 = vst [vmem:[#allocation10_spill] sm:$0xff] %v5492_v26  ;;  %v1562_v63 = vrot.slane %v5492_v26, 4  ;;  %v1630_v31 = vrot.slane %v5495_v2, 4 }
 0x53d   : > { %7254 = vst [vmem:[#allocation13_spill] sm:$0xff] %v5495_v2  ;;  %v1509_v59 = vpop.f32.mrf.mxu0  ;;  %v1568_v42 = vrot.slane %v5498_v18, 4  ;;  %v1636_v28 = vrot.slane %v5501_v25, 4  ;;  %v1535_v40 = vpop.f32.mrf.mxu2 }
 0x53e   : > { %7255 = vst [vmem:[#allocation18_spill] sm:$0xff] %v5498_v18  ;;  %v1522_v48 = vpop.f32.mrf.mxu1  ;;  %v1563_v23 = vadd.f32 %v1562_v63, %v5492_v26  ;;  %v1631_v13 = vadd.f32 %v1630_v31, %v5495_v2  ;;  %v1548_v35 = vpop.f32.mrf.mxu3 }
 0x53f   : > { %7256 = vst [vmem:[#allocation12_spill] sm:$0xff] %v5501_v25  ;;  %v1569_v36 = vadd.f32 %v1568_v42, %v5498_v18  ;;  %v1637_v21 = vadd.f32 %v1636_v28, %v5501_v25 }
 0x540   : > { %v1564_v29 = vrot.slane %v1563_v23, 2  ;;  %v1632_v55 = vrot.slane %v1631_v13, 2 }
 0x541   : > { %v1570_v17 = vrot.slane %v1569_v36, 2  ;;  %v1638_v43 = vrot.slane %v1637_v21, 2 }
 0x542   : > { %v1565_v19 = vadd.f32 %v1564_v29, %v1563_v23  ;;  %v1633_v9 = vadd.f32 %v1632_v55, %v1631_v13 }
 0x543   : > { %v1571_v41 = vadd.f32 %v1570_v17, %v1569_v36  ;;  %v1639_v10 = vadd.f32 %v1638_v43, %v1637_v21 }
 0x544   : > { %v1566_v30 = vrot.slane %v1565_v19, 1  ;;  %v1634_v27 = vrot.slane %v1633_v9, 1 }
 0x545   : > { %v1572_v7 = vrot.slane %v1571_v41, 1  ;;  %v1640_v52 = vrot.slane %v1639_v10, 1 }
 0x546   : > { %v1567_v22 = vadd.f32 %v1566_v30, %v1565_v19  ;;  %v1635_v15 = vadd.f32 %v1634_v27, %v1633_v9  ;;  %v1620_v19 = vpop.permute.xlu2 %1619  ;;  %v4357_v9 = vmov 16  }
 0x547   : > { %v1573_v4 = vadd.f32 %v1572_v7, %v1571_v41  ;;  %v1641_v20 = vadd.f32 %v1640_v52, %v1639_v10  ;;  %4082 = vset.pattern.permute.xlu1 %v4357_v9  ;;  %v4358_v41 = vmov 17   ;;  %v1698_v9 = vld [vmem:[%s7030_s1 + $0x28] sm:$0xf] }
 0x548   : > { %v1574_v34 = vmul.f32 %v1567_v22, %v7239_v24  ;;  %v1642_v45 = vmul.f32 %v1635_v15, %v7239_v24  ;;  %1702 = vperm.xlu1 %4082, %v5372_v1   ;;  %4083 = vset.pattern.permute.xlu2 %v4358_v41 }
 0x549   : > { %v1575_v49 = vmul.f32 %v1573_v4, %v7239_v24  ;;  %v1643_v5 = vmul.f32 %v1641_v20, %v7239_v24  ;;  %1746 = vperm.xlu2 %4083, %v5372_v1  }
 0x54a   : > { %v5516_v61 = vsub.f32 %v5492_v26, %v1574_v34  ;;  %v5519_v16 = vsub.f32 %v5495_v2, %v1642_v45 }
 0x54b   : > { %v5522_v57 = vsub.f32 %v5498_v18, %v1575_v49  ;;  %v5525_v58 = vsub.f32 %v5501_v25, %v1643_v5 }
 0x54c   : > { %v1578_v47 = vmul.f32 %v5516_v61, %v5516_v61  ;;  %v1646_v54 = vmul.f32 %v5519_v16, %v5519_v16 }
 0x54d   : > { %v1579_v14 = vmul.f32 %v5522_v57, %v5522_v57  ;;  %v1647_v53 = vmul.f32 %v5525_v58, %v5525_v58 }
 0x54e   : > { %v1580_v33 = vrot.slane %v1578_v47, 4  ;;  %v1648_v56 = vrot.slane %v1646_v54, 4  ;;  %v1626_v45 = vpop.permute.xlu2 %1625 }
 0x54f   : > { %v1586_v6 = vrot.slane %v1579_v14, 4  ;;  %v1654_v50 = vrot.slane %v1647_v53, 4 }
 0x550   : > { %v1581_v37 = vadd.f32 %v1580_v33, %v1578_v47  ;;  %v1649_v38 = vadd.f32 %v1648_v56, %v1646_v54 }
 0x551   : > { %v1587_v39 = vadd.f32 %v1586_v6, %v1579_v14  ;;  %v1655_v3 = vadd.f32 %v1654_v50, %v1647_v53 }
 0x552   : > { %v1582_v44 = vrot.slane %v1581_v37, 2  ;;  %v1650_v11 = vrot.slane %v1649_v38, 2 }
 0x553   : > { %v1588_v62 = vrot.slane %v1587_v39, 2  ;;  %v1656_v0 = vrot.slane %v1655_v3, 2 }
 0x554   : > { %v1583_v12 = vadd.f32 %v1582_v44, %v1581_v37  ;;  %v1651_v60 = vadd.f32 %v1650_v11, %v1649_v38 }
 0x555   : > { %v1589_v51 = vadd.f32 %v1588_v62, %v1587_v39  ;;  %v1657_v32 = vadd.f32 %v1656_v0, %v1655_v3  ;;  %v1688_v0 = vpop.permute.xlu1 %1687 }
 0x556   : > { %v1584_v63 = vrot.slane %v1583_v12, 1  ;;  %v1652_v31 = vrot.slane %v1651_v60, 1 }
 0x557   : > { %v1590_v59 = vrot.slane %v1589_v51, 1  ;;  %v1658_v42 = vrot.slane %v1657_v32, 1 }
 0x558   : > { %v1585_v28 = vadd.f32 %v1584_v63, %v1583_v12  ;;  %v1653_v40 = vadd.f32 %v1652_v31, %v1651_v60  ;;  %v1694_v31 = vpop.permute.xlu2 %1693 }
 0x559   : > { %v1591_v48 = vadd.f32 %v1590_v59, %v1589_v51  ;;  %v1659_v23 = vadd.f32 %v1658_v42, %v1657_v32 }
 0x55a   : > { %v1592_v13 = vmul.f32 %v1585_v28, %v7239_v24  ;;  %v1660_v35 = vmul.f32 %v1653_v40, %v7239_v24  ;;  %v1785_v40 = vpack.c.bf16 %v5492_v26, %v5492_v26 }
 0x55b   : > { %v1593_v36 = vmul.f32 %v1591_v48, %v7239_v24  ;;  %v1661_v21 = vmul.f32 %v1659_v23, %v7239_v24  ;;  %v1786_v23 = vpack.c.bf16 %v5498_v18, %v5498_v18 }
 0x55c   : > { %v1594_v29 = vadd.f32 1e-06, %v1592_v13  ;;  %v1662_v55 = vadd.f32 1e-06, %v1660_v35 }
 0x55d   : > { %v1595_v17 = vadd.f32 1e-06, %v1593_v36  ;;  %v1663_v43 = vadd.f32 1e-06, %v1661_v21  ;;  %v1828_v21 = vpack.c.bf16 %v5501_v25, %v5501_v25 }
 0x55e   : > { %4107 = vrsqrt.f32 %v1594_v29  ;;  %vm1602_vm10 = vweird.f32 %v1594_v29  ;;  %vm1670_vm6 = vweird.f32 %v1662_v55 }
 0x55f   : > { %4109 = vrsqrt.f32 %v1595_v17  ;;  %vm1612_vm1 = vweird.f32 %v1595_v17  ;;  %vm1680_vm14 = vweird.f32 %v1663_v43 }
 0x560   : > { %4111 = vrsqrt.f32 %v1662_v55 }
 0x561   : > { %4113 = vrsqrt.f32 %v1663_v43 }
 0x564   : > { %v4108_v10 = vpop.eup %4107 }
 0x565   : > { %v4110_v30 = vpop.eup %4109  ;;  %v1597_v24 = vmul.f32 %v4108_v10, %v1594_v29  ;;  %vm1603_vm12 = vweird.f32 %v4108_v10 }
 0x566   : > { %v4112_v27 = vpop.eup %4111  ;;  %v1607_v7 = vmul.f32 %v4110_v30, %v1595_v17  ;;  %vm1613_vm7 = vweird.f32 %v4110_v30  ;;  %vm1604_vm11 = vmor %vm1602_vm10, %vm1603_vm12  ;;  %v1795_v17 = vsel %vm7258_vm15, %v1785_v40, 0 }
 0x567   : > { %v4114_v52 = vpop.eup %4113  ;;  %v1598_v22 = vmul.f32 %v4108_v10, %v1597_v24  ;;  %v1665_v15 = vmul.f32 %v4112_v27, %v1662_v55  ;;  %vm1671_vm8 = vweird.f32 %v4112_v27  ;;  %vm1614_vm4 = vmor %vm1612_vm1, %vm1613_vm7 }
 0x568   : > { %v1608_v4 = vmul.f32 %v4110_v30, %v1607_v7  ;;  %v1675_v20 = vmul.f32 %v4114_v52, %v1663_v43  ;;  %vm1681_vm3 = vweird.f32 %v4114_v52  ;;  %vm1672_vm9 = vmor %vm1670_vm6, %vm1671_vm8  ;;  %v1826_v7 = vld [vmem:[%s7030_s1 + $0x40] sm:$0xf] }
 0x569   : > { %v1599_v34 = vmul.f32 0.5, %v1598_v22  ;;  %v1666_v49 = vmul.f32 %v4112_v27, %v1665_v15  ;;  %vm1682_vm13 = vmor %vm1680_vm14, %vm1681_vm3 }
 0x56a   : > { %v1609_v5 = vmul.f32 0.5, %v1608_v4  ;;  %v1676_v47 = vmul.f32 %v4114_v52, %v1675_v20  ;;  %vm7260_vm12 = vmmov %vm7231_vm0 }
 0x56b   : > { %v1600_v54 = vsub.f32 1.5, %v1599_v34  ;;  %v1667_v14 = vmul.f32 0.5, %v1666_v49  ;;  %vm7261_vm7 = vmmov %vm7231_vm0 }
 0x56c   : > { %v1610_v53 = vsub.f32 1.5, %v1609_v5  ;;  %v1677_v1 = vmul.f32 0.5, %v1676_v47  ;;  %vm7262_vm10 = vmmov %vm7231_vm0 }
 0x56d   : > { %v1601_v33 = vmul.f32 %v4108_v10, %v1600_v54  ;;  %v1668_v56 = vsub.f32 1.5, %v1667_v14  ;;  %vm7263_vm8 = vmmov %vm7231_vm0 }
 0x56e   : > { %v1611_v6 = vmul.f32 %v4110_v30, %v1610_v53  ;;  %v1678_v50 = vsub.f32 1.5, %v1677_v1  ;;  %v1840_v24 = vsel %vm7263_vm8, %v1828_v21, 0  ;;  %vm7273_vm15 = vmmov %vm7231_vm0 }
 0x56f   : > { %v1605_v37 = vsel %vm1604_vm11, %v4108_v10, %v1601_v33  ;;  %v1669_v38 = vmul.f32 %v4112_v27, %v1668_v56  ;;  %vm7264_vm11 = vcmask 64512  }
 0x570   : > { %v1615_v39 = vsel %vm1614_vm4, %v4110_v30, %v1611_v6  ;;  %v1616_v3 = vmul.f32 %v1605_v37, %v5516_v61  ;;  %v1679_v44 = vmul.f32 %v4114_v52, %v1678_v50  ;;  %v1742_v30 = vld [vmem:[%s7030_s1 + $0x30] sm:$0xf]  ;;  %vm7265_vm1 = vmmov %vm7264_vm11 }
 0x571   : > { %v1617_v11 = vmul.f32 %v1615_v39, %v5522_v57  ;;  %v1673_v62 = vsel %vm1672_vm9, %v4112_v27, %v1669_v38  ;;  %vm7266_vm3 = vmmov %vm7265_vm1  ;;  %v1784_v27 = vld [vmem:[%s7030_s1 + $0x38] sm:$0xf] }
 0x572   : > { %v1622_v12 = vmul.f32 %v1620_v19, %v1616_v3  ;;  %v1683_v60 = vsel %vm1682_vm13, %v4114_v52, %v1679_v44  ;;  %v1684_v51 = vmul.f32 %v1673_v62, %v5519_v16  ;;  %v1827_v16 = vpack.c.bf16 %v5495_v2, %v5495_v2  ;;  %vm7267_vm4 = vmmov %vm7265_vm1 }
 0x573   : > { %v1623_v32 = vmul.f32 %v1620_v19, %v1617_v11  ;;  %v1685_v63 = vmul.f32 %v1683_v60, %v5525_v58  ;;  %v1798_v19 = vsel %vm7260_vm12, %v1786_v23, 0  ;;  %vm7268_vm6 = vmmov %vm7265_vm1  ;;  %v4359_v62 = vmov 18  }
 0x574   : > { %v1628_v59 = vadd.f32 %v1626_v45, %v1622_v12  ;;  %v1690_v42 = vmul.f32 %v1688_v0, %v1684_v51  ;;  %v1837_v10 = vsel %vm7262_vm10, %v1827_v16, 0  ;;  %vm7269_vm9 = vmmov %vm7265_vm1  ;;  %4084 = vset.pattern.permute.xlu2 %v4359_v62 }
 0x575   : > { %v1629_v28 = vadd.f32 %v1626_v45, %v1623_v32  ;;  %v1691_v61 = vmul.f32 %v1688_v0, %v1685_v63  ;;  %vm7270_vm14 = vmmov %vm7265_vm1  ;;  %v4257_v0 = vld [vmem:[%s7031_s2] sm:$0xff] }
 0x576   : > { %v1699_v48 = vpack.c.bf16 %v1628_v59, %v1628_v59  ;;  %v1696_v57 = vadd.f32 %v1694_v31, %v1690_v42  ;;  %vm7271_vm13 = vmmov %vm7265_vm1  ;;  %1788 = vperm.xlu2 %4084, %v4257_v0  }
 0x577   : > { %v1700_v13 = vpack.c.bf16 %v1629_v28, %v1629_v28  ;;  %v1697_v35 = vadd.f32 %v1694_v31, %v1691_v61  ;;  %vm7275_vm12 = vmmov %vm7265_vm1  ;;  %v4360_v61 = vmov 19  }
 0x578   : > { %v1743_v36 = vpack.c.bf16 %v1696_v57, %v1696_v57  ;;  %v1709_v58 = vsel %vm7231_vm0, %v1699_v48, 0  ;;  %vm7277_vm10 = vmmov %vm7265_vm1 }
 0x579   : > { %v1744_v29 = vpack.c.bf16 %v1697_v35, %v1697_v35  ;;  %1721 = vmatpush.bf16.msrb.mxu0 %v1709_v58  ;;  %v1712_v55 = vsel %vm7257_vm2, %v1700_v13, 0  ;;  %vm7272_vm2 = vmmov %vm7231_vm0 }
 0x57a   : > { %1734 = vmatpush.bf16.msrb.mxu1 %v1712_v55  ;;  %v1753_v43 = vsel %vm7259_vm5, %v1743_v36, 0  ;;  %vm7274_vm5 = vmmov %vm7231_vm0 }
 0x57b   : > { %1765 = vmatpush.bf16.msrb.mxu2 %v1753_v43  ;;  %v1756_v41 = vsel %vm7261_vm7, %v1744_v29, 0  ;;  %vm7276_vm7 = vmmov %vm7265_vm1 }
 0x57c   : > { %1778 = vmatpush.bf16.msrb.mxu3 %v1756_v41  ;;  %3886 = vmatmul.msk.bf16.vlgmr.msrb.gmra.mxu0 %vm7264_vm11, %v1698_v9  ;;  %vm7278_vm8 = vmmov %vm7265_vm1 }
 0x57d   : > { %1807 = vmatpush.bf16.msra.mxu0 %v1795_v17  ;;  %3887 = vmatmul.msk.bf16.vlgmr.msrb.gmra.mxu1 %vm7265_vm1, %v1698_v9  ;;  %vm7279_vm11 = vmmov %vm7265_vm1 }
 0x57e   : > { %1820 = vmatpush.bf16.msra.mxu1 %v1798_v19  ;;  %3888 = vmatmul.msk.bf16.vlgmr.msrb.gmra.mxu2 %vm7266_vm3, %v1742_v30  ;;  %vm7280_vm3 = vmmov %vm7265_vm1 }
 0x57f   : > { %1849 = vmatpush.bf16.msra.mxu2 %v1837_v10  ;;  %3889 = vmatmul.msk.bf16.vlgmr.msrb.gmra.mxu3 %vm7267_vm4, %v1742_v30  ;;  %vm7281_vm4 = vmmov %vm7265_vm1 }
 0x580   : > { %1862 = vmatpush.bf16.msra.mxu3 %v1840_v24  ;;  %4085 = vset.pattern.permute.xlu2 %v4360_v61 }
 0x581   : > { %1830 = vperm.xlu2 %4085, %v4257_v0  }
 0x58c   : > { %3890 = vmatmul.msk.bf16.vlgmr.msra.gmra.mxu0 %vm7269_vm9, %v1784_v27  ;;  %vm7283_vm9 = vmmov %vm7265_vm1 }
 0x58d   : > { %3891 = vmatmul.msk.bf16.vlgmr.msra.gmra.mxu1 %vm7268_vm6, %v1784_v27  ;;  %vm7282_vm6 = vmmov %vm7265_vm1 }
 0x58e   : > { %3892 = vmatmul.msk.bf16.vlgmr.msra.gmra.mxu2 %vm7271_vm13, %v1826_v7  ;;  %vm7285_vm13 = vmmov %vm7265_vm1 }
 0x58f   : > { %3893 = vmatmul.msk.bf16.vlgmr.msra.gmra.mxu3 %vm7270_vm14, %v1826_v7  ;;  %vm7284_vm14 = vmmov %vm7265_vm1 }
 0x5a3   : > { %v1747_v5 = vpop.permute.xlu2 %1746 }
 0x5ba   : > { %v1703_v52 = vpop.permute.xlu1 %1702 }
 0x5f9   : > { %v1723_v22 = vpop.f32.mrf.mxu0 }
 0x5fa   : > { %v1736_v15 = vpop.f32.mrf.mxu1  ;;  %v1724_v4 = vadd.f32 %v1723_v22, %v1703_v52 }
 0x5fb   : > { %v1737_v20 = vadd.f32 %v1736_v15, %v1703_v52 }
 0x5fc   : > { %v1740_v34 = vmul.f32 0.35355338, %v1724_v4 }
 0x5fd   : > { %v1741_v45 = vmul.f32 0.35355338, %v1737_v20 }
 0x5fe   : > { %v1868_v49 = vpack.c.bf16 %v1740_v34, %v1740_v34 }
 0x5ff   : > { %v1869_v47 = vpack.c.bf16 %v1741_v45, %v1741_v45 }
 0x600   : > { %v2201_v14 = vsel %vm7231_vm0, %v1868_v49, 0  ;;  %vm7286_vm0 = vmmov %vm7265_vm1 }
 0x601   : > { %v1767_v54 = vpop.f32.mrf.mxu2  ;;  %1872 = vxpose.binary.xlu0.c.b16.start.end [1/2] (short) %v1869_v47, %v1868_v49, 128  ;;  %v1725_v33 = vpop.f32.mrf.mxu0  ;;  %v2204_v56 = vsel %vm7272_vm2, %v1869_v47, 0  ;;  %vm7287_vm2 = vmmov %vm7286_vm0  ;;  %v7311_v47 = vlaneseq }
 0x602   : > { %v1768_v53 = vadd.f32 %v1767_v54, %v1747_v5  ;;  %v1780_v1 = vpop.f32.mrf.mxu3  ;;  %v1738_v50 = vpop.f32.mrf.mxu1  ;;  %2213 = vmatpush.bf16.msrb.mxu2 %v2201_v14  ;;  %2302 = vmatpush.bf16.msrb.mxu3 %v2204_v56  ;;  %v5670_v56 = vshrl.u32 %v4690_v8, 4 }
 0x603   : > { %v1781_v6 = vadd.f32 %v1780_v1, %v1747_v5  ;;  %v5661_v54 = vshrl.u32 %v7311_v47, 7 }
 0x604   : > { %v1870_v37 = vpack.c.bf16 %v1768_v53, %v1768_v53 }
 0x605   : > { %v1871_v38 = vpack.c.bf16 %v1781_v6, %v1781_v6  ;;  %v2387_v14 = vadd.s32 16, %v5661_v54  ;;  %v2417_v33 = vshrl.u32 %v5661_v54, 4  ;;  %v2389_v61 = vadd.s32 32, %v5661_v54 }
 0x606   : > { %v1945_v39 = vsel %vm7273_vm15, %v1870_v37, 0  ;;  %vm7288_vm15 = vmmov %vm7286_vm0 }
 0x607   : > { %v1948_v3 = vsel %vm7274_vm5, %v1871_v38, 0  ;;  %2128 = vxpose.binary.xlu1.c.b16.start.end [1/2] (short) %v1871_v38, %v1870_v37, 128  ;;  %vm7289_vm5 = vmmov %vm7286_vm0  ;;  %v2419_v6 = vshrl.u32 %v2387_v14, 4  ;;  %v7418_v38 = vmov 0 }
 0x608   : > { %1957 = vmatpush.bf16.msrb.mxu0 %v1945_v39  ;;  %2046 = vmatpush.bf16.msrb.mxu1 %v1948_v3  ;;  %v2386_v39 = vadd.s32 8, %v5661_v54 }
 0x609   : > { %v1769_v44 = vpop.f32.mrf.mxu2  ;;  %v5630_v17 = vpop.f32.mrf.mxu0 }
 0x60a   : > { %v1782_v11 = vpop.f32.mrf.mxu3  ;;  %v5624_v21 = vpop.f32.mrf.mxu1  ;;  %7295 = vst [vmem:[#allocation14_spill] sm:$0xff] %v5630_v17  ;;  %v2388_v44 = vadd.s32 24, %v5661_v54 }
 0x60b   : > { %7294 = vst [vmem:[#allocation9_spill] sm:$0xff] %v5624_v21 }
 0x611   : > { %v1811_v41 = vpop.f32.mrf.mxu0  ;;  %v5640_v24 = vpop.f32.mrf.mxu2 }
 0x612   : > { %v1824_v43 = vpop.f32.mrf.mxu1  ;;  %v5636_v10 = vpop.f32.mrf.mxu3  ;;  %7301 = vst [vmem:[#allocation19_spill] sm:$0xff] %v5640_v24 }
 0x613   : > { %7300 = vst [vmem:[#allocation17_spill] sm:$0xff] %v5636_v10  ;;  %v2421_v43 = vshrl.u32 %v2389_v61, 4 }
 0x619   : > { %v1853_v22 = vpop.f32.mrf.mxu2 }
 0x61a   : > { %v1866_v7 = vpop.f32.mrf.mxu3 }
 0x6ad   : > { %v1880_v12 = vpop.trf.xlu0 }
 0x6ae   : > { %3894 = vmatmul.msk.bf16.vlgmr.msrb.gmra.mxu0 %vm7275_vm12, %v1880_v12  ;;  %3910 = vmatmul.msk.bf16.vlgmr.msrb.gmra.mxu1 %vm7276_vm7, %v1880_v12  ;;  %vm7290_vm12 = vmmov %vm7286_vm0  ;;  %v2418_v12 = vshrl.u32 %v2386_v39, 4 }
 0x6af   : > { %vm7291_vm7 = vmmov %vm7286_vm0 }
 0x6b3   : > { %v2136_v60 = vpop.trf.xlu1 }
 0x6b4   : > { %3942 = vmatmul.msk.bf16.vlgmr.msrb.gmra.mxu3 %vm7277_vm10, %v2136_v60  ;;  %3926 = vmatmul.msk.bf16.vlgmr.msrb.gmra.mxu2 %vm7278_vm8, %v2136_v60  ;;  %vm7292_vm10 = vmmov %vm7286_vm0 }
 0x6b5   : > { %v5592_v51 = vpop.trf.xlu0  ;;  %vm7293_vm8 = vmmov %vm7286_vm0 }
 0x6bb   : > { %v5594_v32 = vpop.trf.xlu1 }
 0x6bd   : > { %v1882_v63 = vpop.trf.xlu0 }
 0x6be   : > { %3895 = vmatmul.msk.bf16.gmra.mxu0 %vm7279_vm11, %v1882_v63  ;;  %3911 = vmatmul.msk.bf16.gmra.mxu1 %vm7265_vm1, %v1882_v63  ;;  %vm7296_vm11 = vmmov %vm7286_vm0 }
 0x6bf   : > { %vm7297_vm1 = vmmov %vm7286_vm0 }
 0x6c3   : > { %v2138_v31 = vpop.trf.xlu1 }
 0x6c4   : > { %3943 = vmatmul.msk.bf16.gmra.mxu3 %vm7280_vm3, %v2138_v31  ;;  %3927 = vmatmul.msk.bf16.gmra.mxu2 %vm7281_vm4, %v2138_v31  ;;  %vm7298_vm3 = vmmov %vm7286_vm0 }
 0x6c5   : > { %v5600_v59 = vpop.trf.xlu0  ;;  %vm7299_vm4 = vmmov %vm7286_vm0 }
 0x6cb   : > { %v5602_v42 = vpop.trf.xlu1 }
 0x6cd   : > { %v1884_v28 = vpop.trf.xlu0 }
 0x6ce   : > { %3896 = vmatmul.msk.bf16.gmra.mxu0 %vm7282_vm6, %v1884_v28  ;;  %3912 = vmatmul.msk.bf16.gmra.mxu1 %vm7283_vm9, %v1884_v28  ;;  %vm7302_vm6 = vmmov %vm7286_vm0 }
 0x6cf   : > { %vm7303_vm9 = vmmov %vm7286_vm0 }
 0x6d3   : > { %v2140_v40 = vpop.trf.xlu1 }
 0x6d4   : > { %3944 = vmatmul.msk.bf16.gmra.mxu3 %vm7284_vm14, %v2140_v40  ;;  %3928 = vmatmul.msk.bf16.gmra.mxu2 %vm7285_vm13, %v2140_v40  ;;  %vm7304_vm14 = vmmov %vm7286_vm0 }
 0x6d5   : > { %v5608_v48 = vpop.trf.xlu0  ;;  %vm7305_vm13 = vmmov %vm7286_vm0 }
 0x6db   : > { %v5610_v57 = vpop.trf.xlu1 }
 0x6dd   : > { %v1886_v23 = vpop.trf.xlu0 }
 0x6de   : > { %3897 = vmatmul.msk.bf16.gmra.mxu0 %vm7286_vm0, %v1886_v23  ;;  %3913 = vmatmul.msk.bf16.gmra.mxu1 %vm7287_vm2, %v1886_v23  ;;  %vm7306_vm2 = vmmov %vm7286_vm0 }
 0x6e3   : > { %v2142_v13 = vpop.trf.xlu1 }
 0x6e4   : > { %3945 = vmatmul.msk.bf16.gmra.mxu3 %vm7288_vm15, %v2142_v13  ;;  %3929 = vmatmul.msk.bf16.gmra.mxu2 %vm7289_vm5, %v2142_v13  ;;  %vm7307_vm15 = vmmov %vm7286_vm0 }
 0x6e5   : > { %v5616_v35 = vpop.trf.xlu0  ;;  %vm7308_vm5 = vmmov %vm7286_vm0 }
 0x6eb   : > { %v5618_v16 = vpop.trf.xlu1 }
 0x6ed   : > { %v1888_v36 = vpop.trf.xlu0 }
 0x6ee   : > { %3898 = vmatmul.msk.bf16.gmra.mxu0 %vm7290_vm12, %v1888_v36  ;;  %3914 = vmatmul.msk.bf16.gmra.mxu1 %vm7291_vm7, %v1888_v36  ;;  %vm7309_vm12 = vmmov %vm7286_vm0 }
 0x6ef   : > { %vm7310_vm7 = vmmov %vm7286_vm0 }
 0x6f3   : > { %v2144_v58 = vpop.trf.xlu1 }
 0x6f4   : > { %3946 = vmatmul.msk.bf16.gmra.mxu3 %vm7292_vm10, %v2144_v58  ;;  %3930 = vmatmul.msk.bf16.gmra.mxu2 %vm7293_vm8, %v2144_v58  ;;  %vm7312_vm10 = vmmov %vm7286_vm0 }
 0x6f5   : > { %v5626_v29 = vpop.trf.xlu0  ;;  %vm7313_vm8 = vmmov %vm7286_vm0 }
 0x6fb   : > { %v5628_v55 = vpop.trf.xlu1 }
 0x6fd   : > { %v1890_v19 = vpop.trf.xlu0 }
 0x6fe   : > { %3899 = vmatmul.msk.bf16.gmra.mxu0 %vm7296_vm11, %v1890_v19  ;;  %3915 = vmatmul.msk.bf16.gmra.mxu1 %vm7297_vm1, %v1890_v19  ;;  %vm5673_vm11 = vcmp.eq.s32.totalorder %v2417_v33, %v5670_v56  ;;  %vm5679_vm1 = vcmp.eq.s32.totalorder %v2419_v6, %v5670_v56  ;;  %v2391_v6 = vadd.s32 48, %v5661_v54 }
 0x703   : > { %v2146_v9 = vpop.trf.xlu1 }
 0x704   : > { %3947 = vmatmul.msk.bf16.gmra.mxu3 %vm7298_vm3, %v2146_v9  ;;  %3931 = vmatmul.msk.bf16.gmra.mxu2 %vm7299_vm4, %v2146_v9  ;;  %vm7318_vm3 = vmmov %vm7286_vm0 }
 0x705   : > { %v5638_v30 = vpop.trf.xlu0  ;;  %vm7319_vm4 = vmmov %vm7286_vm0 }
 0x70b   : > { %v5642_v27 = vpop.trf.xlu1 }
 0x70d   : > { %v1892_v52 = vpop.trf.xlu0 }
 0x70e   : > { %3900 = vmatmul.msk.bf16.gmra.mxu0 %vm7302_vm6, %v1892_v52  ;;  %3916 = vmatmul.msk.bf16.gmra.mxu1 %vm7303_vm9, %v1892_v52  ;;  %vm5699_vm6 = vcmp.eq.s32.totalorder %v2418_v12, %v5670_v56  ;;  %v2390_v52 = vadd.s32 40, %v5661_v54 }
 0x713   : > { %v2148_v15 = vpop.trf.xlu1 }
 0x714   : > { %3948 = vmatmul.msk.bf16.gmra.mxu3 %vm7304_vm14, %v2148_v15  ;;  %3932 = vmatmul.msk.bf16.gmra.mxu2 %vm7305_vm13, %v2148_v15  ;;  %vm7324_vm14 = vmmov %vm7286_vm0 }
 0x715   : > { %v5648_v4 = vpop.trf.xlu0  ;;  %vm7325_vm13 = vmmov %vm7286_vm0 }
 0x71b   : > { %v5650_v20 = vpop.trf.xlu1 }
 0x71d   : > { %v1894_v34 = vpop.trf.xlu0 }
 0x71e   : > { %3901 = vmatmul.msk.bf16.gmra.mxu0 %vm7286_vm0, %v1894_v34  ;;  %3917 = vmatmul.msk.bf16.gmra.mxu1 %vm7306_vm2, %v1894_v34  ;;  %vm5734_vm0 = vcmp.eq.s32.totalorder %v2421_v43, %v5670_v56 }
 0x723   : > { %v2150_v45 = vpop.trf.xlu1 }
 0x724   : > { %3949 = vmatmul.msk.bf16.gmra.mxu3 %vm7307_vm15, %v2150_v45  ;;  %3933 = vmatmul.msk.bf16.gmra.mxu2 %vm7308_vm5, %v2150_v45  ;;  %vm7328_vm15 = vmmov %vm7306_vm2 }
 0x72b   : > { %v1959_v49 = vpop.f32.mrf.mxu0  ;;  %v2048_v5 = vpop.f32.mrf.mxu1 }
 0x72c   : > { %v5686_v62 = vsel %vm5673_vm11, %v1959_v49, -1e+30  ;;  %v2422_v49 = vshrl.u32 %v2390_v52, 4  ;;  %v2151_v10 = vpop.trf.xlu1 }
 0x72e   : > { %3902 = vmatmul.msk.bf16.gmra.mxu0 %vm7309_vm12, %v5592_v51  ;;  %3918 = vmatmul.msk.bf16.gmra.mxu1 %vm7310_vm7, %v5592_v51  ;;  %v2420_v51 = vshrl.u32 %v2388_v44, 4  ;;  %vm5761_vm5 = vcmp.eq.s32.totalorder %v2422_v49, %v5670_v56  ;;  %vm7331_vm12 = vmmov %vm7306_vm2  ;;  %v2423_v44 = vshrl.u32 %v2391_v6, 4 }
 0x72f   : > { %vm7332_vm7 = vmmov %vm7306_vm2 }
 0x730   : > { %vm5704_vm9 = vcmp.eq.s32.totalorder %v2420_v51, %v5670_v56 }
 0x733   : > { %v1961_v53 = vpop.f32.mrf.mxu0  ;;  %v2050_v1 = vpop.f32.mrf.mxu1 }
 0x734   : > { %3950 = vmatmul.msk.bf16.gmra.mxu3 %vm7312_vm10, %v5594_v32  ;;  %3934 = vmatmul.msk.bf16.gmra.mxu2 %vm7313_vm8, %v5594_v32  ;;  %vm5783_vm10 = vcmp.eq.s32.totalorder %v2423_v44, %v5670_v56  ;;  %vm7335_vm8 = vmmov %vm7306_vm2 }
 0x737   : > { %v2304_v50 = vpop.f32.mrf.mxu3  ;;  %v2215_v37 = vpop.f32.mrf.mxu2 }
 0x738   : > { %v5725_v58 = vsel %vm5673_vm11, %v2215_v37, -1e+30 }
 0x73b   : > { %v1964_v11 = vpop.f32.mrf.mxu0  ;;  %v2053_v8 = vpop.f32.mrf.mxu1 }
 0x73c   : > { %v5690_v0 = vsel %vm5679_vm1, %v1964_v11, -1e+30 }
 0x73d   : > { %v2579_v60 = vmax.f32 %v5686_v62, %v5690_v0 }
 0x73e   : > { %3903 = vmatmul.msk.bf16.gmra.mxu0 %vm7318_vm3, %v5600_v59  ;;  %3919 = vmatmul.msk.bf16.gmra.mxu1 %vm7319_vm4, %v5600_v59  ;;  %v5715_v59 = vsel %vm5699_vm6, %v1961_v53, -1e+30  ;;  %vm7336_vm3 = vmmov %vm7306_vm2 }
 0x73f   : > { %v2306_v32 = vpop.f32.mrf.mxu3  ;;  %v2217_v63 = vpop.f32.mrf.mxu2  ;;  %vm7337_vm4 = vmmov %vm7306_vm2 }
 0x740   : > { %v5752_v14 = vsel %vm5699_vm6, %v2217_v63, -1e+30 }
 0x743   : > { %v1966_v40 = vpop.f32.mrf.mxu0  ;;  %v2055_v23 = vpop.f32.mrf.mxu1 }
 0x744   : > { %3951 = vmatmul.msk.bf16.gmra.mxu3 %vm7324_vm14, %v5602_v42  ;;  %3935 = vmatmul.msk.bf16.gmra.mxu2 %vm7325_vm13, %v5602_v42  ;;  %v5719_v13 = vsel %vm5704_vm9, %v1966_v40, -1e+30  ;;  %vm7338_vm14 = vmmov %vm7306_vm2 }
 0x745   : > { %v2580_v36 = vmax.f32 %v5715_v59, %v5719_v13 }
 0x747   : > { %v2309_v19 = vpop.f32.mrf.mxu3  ;;  %v2220_v9 = vpop.f32.mrf.mxu2 }
 0x748   : > { %v5729_v42 = vsel %vm5679_vm1, %v2220_v9, -1e+30 }
 0x749   : > { %v3113_v41 = vmax.f32 %v5725_v58, %v5729_v42 }
 0x74b   : > { %v1969_v22 = vpop.f32.mrf.mxu0  ;;  %v2058_v15 = vpop.f32.mrf.mxu1 }
 0x74c   : > { %v5741_v34 = vsel %vm5734_vm0, %v1969_v22, -1e+30 }
 0x74d   : > { %v5744_v45 = vmax.f32 %v2579_v60, %v5741_v34 }
 0x74e   : > { %3904 = vmatmul.msk.bf16.gmra.mxu0 %vm7306_vm2, %v5608_v48  ;;  %3920 = vmatmul.msk.bf16.gmra.mxu1 %vm7328_vm15, %v5608_v48  ;;  %vm7341_vm15 = vmmov %vm7306_vm2 }
 0x74f   : > { %v2311_v5 = vpop.f32.mrf.mxu3  ;;  %v2222_v47 = vpop.f32.mrf.mxu2 }
 0x750   : > { %v5756_v53 = vsel %vm5704_vm9, %v2222_v47, -1e+30 }
 0x751   : > { %v3114_v1 = vmax.f32 %v5752_v14, %v5756_v53 }
 0x753   : > { %v1971_v48 = vpop.f32.mrf.mxu0  ;;  %v2060_v50 = vpop.f32.mrf.mxu1 }
 0x754   : > { %3952 = vmatmul.msk.bf16.gmra.mxu3 %vm7331_vm12, %v5610_v57  ;;  %3936 = vmatmul.msk.bf16.gmra.mxu2 %vm7332_vm7, %v5610_v57  ;;  %v5772_v37 = vsel %vm5761_vm5, %v1971_v48, -1e+30  ;;  %vm7342_vm12 = vmmov %vm7306_vm2 }
 0x755   : > { %v5775_v39 = vmax.f32 %v2580_v36, %v5772_v37  ;;  %vm7343_vm7 = vmmov %vm7306_vm2 }
 0x757   : > { %v2314_v11 = vpop.f32.mrf.mxu3  ;;  %v2225_v8 = vpop.f32.mrf.mxu2 }
 0x758   : > { %v5779_v12 = vsel %vm5734_vm0, %v2225_v8, -1e+30 }
 0x759   : > { %v3115_v60 = vmax.f32 %v3113_v41, %v5779_v12  ;;  %v2392_v41 = vadd.s32 56, %v5661_v54 }
 0x75b   : > { %v1974_v57 = vpop.f32.mrf.mxu0  ;;  %v2063_v32 = vpop.f32.mrf.mxu1  ;;  %v2424_v49 = vshrl.u32 %v2392_v41, 4 }
 0x75c   : > { %v5789_v63 = vsel %vm5783_vm10, %v1974_v57, -1e+30 }
 0x75d   : > { %vm5817_vm13 = vcmp.eq.s32.totalorder %v2424_v49, %v5670_v56 }
 0x75e   : > { %3905 = vmatmul.msk.bf16.gmra.mxu0 %vm7335_vm8, %v5616_v35  ;;  %3921 = vmatmul.msk.bf16.gmra.mxu1 %vm7336_vm3, %v5616_v35  ;;  %vm7346_vm3 = vmmov %vm7306_vm2 }
 0x75f   : > { %v2316_v40 = vpop.f32.mrf.mxu3  ;;  %v2227_v23 = vpop.f32.mrf.mxu2 }
 0x760   : > { %v5799_v36 = vsel %vm5761_vm5, %v2227_v23, -1e+30 }
 0x761   : > { %v5802_v43 = vmax.f32 %v3114_v1, %v5799_v36  ;;  %v7339_v1 = vmov 0 }
 0x762   : > { %v7340_v1 = vsel %vm5817_vm13, 4294967295, %v7339_v1 }
 0x763   : > { %v5806_v19 = vpop.f32.mrf.mxu0  ;;  %v2065_v9 = vpop.f32.mrf.mxu1 }
 0x764   : > { %3953 = vmatmul.msk.bf16.gmra.mxu3 %vm7337_vm4, %v5618_v16  ;;  %3937 = vmatmul.msk.bf16.gmra.mxu2 %vm7338_vm14, %v5618_v16  ;;  %v2393_v16 = vadd.s32 64, %v5661_v54  ;;  %vm7347_vm4 = vmmov %vm7306_vm2 }
 0x765   : > { %vm7348_vm14 = vmmov %vm7306_vm2 }
 0x766   : > { %v2425_v11 = vshrl.u32 %v2393_v16, 4  ;;  %v2395_v16 = vadd.s32 80, %v5661_v54 }
 0x767   : > { %v2319_v35 = vpop.f32.mrf.mxu3  ;;  %v2230_v52 = vpop.f32.mrf.mxu2 }
 0x768   : > { %v5813_v22 = vsel %vm5783_vm10, %v2230_v52, -1e+30  ;;  %vm5837_vm8 = vcmp.eq.s32.totalorder %v2425_v11, %v5670_v56  ;;  %v2397_v11 = vadd.s32 96, %v5661_v54 }
 0x769   : > { %v3117_v15 = vmax.f32 %v3115_v60, %v5813_v22 }
 0x76b   : > { %v1979_v5 = vpop.f32.mrf.mxu0  ;;  %v2068_v47 = vpop.f32.mrf.mxu1 }
 0x76e   : > { %3906 = vmatmul.msk.bf16.gmra.mxu0 %vm7306_vm2, %v5626_v29  ;;  %3922 = vmatmul.msk.bf16.gmra.mxu1 %vm7341_vm15, %v5626_v29  ;;  %v7344_v29 = vmov 0  ;;  %vm7349_vm15 = vmmov %vm7306_vm2 }
 0x76f   : > { %v2321_v6 = vpop.f32.mrf.mxu3  ;;  %v2232_v48 = vpop.f32.mrf.mxu2  ;;  %v7345_v29 = vsel %vm5837_vm8, 4294967295, %v7344_v29 }
 0x770   : > { %v5828_v50 = vsel %vm5817_vm13, %v2232_v48, -1e+30 }
 0x773   : > { %v1981_v8 = vpop.f32.mrf.mxu0  ;;  %v2070_v60 = vpop.f32.mrf.mxu1 }
 0x774   : > { %3954 = vmatmul.msk.bf16.gmra.mxu3 %vm7342_vm12, %v5628_v55  ;;  %3938 = vmatmul.msk.bf16.gmra.mxu2 %vm7343_vm7, %v5628_v55  ;;  %vm7350_vm12 = vmmov %vm7306_vm2 }
 0x777   : > { %v2324_v57 = vpop.f32.mrf.mxu3  ;;  %v2235_v32 = vpop.f32.mrf.mxu2 }
 0x778   : > { %v5843_v40 = vsel %vm5837_vm8, %v2235_v32, -1e+30  ;;  %v2427_v57 = vshrl.u32 %v2395_v16, 4  ;;  %v2429_v32 = vshrl.u32 %v2397_v11, 4  ;;  %v5880_v16 = vsel %vm5837_vm8, %v1979_v5, -1e+30 }
 0x779   : > { %v5846_v23 = vmax.f32 %v3117_v15, %v5843_v40  ;;  %v7356_v11 = vmov 0 }
 0x77a   : > { %vm5869_vm7 = vcmp.eq.s32.totalorder %v2427_v57, %v5670_v56 }
 0x77b   : > { %v1984_v9 = vpop.f32.mrf.mxu0  ;;  %v2073_v41 = vpop.f32.mrf.mxu1 }
 0x77c   : > { %v2399_v41 = vadd.s32 112, %v5661_v54  ;;  %v5890_v44 = vsel %vm5869_vm7, %v1984_v9, -1e+30 }
 0x77e   : > { %3907 = vmatmul.msk.bf16.gmra.mxu0 %vm7346_vm3, %v5638_v30  ;;  %3923 = vmatmul.msk.bf16.gmra.mxu1 %vm7347_vm4, %v5638_v30  ;;  %vm7354_vm3 = vmmov %vm7306_vm2  ;;  %v2431_v57 = vshrl.u32 %v2399_v41, 4 }
 0x77f   : > { %v2326_v35 = vpop.f32.mrf.mxu3  ;;  %v5852_v55 = vpop.f32.mrf.mxu2  ;;  %vm7355_vm4 = vmmov %vm7306_vm2 }
 0x780   : > { %v7351_v35 = vmov 0  ;;  %vm7371_vm8 = vmmov %vm7355_vm4 }
 0x781   : > { %v7352_v35 = vsel %vm5869_vm7, 4294967295, %v7351_v35 }
 0x782   : > { %7353 = vst [vmem:[#allocation15_spill] sm:$0xff] %v7352_v35 }
 0x783   : > { %v1986_v52 = vpop.f32.mrf.mxu0  ;;  %v2075_v49 = vpop.f32.mrf.mxu1 }
 0x784   : > { %3955 = vmatmul.msk.bf16.gmra.mxu3 %vm7348_vm14, %v5642_v27  ;;  %3939 = vmatmul.msk.bf16.gmra.mxu2 %vm7306_vm2, %v5642_v27  ;;  %v2394_v27 = vadd.s32 72, %v5661_v54  ;;  %v2396_v49 = vadd.s32 88, %v5661_v54  ;;  %vm5883_vm14 = vcmp.eq.s32.totalorder %v2429_v32, %v5670_v56 }
 0x785   : > { %v7357_v11 = vsel %vm5883_vm14, 4294967295, %v7356_v11 }
 0x786   : > { %7358 = vst [vmem:[#allocation11_spill] sm:$0xff] %v7357_v11 }
 0x787   : > { %v2329_v15 = vpop.f32.mrf.mxu3  ;;  %v2240_v47 = vpop.f32.mrf.mxu2 }
 0x78b   : > { %v1989_v6 = vpop.f32.mrf.mxu0  ;;  %v2078_v48 = vpop.f32.mrf.mxu1 }
 0x78c   : > { %v2426_v48 = vshrl.u32 %v2394_v27, 4  ;;  %v2428_v27 = vshrl.u32 %v2396_v49, 4  ;;  %v5903_v41 = vsel %vm5883_vm14, %v1989_v6, -1e+30  ;;  %v5915_v49 = vsel %vm5817_vm13, %v5806_v19, -1e+30  ;;  %vm7377_vm13 = vmmov %vm7371_vm8 }
 0x78d   : > { %v7365_v6 = vmov 0  ;;  %v2584_v19 = vmax.f32 %v5775_v39, %v5915_v49 }
 0x78e   : > { %3908 = vmatmul.msk.bf16.gmra.mxu0 %vm7349_vm15, %v5648_v4  ;;  %3924 = vmatmul.msk.bf16.gmra.mxu1 %vm7350_vm12, %v5648_v4  ;;  %vm5897_vm2 = vcmp.eq.s32.totalorder %v2426_v48, %v5670_v56  ;;  %vm5907_vm15 = vcmp.eq.s32.totalorder %v2431_v57, %v5670_v56  ;;  %v1895_v48 = vpop.trf.xlu0  ;;  %vm5918_vm12 = vcmp.eq.s32.totalorder %v2428_v27, %v5670_v56  ;;  %v7368_v27 = vmov 0 }
 0x78f   : > { %v2331_v60 = vpop.f32.mrf.mxu3  ;;  %v5864_v30 = vpop.f32.mrf.mxu2  ;;  %v7366_v6 = vsel %vm5918_vm12, 4294967295, %v7365_v6 }
 0x790   : > { %v2398_v60 = vadd.s32 104, %v5661_v54  ;;  %7367 = vst [vmem:[#allocation6_spill] sm:$0xff] %v7366_v6 }
 0x792   : > { %v2430_v18 = vshrl.u32 %v2398_v60, 4 }
 0x793   : > { %v1991_v15 = vpop.f32.mrf.mxu0  ;;  %v2080_v4 = vpop.f32.mrf.mxu1 }
 0x794   : > { %3956 = vmatmul.msk.bf16.gmra.mxu3 %vm7354_vm3, %v5650_v20  ;;  %3940 = vmatmul.msk.bf16.gmra.mxu2 %vm7355_vm4, %v5650_v20  ;;  %v7359_v20 = vmax.f32 %v5744_v45, %v5789_v63  ;;  %v2400_v45 = vadd.s32 120, %v5661_v54  ;;  %vm5934_vm3 = vcmp.eq.s32.totalorder %v2430_v18, %v5670_v56 }
 0x795   : > { %v7369_v27 = vsel %vm5934_vm3, 4294967295, %v7368_v27  ;;  %v5948_v18 = vsel %vm5934_vm3, %v1991_v15, -1e+30 }
 0x796   : > { %v2585_v5 = vmax.f32 %v7359_v20, %v5880_v16  ;;  %7370 = vst [vmem:[#allocation21_spill] sm:$0xff] %v7369_v27  ;;  %v2432_v26 = vshrl.u32 %v2400_v45, 4 }
 0x797   : > { %v2334_v4 = vpop.f32.mrf.mxu3  ;;  %v2245_v61 = vpop.f32.mrf.mxu2 }
 0x798   : > { %v2587_v9 = vmax.f32 %v2585_v5, %v5890_v44  ;;  %v7362_v4 = vmov 0  ;;  %v5925_v5 = vsel %vm5897_vm2, %v1981_v8, -1e+30 }
 0x799   : > { %v7363_v4 = vsel %vm5907_vm15, 4294967295, %v7362_v4  ;;  %v2586_v39 = vmax.f32 %v2584_v19, %v5925_v5 }
 0x79a   : > { %7364 = vst [vmem:[#allocation7_spill] sm:$0xff] %v7363_v4  ;;  %v2589_v60 = vmax.f32 %v2587_v9, %v5903_v41 }
 0x79b   : > { %v1994_v20 = vpop.f32.mrf.mxu0  ;;  %v2083_v57 = vpop.f32.mrf.mxu1 }
 0x79c   : > { %v5929_v25 = vsel %vm5907_vm15, %v1994_v20, -1e+30  ;;  %v5941_v57 = vsel %vm5918_vm12, %v1986_v52, -1e+30  ;;  %v5953_v52 = vsel %vm5869_vm7, %v2240_v47, -1e+30 }
 0x79d   : > { %v2591_v9 = vmax.f32 %v2589_v60, %v5929_v25  ;;  %v2588_v45 = vmax.f32 %v2586_v39, %v5941_v57  ;;  %7372 = vst [vmem:[#allocation20_spill] sm:$0xff] %v5953_v52  ;;  %v5964_v39 = vsel %vm5883_vm14, %v2245_v61, -1e+30  ;;  %v5978_v61 = vsel %vm5897_vm2, %v5852_v55, -1e+30 }
 0x79e   : > { %3909 = vmatmul.msk.bf16.gmra.mxu0 %vm7355_vm4, %v1895_v48  ;;  %3925 = vmatmul.msk.bf16.gmra.mxu1 %vm7371_vm8, %v1895_v48  ;;  %vm5956_vm4 = vcmp.eq.s32.totalorder %v2432_v26, %v5670_v56  ;;  %7376 = vst [vmem:[#allocation8_spill] sm:$0xff] %v5964_v39 }
 0x79f   : > { %v2336_v8 = vpop.f32.mrf.mxu3  ;;  %v2247_v20 = vpop.f32.mrf.mxu2  ;;  %v2593_v2 = vmax.f32 %v2591_v9, -1e+30  ;;  %v2590_v48 = vmax.f32 %v2588_v45, %v5948_v18 }
 0x7a0   : > { %v7373_v8 = vmov 0 }
 0x7a1   : > { %v2595_v60 = vmax.f32 %v2593_v2, -1e+30  ;;  %v7374_v8 = vsel %vm5956_vm4, 4294967295, %v7373_v8  ;;  %v3121_v2 = vmax.f32 %v5846_v23, %v5953_v52 }
 0x7a2   : > { %7375 = vst [vmem:[#allocation16_spill] sm:$0xff] %v7374_v8 }
 0x7a3   : > { %v2597_v19 = vmax.f32 %v2595_v60, -1e+30  ;;  %v1996_v15 = vpop.f32.mrf.mxu0  ;;  %v2085_v9 = vpop.f32.mrf.mxu1  ;;  %v3123_v60 = vmax.f32 %v3121_v2, %v5964_v39  ;;  %v7380_v2 = vmax.f32 %v5802_v43, %v5828_v50 }
 0x7a4   : > { %3957 = vmatmul.msk.bf16.gmra.mxu3 %vm7371_vm8, %v2151_v10  ;;  %3941 = vmatmul.msk.bf16.gmra.mxu2 %vm7377_vm13, %v2151_v10  ;;  %v5971_v26 = vsel %vm5956_vm4, %v1996_v15, -1e+30 }
 0x7a5   : > { %v2599_v56 = vmax.f32 %v2597_v19, -1e+30  ;;  %v2592_v47 = vmax.f32 %v2590_v48, %v5971_v26  ;;  %v5988_v48 = vsel %vm5918_vm12, %v5864_v30, -1e+30  ;;  %v3120_v55 = vmax.f32 %v7380_v2, %v5978_v61 }
 0x7a6   : > { %7379 = vst [vmem:[#allocation22_spill] sm:$0xff] %v5988_v48 }
 0x7a7   : > { %v2339_v45 = vpop.f32.mrf.mxu3  ;;  %v2250_v9 = vpop.f32.mrf.mxu2  ;;  %v2594_v10 = vmax.f32 %v2592_v47, -1e+30  ;;  %v2601_v24 = vmax.f32 %v2599_v56, -1e+30  ;;  %v3122_v56 = vmax.f32 %v3120_v55, %v5988_v48 }
 0x7a8   : > { %v5982_v23 = vsel %vm5907_vm15, %v2250_v9, -1e+30  ;;  %v5996_v9 = vsel %vm5934_vm3, %v2247_v20, -1e+30  ;;  %v6006_v20 = vshrl.u32 %v7202_v46, 4  ;;  %v7383_v46 = vmov 0 }
 0x7a9   : > { %7378 = vst [vmem:[#allocation5_spill] sm:$0xff] %v5982_v23  ;;  %v3125_v15 = vmax.f32 %v3123_v60, %v5982_v23  ;;  %v2596_v19 = vmax.f32 %v2594_v10, -1e+30  ;;  %v2603_v23 = vmax.f32 %v2601_v24, -1e+30  ;;  %v2401_v10 = vadd.s32 128, %v5661_v54 }
 0x7aa   : > { %7381 = vst [vmem:[#allocation23_spill] sm:$0xff] %v5996_v9  ;;  %v3124_v39 = vmax.f32 %v3122_v56, %v5996_v9 }
 0x7ab   : > { %v3127_v45 = vmax.f32 %v3125_v15, -1e+30  ;;  %v2598_v47 = vmax.f32 %v2596_v19, -1e+30  ;;  %v1999_v21 = vpop.f32.mrf.mxu0  ;;  %v2088_v17 = vpop.f32.mrf.mxu1  ;;  %v2605_v24 = vmax.f32 %v2603_v23, -1e+30 }
 0x7ad   : > { %v3129_v60 = vmax.f32 %v3127_v45, -1e+30  ;;  %v2600_v30 = vmax.f32 %v2598_v47, -1e+30  ;;  %v2433_v47 = vshrl.u32 %v2401_v10, 4 }
 0x7ae   : > { %v2607_v8 = vmax.f32 %v2605_v24, -1e+30  ;;  %v7387_v24 = vmov 0 }
 0x7af   : > { %v2341_v4 = vpop.f32.mrf.mxu3  ;;  %v3131_v43 = vmax.f32 %v3129_v60, -1e+30  ;;  %v2252_v2 = vpop.f32.mrf.mxu2  ;;  %v2602_v15 = vmax.f32 %v2600_v30, -1e+30  ;;  %vm6011_vm13 = vcmp.eq.s32.totalorder %v2433_v47, %v6006_v20 }
 0x7b0   : > { %v6003_v21 = vsel %vm5956_vm4, %v2252_v2, -1e+30  ;;  %v2403_v4 = vadd.s32 144, %v5661_v54  ;;  %v7384_v46 = vsel %vm6011_vm13, 4294967295, %v7383_v46 }
 0x7b1   : > { %7382 = vst [vmem:[#allocation24_spill] sm:$0xff] %v6003_v21  ;;  %v3133_v19 = vmax.f32 %v3131_v43, -1e+30  ;;  %v3126_v55 = vmax.f32 %v3124_v39, %v6003_v21  ;;  %v2604_v45 = vmax.f32 %v2602_v15, -1e+30 }
 0x7b2   : > { %7385 = vst [vmem:[#allocation25_spill] sm:$0xff] %v7384_v46  ;;  %v2435_v43 = vshrl.u32 %v2403_v4, 4 }
 0x7b3   : > { %v3128_v27 = vmax.f32 %v3126_v55, -1e+30  ;;  %v2606_v56 = vmax.f32 %v2604_v45, -1e+30  ;;  %v2001_v60 = vpop.f32.mrf.mxu0  ;;  %v2090_v9 = vpop.f32.mrf.mxu1  ;;  %v3135_v30 = vmax.f32 %v3133_v19, -1e+30 }
 0x7b4   : > { %v6017_v55 = vsel %vm6011_vm13, %v2088_v17, -1e+30  ;;  %vm6021_vm8 = vcmp.eq.s32.totalorder %v2435_v43, %v6006_v20 }
 0x7b5   : > { %v3130_v11 = vmax.f32 %v3128_v27, -1e+30  ;;  %v2608_v2 = vmax.f32 %v2606_v56, -1e+30  ;;  %v3137_v21 = vmax.f32 %v3135_v30, -1e+30 }
 0x7b6   : > { %7386 = vst [vmem:[#allocation26_spill] sm:$0xff] %v6017_v55  ;;  %v2402_v27 = vadd.s32 136, %v5661_v54  ;;  %v7388_v24 = vsel %vm6021_vm8, 4294967295, %v7387_v24 }
 0x7b7   : > { %v2344_v39 = vpop.f32.mrf.mxu3  ;;  %v3132_v23 = vmax.f32 %v3130_v11, -1e+30  ;;  %v2255_v15 = vpop.f32.mrf.mxu2  ;;  %v2609_v10 = vmax.f32 %v2607_v8, %v2608_v2  ;;  %7389 = vst [vmem:[#allocation27_spill] sm:$0xff] %v7388_v24  ;;  %v2630_v11 = vmax.f32 %v6017_v55, -1e+30  ;;  %v2404_v2 = vadd.s32 152, %v5661_v54 }
 0x7b8   : > { %v3139_v56 = vmax.f32 %v3137_v21, -1e+30  ;;  %v2434_v15 = vshrl.u32 %v2402_v27, 4  ;;  %v7435_v33 = vld [vmem:[#allocation24_spill] sm:$0xff] }
 0x7b9   : > { %v3134_v45 = vmax.f32 %v3132_v23, -1e+30  ;;  %v2610_v19 = vrot.slane %v2609_v10, 4 }
 0x7ba   : > { %v3141_v55 = vmax.f32 %v3139_v56, -1e+30  ;;  %vm6035_vm4 = vcmp.eq.s32.totalorder %v2434_v15, %v6006_v20 }
 0x7bb   : > { %v3136_v47 = vmax.f32 %v3134_v45, -1e+30  ;;  %v2611_v4 = vmax.f32 %v2609_v10, %v2610_v19  ;;  %v2004_v8 = vpop.f32.mrf.mxu0  ;;  %v2093_v60 = vpop.f32.mrf.mxu1 }
 0x7bc   : > { %v6028_v17 = vsel %vm6021_vm8, %v2093_v60, -1e+30  ;;  %v2436_v8 = vshrl.u32 %v2404_v2, 4  ;;  %v7391_v60 = vmov 0 }
 0x7bd   : > { %7390 = vst [vmem:[#allocation28_spill] sm:$0xff] %v6028_v17  ;;  %v3138_v30 = vmax.f32 %v3136_v47, -1e+30  ;;  %v2612_v23 = vrot.slane %v2611_v4, 2  ;;  %v6032_v43 = vmax.f32 %v2630_v11, %v6028_v17  ;;  %v7392_v60 = vsel %vm6035_vm4, 4294967295, %v7391_v60 }
 0x7be   : > { %7393 = vst [vmem:[#allocation29_spill] sm:$0xff] %v7392_v60  ;;  %v6043_v11 = vsel %vm6035_vm4, %v2090_v9, -1e+30  ;;  %vm6046_vm15 = vcmp.eq.s32.totalorder %v2436_v8, %v6006_v20 }
 0x7bf   : > { %v2346_v48 = vpop.f32.mrf.mxu3  ;;  %v3140_v45 = vmax.f32 %v3138_v30, -1e+30  ;;  %v2257_v10 = vpop.f32.mrf.mxu2  ;;  %v2613_v19 = vmax.f32 %v2611_v4, %v2612_v23  ;;  %7394 = vst [vmem:[#allocation30_spill] sm:$0xff] %v6043_v11  ;;  %v7395_v4 = vmov 0 }
 0x7c0   : > { %v7396_v4 = vsel %vm6046_vm15, 4294967295, %v7395_v4 }
 0x7c1   : > { %v3142_v21 = vmax.f32 %v3140_v45, -1e+30  ;;  %v2614_v6 = vrot.slane %v2613_v19, 1  ;;  %7397 = vst [vmem:[#allocation31_spill] sm:$0xff] %v7396_v4 }
 0x7c3   : > { %v3143_v47 = vmax.f32 %v3141_v55, %v3142_v21  ;;  %v6039_v52 = vmax.f32 %v2613_v19, %v2614_v6  ;;  %v2006_v27 = vpop.f32.mrf.mxu0  ;;  %v2095_v35 = vpop.f32.mrf.mxu1 }
 0x7c5   : > { %v2653_v56 = vsub.f32 %v5686_v62, %v6039_v52  ;;  %v2655_v30 = vsub.f32 %v5715_v59, %v6039_v52  ;;  %v2657_v6 = vsub.f32 %v5690_v0, %v6039_v52  ;;  %v2659_v55 = vsub.f32 %v5719_v13, %v6039_v52 }
 0x7c6   : > { %v2661_v9 = vsub.f32 %v5741_v34, %v6039_v52  ;;  %v2663_v2 = vsub.f32 %v5772_v37, %v6039_v52  ;;  %v2665_v23 = vsub.f32 %v5789_v63, %v6039_v52  ;;  %v3144_v15 = vrot.slane %v3143_v47, 4 }
 0x7c7   : > { %v2349_v62 = vpop.f32.mrf.mxu3  ;;  %v2260_v45 = vpop.f32.mrf.mxu2  ;;  %v6066_v59 = vsel %vm6011_vm13, %v2344_v39, -1e+30  ;;  %v6070_v0 = vsel %vm6046_vm15, %v2095_v35, -1e+30  ;;  %v2631_v13 = vmax.f32 %v6043_v11, -1e+30  ;;  %v2667_v35 = vsub.f32 %v5915_v49, %v6039_v52 }
 0x7c8   : > { %7398 = vst [vmem:[#allocation32_spill] sm:$0xff] %v6066_v59  ;;  %v6075_v34 = vsel %vm6035_vm4, %v2346_v48, -1e+30  ;;  %v2717_v37 = vmul.f32 1.442695, %v2653_v56  ;;  %v3145_v8 = vmax.f32 %v3143_v47, %v3144_v15  ;;  %v2405_v48 = vadd.s32 160, %v5661_v54 }
 0x7c9   : > { %7399 = vst [vmem:[#allocation33_spill] sm:$0xff] %v6070_v0  ;;  %v2721_v10 = vmul.f32 1.442695, %v2655_v30  ;;  %v2725_v63 = vmul.f32 1.442695, %v2657_v6  ;;  %v6079_v39 = vmax.f32 %v2631_v13, %v6070_v0  ;;  %v2669_v56 = vsub.f32 %v5880_v16, %v6039_v52 }
 0x7ca   : > { %7400 = vst [vmem:[#allocation34_spill] sm:$0xff] %v6075_v34  ;;  %v2729_v19 = vmul.f32 1.442695, %v2659_v55  ;;  %v3164_v21 = vmax.f32 %v6066_v59, -1e+30  ;;  %4115 = vpow2.f32 %v2717_v37  ;;  %v2671_v30 = vsub.f32 %v5925_v5, %v6039_v52 }
 0x7cb   : > { %v3165_v27 = vmax.f32 %v6075_v34, -1e+30  ;;  %v2009_v45 = vpop.f32.mrf.mxu0  ;;  %v2098_v60 = vpop.f32.mrf.mxu1  ;;  %4117 = vpow2.f32 %v2721_v10  ;;  %v2733_v47 = vmul.f32 1.442695, %v2661_v9  ;;  %v2673_v6 = vsub.f32 %v5890_v44, %v6039_v52  ;;  %v7413_v34 = vld [vmem:[#allocation20_spill] sm:$0xff] }
 0x7cc   : > { %v2675_v49 = vsub.f32 %v5941_v57, %v6039_v52  ;;  %v2677_v55 = vsub.f32 %v5903_v41, %v6039_v52  ;;  %4119 = vpow2.f32 %v2725_v63  ;;  %v2737_v15 = vmul.f32 1.442695, %v2663_v2 }
 0x7cd   : > { %4121 = vpow2.f32 %v2729_v19  ;;  %v3146_v13 = vrot.slane %v3145_v8, 2  ;;  %v6097_v16 = vsel %vm6021_vm8, %v2349_v62, -1e+30  ;;  %v2679_v9 = vsub.f32 %v5948_v18, %v6039_v52 }
 0x7ce   : > { %7401 = vst [vmem:[#allocation35_spill] sm:$0xff] %v6097_v16  ;;  %v6102_v44 = vmax.f32 %v3164_v21, %v6097_v16  ;;  %v2437_v57 = vshrl.u32 %v2405_v48, 4  ;;  %4123 = vpow2.f32 %v2733_v47  ;;  %v2741_v2 = vmul.f32 1.442695, %v2665_v23 }
 0x7cf   : > { %v2351_v5 = vpop.f32.mrf.mxu3  ;;  %v2262_v37 = vpop.f32.mrf.mxu2  ;;  %v3147_v10 = vmax.f32 %v3145_v8, %v3146_v13  ;;  %v2681_v19 = vsub.f32 %v5929_v25, %v6039_v52  ;;  %v2683_v18 = vsub.f32 %v5971_v26, %v6039_v52  ;;  %v2745_v21 = vmul.f32 1.442695, %v2667_v35 }
 0x7d0   : > { %v6106_v41 = vsel %vm6046_vm15, %v2351_v5, -1e+30  ;;  %v4116_v62 = vpop.eup %4115  ;;  %vm6116_vm8 = vcmp.eq.s32.totalorder %v2437_v57, %v6006_v20  ;;  %v7403_v45 = vmov 0  ;;  %4125 = vpow2.f32 %v2737_v15 }
 0x7d1   : > { %7402 = vst [vmem:[#allocation36_spill] sm:$0xff] %v6106_v41  ;;  %v6109_v63 = vmax.f32 %v3165_v27, %v6106_v41  ;;  %v7404_v45 = vsel %vm6116_vm8, 4294967295, %v7403_v45  ;;  %v4118_v48 = vpop.eup %4117  ;;  %v6122_v23 = vsel %vm5673_vm11, %v4116_v62, 0.0  ;;  %v3148_v8 = vrot.slane %v3147_v10, 1 }
 0x7d2   : > { %7405 = vst [vmem:[#allocation37_spill] sm:$0xff] %v7404_v45  ;;  %v6126_v27 = vsel %vm6116_vm8, %v2098_v60, -1e+30  ;;  %v4120_v25 = vpop.eup %4119  ;;  %v2749_v47 = vmul.f32 1.442695, %v2669_v56  ;;  %v6130_v26 = vsel %vm5699_vm6, %v4118_v48, 0.0  ;;  %4127 = vpow2.f32 %v2741_v2 }
 0x7d3   : > { %7406 = vst [vmem:[#allocation38_spill] sm:$0xff] %v6126_v27  ;;  %v2753_v52 = vmul.f32 1.442695, %v2671_v30  ;;  %v2011_v15 = vpop.f32.mrf.mxu0  ;;  %v6134_v13 = vpop.f32.mrf.mxu1  ;;  %v2757_v37 = vmul.f32 1.442695, %v2673_v6  ;;  %v2909_v60 = vadd.f32 %v6130_v26, %v6122_v23  ;;  %v6138_v57 = vmax.f32 %v3147_v10, %v3148_v8  ;;  %v7426_v45 = vld [vmem:[#allocation8_spill] sm:$0xff] }
 0x7d4   : > { %v4122_v5 = vpop.eup %4121  ;;  %v2761_v56 = vmul.f32 1.442695, %v2675_v49  ;;  %v2765_v30 = vmul.f32 1.442695, %v2677_v55  ;;  %v6142_v62 = vsel %vm5679_vm1, %v4120_v25, 0.0  ;;  %4129 = vpow2.f32 %v2745_v21 }
 0x7d5   : > { %v4124_v48 = vpop.eup %4123  ;;  %v2769_v35 = vmul.f32 1.442695, %v2679_v9  ;;  %v2910_v15 = vadd.f32 %v2909_v60, %v6142_v62  ;;  %v3187_v2 = vsub.f32 %v5725_v58, %v6138_v57  ;;  %v2773_v16 = vmul.f32 1.442695, %v2681_v19 }
 0x7d6   : > { %v6151_v49 = vsel %vm5704_vm9, %v4122_v5, 0.0  ;;  %v3189_v55 = vsub.f32 %v5752_v14, %v6138_v57  ;;  %v3191_v10 = vsub.f32 %v5729_v42, %v6138_v57  ;;  %v4126_v9 = vpop.eup %4125  ;;  %4131 = vpow2.f32 %v2749_v47 }
 0x7d7   : > { %v6147_v6 = vpop.f32.mrf.mxu3  ;;  %v2265_v41 = vpop.f32.mrf.mxu2  ;;  %v2777_v21 = vmul.f32 1.442695, %v2683_v18  ;;  %v2911_v8 = vadd.f32 %v2910_v15, %v6151_v49  ;;  %v3193_v58 = vsub.f32 %v5756_v53, %v6138_v57  ;;  %4133 = vpow2.f32 %v2753_v52 }
 0x7d8   : > { %v6162_v41 = vsel %vm5734_vm0, %v4124_v48, 0.0  ;;  %v3195_v19 = vsub.f32 %v5779_v12, %v6138_v57  ;;  %v3197_v14 = vsub.f32 %v5799_v36, %v6138_v57  ;;  %v4128_v42 = vpop.eup %4127  ;;  %4135 = vpow2.f32 %v2757_v37 }
 0x7d9   : > { %v2912_v18 = vadd.f32 %v2911_v8, %v6162_v41  ;;  %v3199_v25 = vsub.f32 %v5813_v22, %v6138_v57  ;;  %v2406_v53 = vadd.s32 168, %v5661_v54  ;;  %4137 = vpow2.f32 %v2761_v56 }
 0x7da   : > { %v6174_v47 = vsel %vm5761_vm5, %v4126_v9, 0.0  ;;  %v3201_v12 = vsub.f32 %v5828_v50, %v6138_v57  ;;  %v4130_v37 = vpop.eup %4129  ;;  %4139 = vpow2.f32 %v2765_v30  ;;  %v6185_v60 = vsel %vm5783_vm10, %v4128_v42, 0.0 }
 0x7db   : > { %v2014_v52 = vpop.f32.mrf.mxu0  ;;  %v6180_v5 = vpop.f32.mrf.mxu1  ;;  %v2913_v22 = vadd.f32 %v2912_v18, %v6174_v47  ;;  %4141 = vpow2.f32 %v2769_v35  ;;  %v3251_v50 = vmul.f32 1.442695, %v3187_v2  ;;  %v2438_v15 = vshrl.u32 %v2406_v53, 4 }
 0x7dc   : > { %v4132_v56 = vpop.eup %4131  ;;  %4143 = vpow2.f32 %v2773_v16  ;;  %vm7407_vm15 = vnez %v7340_v1  ;;  %v3255_v35 = vmul.f32 1.442695, %v3189_v55  ;;  %v3259_v18 = vmul.f32 1.442695, %v3191_v10 }
 0x7dd   : > { %v2914_v48 = vadd.f32 %v2913_v22, %v6185_v60  ;;  %v4134_v52 = vpop.eup %4133  ;;  %4145 = vpow2.f32 %v2777_v21  ;;  %v6192_v30 = vsel %vm7407_vm15, %v4130_v37, 0.0  ;;  %v3263_v16 = vmul.f32 1.442695, %v3193_v58 }
 0x7de   : > { %v4136_v36 = vpop.eup %4135  ;;  %4147 = vpow2.f32 %v3251_v50  ;;  %v2407_v22 = vadd.s32 176, %v5661_v54  ;;  %vm7408_vm4 = vnez %v7345_v29  ;;  %v3267_v21 = vmul.f32 1.442695, %v3195_v19 }
 0x7df   : > { %v6188_v9 = vpop.f32.mrf.mxu3  ;;  %v2267_v8 = vpop.f32.mrf.mxu2  ;;  %v2915_v42 = vadd.f32 %v2914_v48, %v6192_v30  ;;  %v6198_v53 = vsel %vm7408_vm4, %v4132_v56, 0.0  ;;  %4149 = vpow2.f32 %v3255_v35  ;;  %vm6202_vm13 = vcmp.eq.s32.totalorder %v2438_v15, %v6006_v20 }
 0x7e0   : > { %v4138_v2 = vpop.eup %4137  ;;  %4151 = vpow2.f32 %v3259_v18  ;;  %v7409_v55 = vmov 0  ;;  %v6208_v58 = vsel %vm5897_vm2, %v4134_v52, 0.0  ;;  %v3205_v56 = vsub.f32 %v5978_v61, %v6138_v57 }
 0x7e1   : > { %v4140_v8 = vpop.eup %4139  ;;  %v2916_v37 = vadd.f32 %v2915_v42, %v6198_v53  ;;  %v7410_v55 = vsel %vm6202_vm13, 4294967295, %v7409_v55  ;;  %4153 = vpow2.f32 %v3263_v16  ;;  %v3271_v48 = vmul.f32 1.442695, %v3197_v14  ;;  %v7415_v14 = vld [vmem:[#allocation22_spill] sm:$0xff] }
 0x7e2   : > { %7411 = vst [vmem:[#allocation39_spill] sm:$0xff] %v7410_v55  ;;  %v4142_v10 = vpop.eup %4141  ;;  %v6216_v15 = vsel %vm5869_vm7, %v4136_v36, 0.0  ;;  %v3207_v4 = vsub.f32 %v7413_v34, %v6138_v57  ;;  %v2439_v52 = vshrl.u32 %v2407_v22, 4  ;;  %v6223_v61 = vsel %vm5918_vm12, %v4138_v2, 0.0 }
 0x7e3   : > { %v2016_v19 = vpop.f32.mrf.mxu0  ;;  %v6212_v50 = vpop.f32.mrf.mxu1  ;;  %v2917_v42 = vadd.f32 %v2916_v37, %v6208_v58  ;;  %v3209_v16 = vsub.f32 %v7415_v14, %v6138_v57  ;;  %4155 = vpow2.f32 %v3267_v21  ;;  %v3279_v0 = vmul.f32 1.442695, %v3201_v12 }
 0x7e4   : > { %v4144_v35 = vpop.eup %4143  ;;  %v3275_v19 = vmul.f32 1.442695, %v3199_v25  ;;  %v6231_v37 = vsel %vm6202_vm13, %v6134_v13, -1e+30  ;;  %v6236_v34 = vsel %vm6116_vm8, %v6147_v6, -1e+30  ;;  %4157 = vpow2.f32 %v3271_v48 }
 0x7e5   : > { %v4146_v59 = vpop.eup %4145  ;;  %v2918_v36 = vadd.f32 %v2917_v42, %v6216_v15  ;;  %7416 = vst [vmem:[#allocation15_spill] sm:$0xff] %v6236_v34  ;;  %v3168_v13 = vmax.f32 %v6102_v44, %v6236_v34  ;;  %v6248_v14 = vsel %vm5883_vm14, %v4140_v8, 0.0  ;;  %v7421_v44 = vsub.f32 %v5843_v40, %v6138_v57 }
 0x7e6   : > { %v4148_v46 = vpop.eup %4147  ;;  %4159 = vpow2.f32 %v3275_v19  ;;  %v7424_v40 = vmax.f32 %v6032_v43, %v6126_v27  ;;  %v3211_v43 = vsub.f32 %v7426_v45, %v6138_v57  ;;  %v7429_v45 = vld [vmem:[#allocation23_spill] sm:$0xff] }
 0x7e7   : > { %v2359_v22 = vpop.f32.mrf.mxu3  ;;  %v2270_v2 = vpop.f32.mrf.mxu2  ;;  %v6240_v25 = vsel %vm5673_vm11, %v4148_v46, 0.0  ;;  %v2919_v6 = vadd.f32 %v2918_v36, %v6223_v61  ;;  %vm6256_vm11 = vcmp.eq.s32.totalorder %v2439_v52, %v6006_v20  ;;  %v6272_v52 = vsel %vm5934_vm3, %v4142_v10, 0.0 }
 0x7e8   : > { %v4150_v17 = vpop.eup %4149  ;;  %v7419_v38 = vsel %vm6256_vm11, 4294967295, %v7418_v38  ;;  %v3283_v2 = vmul.f32 1.442695, %v7421_v44  ;;  %v6268_v31 = vsel %vm6256_vm11, %v6180_v5, -1e+30  ;;  %4161 = vpow2.f32 %v3279_v0 }
 0x7e9   : > { %v4152_v21 = vpop.eup %4151  ;;  %v6253_v48 = vsel %vm5699_vm6, %v4150_v17, 0.0  ;;  %7420 = vst [vmem:[#allocation20_spill] sm:$0xff] %v7419_v38  ;;  %v2920_v36 = vadd.f32 %v2919_v6, %v6248_v14  ;;  %v6283_v44 = vmax.f32 %v7424_v40, %v6268_v31  ;;  %v3287_v5 = vmul.f32 1.442695, %v3205_v56 }
 0x7ea   : > { %v4154_v46 = vpop.eup %4153  ;;  %v3443_v8 = vadd.f32 %v6253_v48, %v6240_v25  ;;  %7422 = vst [vmem:[#allocation6_spill] sm:$0xff] %v6268_v31  ;;  %v6277_v19 = vsel %vm5679_vm1, %v4152_v21, 0.0  ;;  %v6289_v10 = vsel %vm6202_vm13, %v6188_v9, -1e+30  ;;  %4163 = vpow2.f32 %v3283_v2 }
 0x7eb   : > { %v4156_v12 = vpop.eup %4155  ;;  %7425 = vst [vmem:[#allocation22_spill] sm:$0xff] %v6289_v10  ;;  %v2019_v6 = vpop.f32.mrf.mxu0  ;;  %v2921_v21 = vadd.f32 %v2920_v36, %v6272_v52  ;;  %v6298_v40 = vsel %vm5704_vm9, %v4154_v46, 0.0  ;;  %v3213_v31 = vsub.f32 %v7429_v45, %v6138_v57  ;;  %v6316_v46 = vsel %vm6256_vm11, %v2359_v22, -1e+30 }
 0x7ec   : > { %v3444_v34 = vadd.f32 %v3443_v8, %v6277_v19  ;;  %v6291_v3 = vpop.f32.mrf.mxu1  ;;  %v4158_v56 = vpop.eup %4157  ;;  %v7427_v8 = vld [vmem:[#allocation7_spill] sm:$0xff]  ;;  %v3291_v6 = vmul.f32 1.442695, %v3207_v4  ;;  %v6312_v28 = vsel %vm5734_vm0, %v4156_v12, 0.0  ;;  %7430 = vst [vmem:[#allocation11_spill] sm:$0xff] %v6316_v46  ;;  %v7431_v4 = vld [vmem:[#allocation16_spill] sm:$0xff]  ;;  %4165 = vpow2.f32 %v3287_v5 }
 0x7ed   : > { %vm7428_vm1 = vnez %v7427_v8  ;;  %v4160_v2 = vpop.eup %4159  ;;  %vm7432_vm6 = vnez %v7431_v4  ;;  %v6328_v12 = vsel %vm5761_vm5, %v4158_v56, 0.0  ;;  %v6331_v22 = vmax.f32 %v3168_v13, %v6316_v46 }
 0x7ee   : > { %v6304_v9 = vsel %vm7428_vm1, %v4144_v35, 0.0  ;;  %v3445_v55 = vadd.f32 %v3444_v34, %v6298_v40  ;;  %v6322_v34 = vsel %vm7432_vm6, %v4146_v59, 0.0  ;;  %v4162_v38 = vpop.eup %4161  ;;  %4167 = vpow2.f32 %v3291_v6 }
 0x7ef   : > { %v2922_v36 = vadd.f32 %v2921_v21, %v6304_v9  ;;  %v6318_v0 = vpop.f32.mrf.mxu3  ;;  %v2272_v35 = vpop.f32.mrf.mxu2  ;;  %v3295_v21 = vmul.f32 1.442695, %v3209_v16  ;;  %7433 = vst [vmem:[#allocation21_spill] sm:$0xff] %v6331_v22  ;;  %v3299_v59 = vmul.f32 1.442695, %v3211_v43  ;;  %v3217_v56 = vsub.f32 %v7435_v33, %v6138_v57 }
 0x7f0   : > { %v3446_v45 = vadd.f32 %v3445_v55, %v6312_v28  ;;  %v7434_v35 = vld [vmem:[#allocation5_spill] sm:$0xff]  ;;  %v6338_v55 = vsel %vm5783_vm10, %v4160_v2, 0.0  ;;  %v3303_v13 = vmul.f32 1.442695, %v3213_v31  ;;  %v6347_v43 = vsel %vm7407_vm15, %v4162_v38, 0.0 }
 0x7f1   : > { %v2923_v7 = vadd.f32 %v2922_v36, %v6322_v34  ;;  %v3215_v27 = vsub.f32 %v7434_v35, %v6138_v57  ;;  %v4164_v36 = vpop.eup %4163  ;;  %4169 = vpow2.f32 %v3295_v21  ;;  %v2408_v17 = vadd.s32 184, %v5661_v54 }
 0x7f2   : > { %v3447_v5 = vadd.f32 %v3446_v45, %v6328_v12  ;;  %v4166_v45 = vpop.eup %4165  ;;  %4171 = vpow2.f32 %v3299_v59  ;;  %v6352_v57 = vsel %vm7408_vm4, %v4164_v36, 0.0 }
 0x7f3   : > { %v2940_v16 = vrot.slane %v2923_v7, 4  ;;  %v2021_v11 = vpop.f32.mrf.mxu0  ;;  %v3307_v51 = vmul.f32 1.442695, %v3215_v27  ;;  %4173 = vpow2.f32 %v3303_v13  ;;  %v6359_v59 = vsel %vm5897_vm2, %v4166_v45, 0.0 }
 0x7f4   : > { %v3448_v46 = vadd.f32 %v3447_v5, %v6338_v55  ;;  %v6343_v22 = vpop.f32.mrf.mxu1  ;;  %v4168_v21 = vpop.eup %4167 }
 0x7f5   : > { %v2941_v6 = vadd.f32 %v2940_v16, %v2923_v7  ;;  %v3311_v7 = vmul.f32 1.442695, %v3217_v56  ;;  %4175 = vpow2.f32 %v3307_v51  ;;  %v6364_v5 = vsel %vm5869_vm7, %v4168_v21, 0.0 }
 0x7f6   : > { %v3449_v2 = vadd.f32 %v3448_v46, %v6347_v43 }
 0x7f7   : > { %v2942_v35 = vrot.slane %v2941_v6, 2  ;;  %v6354_v31 = vpop.f32.mrf.mxu3  ;;  %v2275_v11 = vpop.f32.mrf.mxu2  ;;  %4177 = vpow2.f32 %v3311_v7 }
 0x7f8   : > { %v3450_v1 = vadd.f32 %v3449_v2, %v6352_v57  ;;  %v4170_v27 = vpop.eup %4169 }
 0x7f9   : > { %v2943_v38 = vadd.f32 %v2942_v35, %v2941_v6  ;;  %v4172_v16 = vpop.eup %4171  ;;  %v6371_v32 = vsel %vm5918_vm12, %v4170_v27, 0.0 }
 0x7fa   : > { %v3451_v46 = vadd.f32 %v3450_v1, %v6359_v59  ;;  %v4174_v6 = vpop.eup %4173  ;;  %v6376_v18 = vsel %vm5883_vm14, %v4172_v16, 0.0 }
 0x7fb   : > { %v2944_v29 = vrot.slane %v2943_v38, 1  ;;  %v2024_v33 = vpop.f32.mrf.mxu0  ;;  %v4176_v35 = vpop.eup %4175  ;;  %v6383_v21 = vsel %vm5934_vm3, %v4174_v6, 0.0 }
 0x7fc   : > { %v3452_v36 = vadd.f32 %v3451_v46, %v6364_v5  ;;  %v6367_v56 = vpop.f32.mrf.mxu1  ;;  %v6388_v1 = vsel %vm7428_vm1, %v4176_v35, 0.0 }
 0x7fd   : > { %v2945_v13 = vadd.f32 %v2944_v29, %v2943_v38  ;;  %v4178_v24 = vpop.eup %4177 }
 0x7fe   : > { %v3453_v45 = vadd.f32 %v3452_v36, %v6371_v32  ;;  %v6395_v29 = vsel %vm7432_vm6, %v4178_v24, 0.0  ;;  %v2409_v36 = vadd.s32 192, %v5661_v54  ;;  %v2410_v24 = vadd.s32 200, %v5661_v54 }
 0x7ff   : > { %4179 = vrcp.f32 %v2945_v13  ;;  %v6378_v51 = vpop.f32.mrf.mxu3  ;;  %v2277_v2 = vpop.f32.mrf.mxu2 }
 0x800   : > { %v3454_v11 = vadd.f32 %v3453_v45, %v6376_v18 }
 0x802   : > { %v3455_v7 = vadd.f32 %v3454_v11, %v6383_v21 }
 0x803   : > { %v2026_v38 = vpop.f32.mrf.mxu0 }
 0x804   : > { %v3456_v42 = vadd.f32 %v3455_v7, %v6388_v1  ;;  %v6391_v27 = vpop.f32.mrf.mxu1 }
 0x805   : > { %v4180_v46 = vpop.eup %4179 }
 0x806   : > { %v3457_v16 = vadd.f32 %v3456_v42, %v6395_v29  ;;  %v3013_v8 = vmul.f32 %v4180_v46, %v6304_v9  ;;  %v3015_v33 = vmul.f32 %v4180_v46, %v6322_v34  ;;  %v3017_v6 = vmul.f32 0.0, %v4180_v46 }
 0x807   : > { %v6402_v13 = vpop.f32.mrf.mxu3  ;;  %v3009_v45 = vmul.f32 %v4180_v46, %v6248_v14  ;;  %v3011_v2 = vmul.f32 %v4180_v46, %v6272_v52  ;;  %v3005_v4 = vmul.f32 %v4180_v46, %v6216_v15  ;;  %v2280_v35 = vpop.f32.mrf.mxu2  ;;  %v3007_v42 = vmul.f32 %v4180_v46, %v6223_v61 }
 0x808   : > { %7436 = vst [vmem:[#allocation8_spill] sm:$0xff] %v6402_v13  ;;  %v3474_v11 = vrot.slane %v3457_v16, 4  ;;  %v3599_v7 = vpack.c.bf16 %v3015_v33, %v3013_v8  ;;  %v2411_v9 = vadd.s32 208, %v5661_v54  ;;  %v6410_v38 = vpack.c.bf16 %v3017_v6, %v3017_v6 }
 0x809   : > { %v3597_v34 = vpack.c.bf16 %v3011_v2, %v3009_v45  ;;  %v3001_v13 = vmul.f32 %v4180_v46, %v6198_v53  ;;  %v3595_v14 = vpack.c.bf16 %v3007_v42, %v3005_v4  ;;  %v3003_v52 = vmul.f32 %v4180_v46, %v6208_v58 }
 0x80a   : > { %v3475_v10 = vadd.f32 %v3474_v11, %v3457_v16  ;;  %3617 = vmatpush.bf16.msra.mxu0 %v3599_v7  ;;  %v2997_v15 = vmul.f32 %v4180_v46, %v6185_v60  ;;  %3630 = vmatpush.bf16.msra.mxu1 %v6410_v38  ;;  %v2999_v8 = vmul.f32 %v4180_v46, %v6192_v30  ;;  %v2440_v30 = vshrl.u32 %v2408_v17, 4 }
 0x80b   : > { %v6418_v61 = vmul.f32 %v4180_v46, %v6162_v41  ;;  %v6421_v33 = vmul.f32 %v4180_v46, %v6174_v47  ;;  %v6424_v6 = vmul.f32 %v4180_v46, %v6142_v62  ;;  %v2029_v16 = vpop.f32.mrf.mxu0  ;;  %v3593_v58 = vpack.c.bf16 %v3003_v52, %v3001_v13 }
 0x80c   : > { %v3476_v53 = vrot.slane %v3475_v10, 2  ;;  %v6426_v45 = vpop.f32.mrf.mxu1  ;;  %v6429_v60 = vmul.f32 %v4180_v46, %v6151_v49  ;;  %v6432_v2 = vmul.f32 %v4180_v46, %v6122_v23  ;;  %v3591_v41 = vpack.c.bf16 %v2999_v8, %v2997_v15 }
 0x80d   : > { %v3589_v47 = vpack.c.bf16 %v6421_v33, %v6418_v61  ;;  %v6437_v4 = vmul.f32 %v4180_v46, %v6130_v26  ;;  %v2441_v35 = vshrl.u32 %v2409_v36, 4  ;;  %v2442_v11 = vshrl.u32 %v2410_v24, 4 }
 0x80e   : > { %v3477_v62 = vadd.f32 %v3476_v53, %v3475_v10  ;;  %3618 = vmatpush.bf16.msra.mxu0 %v3597_v34  ;;  %v3587_v13 = vpack.c.bf16 %v6429_v60, %v6424_v6  ;;  %3631 = vmatpush.bf16.msra.mxu1 %v6410_v38  ;;  %v2443_v42 = vshrl.u32 %v2411_v9, 4  ;;  %vm6447_vm9 = vcmp.eq.s32.totalorder %v2440_v30, %v6006_v20  ;;  %v7457_v60 = vld [vmem:[#allocation9_spill] sm:$0xff] }
 0x80f   : > { %v6442_v49 = vpop.f32.mrf.mxu3  ;;  %v3585_v23 = vpack.c.bf16 %v6437_v4, %v6432_v2  ;;  %v2282_v17 = vpop.f32.mrf.mxu2  ;;  %vm6452_vm0 = vcmp.eq.s32.totalorder %v2441_v35, %v6006_v20  ;;  %v2412_v36 = vadd.s32 216, %v5661_v54  ;;  %v2413_v24 = vadd.s32 224, %v5661_v54 }
 0x810   : > { %v3478_v7 = vrot.slane %v3477_v62, 1  ;;  %vm6459_vm5 = vcmp.eq.s32.totalorder %v2442_v11, %v6006_v20  ;;  %v2414_v9 = vadd.s32 232, %v5661_v54  ;;  %v6468_v52 = vsel %vm6447_vm9, %v6212_v50, -1e+30 }
 0x811   : > { %vm6471_vm10 = vcmp.eq.s32.totalorder %v2443_v42, %v6006_v20  ;;  %v6478_v53 = vsel %vm6452_vm0, %v6291_v3, -1e+30  ;;  %v2415_v16 = vadd.s32 240, %v5661_v54  ;;  %v6484_v30 = vsel %vm6459_vm5, %v6343_v22, -1e+30 }
 0x812   : > { %v3479_v10 = vadd.f32 %v3478_v7, %v3477_v62  ;;  %3619 = vmatpush.bf16.msra.mxu0 %v3595_v14  ;;  %3632 = vmatpush.bf16.msra.mxu1 %v6410_v38  ;;  %v2444_v50 = vshrl.u32 %v2412_v36, 4  ;;  %v2445_v62 = vshrl.u32 %v2413_v24, 4  ;;  %v7445_v35 = vmax.f32 %v6079_v39, %v6231_v37 }
 0x813   : > { %v2031_v14 = vpop.f32.mrf.mxu0  ;;  %v6493_v3 = vsel %vm6471_vm10, %v6367_v56, -1e+30  ;;  %v2446_v17 = vshrl.u32 %v2414_v9, 4  ;;  %v2638_v42 = vmax.f32 %v6283_v44, %v6478_v53  ;;  %v2416_v9 = vadd.s32 248, %v5661_v54 }
 0x814   : > { %4181 = vrcp.f32 %v3479_v10  ;;  %v2120_v8 = vpop.f32.mrf.mxu1  ;;  %v2637_v11 = vmax.f32 %v7445_v35, %v6468_v52  ;;  %v2447_v10 = vshrl.u32 %v2415_v16, 4  ;;  %vm6503_vm7 = vcmp.eq.s32.totalorder %v2444_v50, %v6006_v20 }
 0x815   : > { %v2640_v39 = vmax.f32 %v2638_v42, %v6493_v3  ;;  %vm6508_vm14 = vcmp.eq.s32.totalorder %v2445_v62, %v6006_v20  ;;  %vm6514_vm2 = vcmp.eq.s32.totalorder %v2446_v17, %v6006_v20  ;;  %v6647_v2 = vsel %vm6459_vm5, %v6378_v51, -1e+30 }
 0x816   : > { %3620 = vmatpush.bf16.msra.mxu0 %v3593_v58  ;;  %3633 = vmatpush.bf16.msra.mxu1 %v6410_v38  ;;  %v2639_v58 = vmax.f32 %v2637_v11, %v6484_v30  ;;  %vm6542_vm15 = vcmp.eq.s32.totalorder %v2447_v10, %v6006_v20  ;;  %v6663_v51 = vsel %vm6503_vm7, %v6442_v49, -1e+30 }
 0x817   : > { %v6496_v7 = vpop.f32.mrf.mxu3  ;;  %v2285_v22 = vpop.f32.mrf.mxu2 }
 0x81a   : > { %v4182_v36 = vpop.eup %4181  ;;  %3621 = vmatpush.bf16.msra.mxu0 %v3591_v41  ;;  %3634 = vmatpush.bf16.msra.mxu1 %v6410_v38 }
 0x81b   : > { %v3547_v14 = vmul.f32 %v4182_v36, %v6388_v1  ;;  %v3549_v16 = vmul.f32 %v4182_v36, %v6395_v29  ;;  %v6522_v50 = vmul.f32 %v4182_v36, %v6376_v18  ;;  %v2034_v62 = vpop.f32.mrf.mxu0  ;;  %v6525_v41 = vmul.f32 %v4182_v36, %v6383_v21 }
 0x81c   : > { %v2123_v35 = vpop.f32.mrf.mxu1  ;;  %v6528_v54 = vmul.f32 %v4182_v36, %v6364_v5  ;;  %v6531_v11 = vmul.f32 %v4182_v36, %v6371_v32  ;;  %v6534_v17 = vmul.f32 %v4182_v36, %v6352_v57  ;;  %v6539_v1 = vsel %vm6503_vm7, %v6391_v27, -1e+30 }
 0x81d   : > { %v3685_v21 = vpack.c.bf16 %v3549_v16, %v3547_v14  ;;  %v6547_v5 = vmul.f32 %v4182_v36, %v6359_v59  ;;  %v2448_v57 = vshrl.u32 %v2416_v9, 4  ;;  %v3683_v32 = vpack.c.bf16 %v6525_v41, %v6522_v50  ;;  %v7456_v50 = vld [vmem:[#allocation14_spill] sm:$0xff] }
 0x81e   : > { %3622 = vmatpush.bf16.msra.mxu0 %v3589_v47  ;;  %v3681_v27 = vpack.c.bf16 %v6531_v11, %v6528_v54  ;;  %v6557_v29 = vmul.f32 %v4182_v36, %v6338_v55  ;;  %3635 = vmatpush.bf16.msra.mxu1 %v6410_v38  ;;  %v6563_v42 = vmul.f32 %v4182_v36, %v6347_v43  ;;  %v6574_v55 = vsel %vm6508_vm14, %v6426_v45, -1e+30  ;;  %v7462_v11 = vld [vmem:[#allocation26_spill] sm:$0xff] }
 0x81f   : > { %v2376_v22 = vpop.f32.mrf.mxu3  ;;  %v3679_v59 = vpack.c.bf16 %v6547_v5, %v6534_v17  ;;  %v6566_v61 = vmul.f32 %v4182_v36, %v6312_v28  ;;  %v6569_v33 = vmul.f32 %v4182_v36, %v6328_v12  ;;  %v2287_v47 = vpop.f32.mrf.mxu2  ;;  %v6577_v10 = vmul.f32 %v4182_v36, %v6277_v19 }
 0x820   : > { %v6580_v9 = vmul.f32 %v4182_v36, %v6298_v40  ;;  %v6583_v43 = vmul.f32 %v4182_v36, %v6240_v25  ;;  %v1789_v28 = vpop.permute.xlu2 %1788  ;;  %v6587_v12 = vsel %vm6514_vm2, %v2120_v8, -1e+30  ;;  %v3677_v14 = vpack.c.bf16 %v6563_v42, %v6557_v29 }
 0x821   : > { %v3675_v45 = vpack.c.bf16 %v6569_v33, %v6566_v61  ;;  %v6594_v19 = vmul.f32 %v4182_v36, %v6253_v48  ;;  %v2641_v40 = vmax.f32 %v2639_v58, %v6539_v1  ;;  %vm6601_vm12 = vcmp.eq.s32.totalorder %v2448_v57, %v6006_v20  ;;  %v7469_v33 = vld [vmem:[#allocation17_spill] sm:$0xff] }
 0x822   : > { %3623 = vmatpush.bf16.msra.mxu0 %v3587_v13  ;;  %v3551_v8 = vmul.f32 0.0, %v4182_v36  ;;  %v3673_v16 = vpack.c.bf16 %v6580_v9, %v6577_v10  ;;  %v1810_v62 = vadd.f32 %v7456_v50, %v1789_v28  ;;  %v6610_v48 = vsel %vm6542_vm15, %v2123_v35, -1e+30  ;;  %3636 = vmatpush.bf16.msra.mxu1 %v6410_v38 }
 0x823   : > { %v3671_v6 = vpack.c.bf16 %v6594_v19, %v6583_v43  ;;  %v1823_v20 = vadd.f32 %v7457_v60, %v1789_v28  ;;  %v2642_v13 = vmax.f32 %v2640_v39, %v6574_v55  ;;  %v2643_v58 = vmax.f32 %v2641_v40, %v6587_v12  ;;  %v2036_v36 = vpop.f32.mrf.mxu0 }
 0x824   : > { %v2125_v41 = vpop.f32.mrf.mxu1  ;;  %v6625_v35 = vsel %vm6447_vm9, %v6318_v0, -1e+30  ;;  %v6632_v28 = vpack.c.bf16 %v3551_v8, %v3551_v8  ;;  %v6634_v40 = vpack.c.bf16 %v1810_v62, %v1810_v62  ;;  %v6642_v0 = vsel %vm6452_vm0, %v6354_v31, -1e+30  ;;  %v7460_v8 = vld [vmem:[#allocation8_spill] sm:$0xff] }
 0x825   : > { %v6620_v57 = vsel %vm6601_vm12, %v2125_v41, -1e+30  ;;  %v2644_v47 = vmax.f32 %v2642_v13, %v6610_v48  ;;  %v6637_v36 = vpack.c.bf16 %v1823_v20, %v1823_v20  ;;  %v6658_v31 = vsel %vm6471_vm10, %v7460_v8, -1e+30  ;;  %v7461_v20 = vld [vmem:[#allocation21_spill] sm:$0xff] }
 0x826   : > { %3624 = vmatpush.bf16.msra.mxu0 %v3585_v23  ;;  %v2645_v39 = vmax.f32 %v2643_v58, %v6620_v57  ;;  %3637 = vmatpush.bf16.msra.mxu1 %v6410_v38  ;;  %v7458_v38 = vld [vmem:[#allocation22_spill] sm:$0xff]  ;;  %v3172_v13 = vmax.f32 %v7461_v20, %v6642_v0  ;;  %v6672_v58 = vsel %vm6508_vm14, %v6496_v7, -1e+30  ;;  %v6676_v41 = vsel %vm6514_vm2, %v2376_v22, -1e+30 }
 0x827   : > { %v2379_v50 = vpop.f32.mrf.mxu3  ;;  %v2290_v60 = vpop.f32.mrf.mxu2  ;;  %v7459_v23 = vmax.f32 %v6109_v63, %v7458_v38 }
 0x828   : > { %v2646_v4 = vmax.f32 %v2644_v47, %v2645_v39  ;;  %v3174_v47 = vmax.f32 %v3172_v13, %v6658_v31 }
 0x829   : > { %3625 = vmatmul.bf16.vlgmr.msra.gmra.mxu0 %v6634_v40  ;;  %3638 = vmatmul.bf16.vlgmr.msra.gmra.mxu1 %v6637_v36 }
 0x82a   : > { %3703 = vmatpush.bf16.msrb.mxu0 %v3685_v21  ;;  %3716 = vmatpush.bf16.msrb.mxu1 %v6632_v28  ;;  %v3171_v21 = vmax.f32 %v7459_v23, %v6625_v35  ;;  %v2647_v62 = vrot.slane %v2646_v4, 4  ;;  %v3176_v23 = vmax.f32 %v3174_v47, %v6672_v58  ;;  %v7464_v47 = vld [vmem:[#allocation28_spill] sm:$0xff] }
 0x82c   : > { %v3173_v63 = vmax.f32 %v3171_v21, %v6647_v2  ;;  %v2648_v49 = vmax.f32 %v2646_v4, %v2647_v62 }
 0x82e   : > { %3704 = vmatpush.bf16.msrb.mxu0 %v3683_v32  ;;  %3717 = vmatpush.bf16.msrb.mxu1 %v6632_v28  ;;  %v3175_v39 = vmax.f32 %v3173_v63, %v6663_v51  ;;  %v2649_v60 = vrot.slane %v2648_v49, 2  ;;  %v6683_v32 = vsel %vm6542_vm15, %v2379_v50, -1e+30  ;;  %v7463_v63 = vld [vmem:[#allocation30_spill] sm:$0xff] }
 0x82f   : > { %v2381_v22 = vpop.f32.mrf.mxu3  ;;  %v2292_v4 = vpop.f32.mrf.mxu2  ;;  %v3178_v50 = vmax.f32 %v3176_v23, %v6683_v32 }
 0x830   : > { %v3177_v7 = vmax.f32 %v3175_v39, %v6676_v41  ;;  %v2650_v21 = vmax.f32 %v2648_v49, %v2649_v60  ;;  %v6693_v8 = vsel %vm6601_vm12, %v2381_v22, -1e+30  ;;  %v7465_v60 = vld [vmem:[#allocation33_spill] sm:$0xff] }
 0x832   : > { %3705 = vmatpush.bf16.msrb.mxu0 %v3681_v27  ;;  %3718 = vmatpush.bf16.msrb.mxu1 %v6632_v28  ;;  %v3179_v62 = vmax.f32 %v3177_v7, %v6693_v8  ;;  %v2651_v20 = vrot.slane %v2650_v21, 1  ;;  %v7466_v7 = vld [vmem:[#allocation38_spill] sm:$0xff] }
 0x834   : > { %v3180_v13 = vmax.f32 %v3178_v50, %v3179_v62  ;;  %v6700_v54 = vmax.f32 %v2650_v21, %v2651_v20 }
 0x836   : > { %3706 = vmatpush.bf16.msrb.mxu0 %v3679_v59  ;;  %3719 = vmatpush.bf16.msrb.mxu1 %v6632_v28  ;;  %v2686_v27 = vsub.f32 %v7462_v11, %v6700_v54  ;;  %v2688_v49 = vsub.f32 %v7463_v63, %v6700_v54  ;;  %v2690_v39 = vsub.f32 %v7464_v47, %v6700_v54  ;;  %v7467_v59 = vld [vmem:[#allocation6_spill] sm:$0xff]  ;;  %v3181_v4 = vrot.slane %v3180_v13, 4 }
 0x837   : > { %v2692_v23 = vsub.f32 %v7465_v60, %v6700_v54  ;;  %v2694_v17 = vsub.f32 %v7466_v7, %v6700_v54  ;;  %v2696_v5 = vsub.f32 %v6231_v37, %v6700_v54  ;;  %v2698_v22 = vsub.f32 %v7467_v59, %v6700_v54  ;;  %v1831_v37 = vpop.permute.xlu2 %1830 }
 0x838   : > { %v2783_v21 = vmul.f32 1.442695, %v2686_v27  ;;  %v2787_v50 = vmul.f32 1.442695, %v2688_v49  ;;  %v2791_v62 = vmul.f32 1.442695, %v2690_v39  ;;  %v3182_v11 = vmax.f32 %v3180_v13, %v3181_v4 }
 0x839   : > { %v2795_v20 = vmul.f32 1.442695, %v2692_v23  ;;  %v2799_v63 = vmul.f32 1.442695, %v2694_v17  ;;  %v2700_v29 = vsub.f32 %v6468_v52, %v6700_v54  ;;  %v2803_v42 = vmul.f32 1.442695, %v2696_v5 }
 0x83a   : > { %3707 = vmatpush.bf16.msrb.mxu0 %v3677_v14  ;;  %3720 = vmatpush.bf16.msrb.mxu1 %v6632_v28  ;;  %4183 = vpow2.f32 %v2783_v21  ;;  %v3183_v14 = vrot.slane %v3182_v11, 2  ;;  %v7468_v13 = vld [vmem:[#allocation19_spill] sm:$0xff]  ;;  %v4361_v27 = vmov 20   ;;  %v2702_v49 = vsub.f32 %v6478_v53, %v6700_v54  ;;  %v4258_v39 = vld [vmem:[%s7031_s2] sm:$0xff] }
 0x83b   : > { %4185 = vpow2.f32 %v2787_v50  ;;  %v1852_v61 = vadd.f32 %v7468_v13, %v1831_v37  ;;  %4086 = vset.pattern.permute.xlu2 %v4361_v27  ;;  %v2807_v52 = vmul.f32 1.442695, %v2698_v22  ;;  %v2704_v9 = vsub.f32 %v6484_v30, %v6700_v54  ;;  %v7470_v23 = vld [vmem:[#allocation25_spill] sm:$0xff]  ;;  %v7479_v13 = vld [vmem:[#allocation34_spill] sm:$0xff] }
 0x83c   : > { %4187 = vpow2.f32 %v2791_v62  ;;  %v3184_v47 = vmax.f32 %v3182_v11, %v3183_v14  ;;  %3756 = vperm.xlu2 %4086, %v4258_v39   ;;  %v2811_v60 = vmul.f32 1.442695, %v2700_v29  ;;  %vm7471_vm3 = vnez %v7470_v23  ;;  %v7472_v22 = vld [vmem:[#allocation29_spill] sm:$0xff]  ;;  %v7474_v62 = vld [vmem:[#allocation27_spill] sm:$0xff] }
 0x83d   : > { %4189 = vpow2.f32 %v2795_v20  ;;  %v6747_v5 = vpack.c.bf16 %v1852_v61, %v1852_v61  ;;  %v2706_v30 = vsub.f32 %v6493_v3, %v6700_v54  ;;  %vm7473_vm4 = vnez %v7472_v22 }
 0x83e   : > { %3708 = vmatpush.bf16.msrb.mxu0 %v3675_v45  ;;  %3721 = vmatpush.bf16.msrb.mxu1 %v6632_v28  ;;  %v1865_v45 = vadd.f32 %v7469_v33, %v1831_v37  ;;  %4191 = vpow2.f32 %v2799_v63  ;;  %v3185_v53 = vrot.slane %v3184_v47, 1  ;;  %v2815_v50 = vmul.f32 1.442695, %v2702_v49  ;;  %v7476_v63 = vld [vmem:[#allocation32_spill] sm:$0xff]  ;;  %v7480_v33 = vld [vmem:[#allocation35_spill] sm:$0xff] }
 0x83f   : > { %4193 = vpow2.f32 %v2803_v42  ;;  %v2710_v3 = vsub.f32 %v6574_v55, %v6700_v54  ;;  %vm7475_vm1 = vnez %v7474_v62  ;;  %v2819_v11 = vmul.f32 1.442695, %v2704_v9  ;;  %v7477_v42 = vld [vmem:[#allocation31_spill] sm:$0xff] }
 0x840   : > { %v4184_v10 = vpop.eup %4183  ;;  %v6749_v59 = vpack.c.bf16 %v1865_v45, %v1865_v45  ;;  %4195 = vpow2.f32 %v2807_v52  ;;  %v6760_v19 = vmax.f32 %v3184_v47, %v3185_v53  ;;  %v2712_v55 = vsub.f32 %v6587_v12, %v6700_v54  ;;  %v7481_v47 = vld [vmem:[#allocation36_spill] sm:$0xff] }
 0x841   : > { %v6742_v7 = vsel %vm7471_vm3, %v4184_v10, 0.0  ;;  %4197 = vpow2.f32 %v2811_v60  ;;  %vm7478_vm6 = vnez %v7477_v42  ;;  %v2823_v49 = vmul.f32 1.442695, %v2706_v30  ;;  %v7483_v60 = vld [vmem:[#allocation15_spill] sm:$0xff] }
 0x842   : > { %3709 = vmatpush.bf16.msrb.mxu0 %v3673_v16  ;;  %3722 = vmatpush.bf16.msrb.mxu1 %v6632_v28  ;;  %v4186_v16 = vpop.eup %4185  ;;  %v3220_v29 = vsub.f32 %v7476_v63, %v6760_v19  ;;  %v3222_v61 = vsub.f32 %v7479_v13, %v6760_v19  ;;  %v3224_v45 = vsub.f32 %v7480_v33, %v6760_v19  ;;  %4199 = vpow2.f32 %v2815_v50 }
 0x843   : > { %v4188_v17 = vpop.eup %4187  ;;  %v6755_v4 = vsel %vm7473_vm4, %v4186_v16, 0.0  ;;  %v3226_v10 = vsub.f32 %v7481_v47, %v6760_v19  ;;  %v3228_v53 = vsub.f32 %v7483_v60, %v6760_v19  ;;  %4201 = vpow2.f32 %v2819_v11 }
 0x844   : > { %v4190_v21 = vpop.eup %4189  ;;  %v2962_v43 = vadd.f32 %v6755_v4, %v6742_v7  ;;  %v6768_v20 = vsel %vm7475_vm1, %v4188_v17, 0.0  ;;  %v3230_v17 = vsub.f32 %v7458_v38, %v6760_v19  ;;  %v2831_v30 = vmul.f32 1.442695, %v2710_v3 }
 0x845   : > { %v6779_v14 = vsel %vm7478_vm6, %v4190_v21, 0.0  ;;  %v2714_v13 = vsub.f32 %v6610_v48, %v6700_v54  ;;  %4203 = vpow2.f32 %v2823_v49  ;;  %v3321_v49 = vmul.f32 1.442695, %v3222_v61 }
 0x846   : > { %3710 = vmatpush.bf16.msrb.mxu0 %v3671_v6  ;;  %3723 = vmatpush.bf16.msrb.mxu1 %v6632_v28  ;;  %v2708_v6 = vsub.f32 %v6539_v1, %v6700_v54  ;;  %v4192_v28 = vpop.eup %4191  ;;  %v2963_v37 = vadd.f32 %v2962_v43, %v6768_v20  ;;  %v4362_v1 = vmov 21   ;;  %v7484_v43 = vld [vmem:[#allocation11_spill] sm:$0xff] }
 0x847   : > { %4088 = vset.pattern.permute.xlu0 %v4362_v1  ;;  %v4194_v27 = vpop.eup %4193  ;;  %4087 = vset.pattern.permute.xlu2 %v4362_v1  ;;  %v6790_v16 = vsel %vm6116_vm8, %v4192_v28, 0.0 }
 0x848   : > { %v2964_v52 = vadd.f32 %v2963_v37, %v6779_v14  ;;  %v2827_v12 = vmul.f32 1.442695, %v2708_v6  ;;  %3764 = vperm.xlu2 %4087, %v4258_v39   ;;  %v4196_v21 = vpop.eup %4195  ;;  %v3232_v37 = vsub.f32 %v7484_v43, %v6760_v19  ;;  %v2835_v6 = vmul.f32 1.442695, %v2712_v55 }
 0x849   : > { %3711 = vmatmul.bf16.vlgmr.msrb.gmra.mxu0 %v6747_v5  ;;  %3724 = vmatmul.bf16.vlgmr.msrb.gmra.mxu1 %v6749_v59  ;;  %v6801_v28 = vsel %vm6202_vm13, %v4194_v27, 0.0  ;;  %v4198_v1 = vpop.eup %4197  ;;  %v6808_v3 = vsel %vm6256_vm11, %v4196_v21, 0.0  ;;  %v2716_v55 = vsub.f32 %v6620_v57, %v6700_v54  ;;  %v3317_v27 = vmul.f32 1.442695, %v3220_v29 }
 0x84a   : > { %v2965_v50 = vadd.f32 %v2964_v52, %v6790_v16  ;;  %4205 = vpow2.f32 %v2827_v12  ;;  %v4200_v11 = vpop.eup %4199  ;;  %v6815_v48 = vsel %vm6447_vm9, %v4198_v1, 0.0  ;;  %v3325_v52 = vmul.f32 1.442695, %v3224_v45 }
 0x84b   : > { %4207 = vpow2.f32 %v2831_v30  ;;  %v4202_v47 = vpop.eup %4201  ;;  %v2839_v12 = vmul.f32 1.442695, %v2714_v13  ;;  %v3329_v21 = vmul.f32 1.442695, %v3226_v10  ;;  %v6820_v57 = vsel %vm6452_vm0, %v4200_v11, 0.0 }
 0x84c   : > { %v2966_v38 = vadd.f32 %v2965_v50, %v6801_v28  ;;  %4209 = vpow2.f32 %v2835_v6  ;;  %v3333_v54 = vmul.f32 1.442695, %v3228_v53  ;;  %v4204_v29 = vpop.eup %4203  ;;  %v2843_v30 = vmul.f32 1.442695, %v2716_v55 }
 0x84d   : > { %4211 = vpow2.f32 %v3317_v27  ;;  %v6825_v61 = vsel %vm6459_vm5, %v4202_v47, 0.0  ;;  %v3234_v45 = vsub.f32 %v6625_v35, %v6760_v19  ;;  %v3337_v10 = vmul.f32 1.442695, %v3230_v17 }
 0x84e   : > { %v2967_v33 = vadd.f32 %v2966_v38, %v6808_v3  ;;  %4213 = vpow2.f32 %v3321_v49  ;;  %v6832_v13 = vsel %vm6471_vm10, %v4204_v29, 0.0  ;;  %v3236_v38 = vsub.f32 %v6642_v0, %v6760_v19 }
 0x84f   : > { %4215 = vpow2.f32 %v3325_v52  ;;  %v3341_v11 = vmul.f32 1.442695, %v3232_v37  ;;  %v3238_v17 = vsub.f32 %v6647_v2, %v6760_v19  ;;  %v3345_v49 = vmul.f32 1.442695, %v3234_v45 }
 0x850   : > { %v2968_v60 = vadd.f32 %v2967_v33, %v6815_v48  ;;  %v4206_v43 = vpop.eup %4205  ;;  %4217 = vpow2.f32 %v3329_v21  ;;  %v3240_v47 = vsub.f32 %v6658_v31, %v6760_v19  ;;  %v3349_v21 = vmul.f32 1.442695, %v3236_v38 }
 0x851   : > { %v4208_v6 = vpop.eup %4207  ;;  %4219 = vpow2.f32 %v2839_v12  ;;  %v6841_v27 = vsel %vm6503_vm7, %v4206_v43, 0.0  ;;  %v3242_v31 = vsub.f32 %v6663_v51, %v6760_v19  ;;  %v3353_v43 = vmul.f32 1.442695, %v3238_v17 }
 0x852   : > { %v2969_v50 = vadd.f32 %v2968_v60, %v6820_v57  ;;  %v4210_v53 = vpop.eup %4209  ;;  %4221 = vpow2.f32 %v3333_v54  ;;  %v6856_v60 = vsel %vm6508_vm14, %v4208_v6, 0.0 }
 0x853   : > { %v4212_v55 = vpop.eup %4211  ;;  %4223 = vpow2.f32 %v2843_v30 }
 0x854   : > { %v2970_v1 = vadd.f32 %v2969_v50, %v6825_v61  ;;  %v4214_v33 = vpop.eup %4213  ;;  %4225 = vpow2.f32 %v3337_v10  ;;  %v6845_v52 = vsel %vm7471_vm3, %v4212_v55, 0.0  ;;  %v6869_v50 = vsel %vm6514_vm2, %v4210_v53, 0.0 }
 0x855   : > { %v4216_v0 = vpop.eup %4215  ;;  %v6852_v2 = vsel %vm7473_vm4, %v4214_v33, 0.0  ;;  %4227 = vpow2.f32 %v3341_v11  ;;  %v3357_v53 = vmul.f32 1.442695, %v3240_v47  ;;  %v3361_v33 = vmul.f32 1.442695, %v3242_v31 }
 0x856   : > { %v2971_v35 = vadd.f32 %v2970_v1, %v6832_v13  ;;  %v4218_v12 = vpop.eup %4217  ;;  %v3496_v23 = vadd.f32 %v6852_v2, %v6845_v52  ;;  %v6865_v22 = vsel %vm7475_vm1, %v4216_v0, 0.0  ;;  %4229 = vpow2.f32 %v3345_v49 }
 0x857   : > { %v4220_v54 = vpop.eup %4219  ;;  %v3244_v1 = vsub.f32 %v6672_v58, %v6760_v19  ;;  %v6877_v51 = vsel %vm7478_vm6, %v4218_v12, 0.0  ;;  %4231 = vpow2.f32 %v3349_v21 }
 0x858   : > { %v2972_v37 = vadd.f32 %v2971_v35, %v6841_v27  ;;  %v4222_v30 = vpop.eup %4221  ;;  %v3497_v45 = vadd.f32 %v3496_v23, %v6865_v22  ;;  %v6881_v38 = vsel %vm6542_vm15, %v4220_v54, 0.0  ;;  %v3246_v35 = vsub.f32 %v6676_v41, %v6760_v19 }
 0x859   : > { %v4224_v10 = vpop.eup %4223  ;;  %v6889_v58 = vsel %vm6116_vm8, %v4222_v30, 0.0  ;;  %4233 = vpow2.f32 %v3353_v43  ;;  %v3248_v41 = vsub.f32 %v6683_v32, %v6760_v19  ;;  %v3365_v9 = vmul.f32 1.442695, %v3244_v1 }
 0x85a   : > { %v2973_v29 = vadd.f32 %v2972_v37, %v6856_v60  ;;  %v4226_v62 = vpop.eup %4225  ;;  %v3498_v11 = vadd.f32 %v3497_v45, %v6877_v51  ;;  %v2908_v17 = vsel %vm6601_vm12, %v4224_v10, 0.0  ;;  %4235 = vpow2.f32 %v3357_v53 }
 0x85b   : > { %v4228_v42 = vpop.eup %4227  ;;  %v6896_v37 = vsel %vm6202_vm13, %v4226_v62, 0.0  ;;  %4237 = vpow2.f32 %v3361_v33  ;;  %v3369_v63 = vmul.f32 1.442695, %v3246_v35  ;;  %v3373_v45 = vmul.f32 1.442695, %v3248_v41 }
 0x85c   : > { %v2974_v6 = vadd.f32 %v2973_v29, %v6869_v50  ;;  %v3499_v49 = vadd.f32 %v3498_v11, %v6889_v58  ;;  %v4230_v47 = vpop.eup %4229  ;;  %v6903_v23 = vsel %vm6256_vm11, %v4228_v42, 0.0  ;;  %v3250_v29 = vsub.f32 %v6693_v8, %v6760_v19 }
 0x85d   : > { %v4232_v54 = vpop.eup %4231  ;;  %v6910_v32 = vsel %vm6447_vm9, %v4230_v47, 0.0  ;;  %4239 = vpow2.f32 %v3365_v9 }
 0x85e   : > { %v2975_v55 = vadd.f32 %v2974_v6, %v6881_v38  ;;  %v3500_v12 = vadd.f32 %v3499_v49, %v6896_v37  ;;  %v6915_v6 = vsel %vm6452_vm0, %v4232_v54, 0.0  ;;  %4241 = vpow2.f32 %v3369_v63 }
 0x85f   : > { %v4234_v43 = vpop.eup %4233  ;;  %v3377_v19 = vmul.f32 1.442695, %v3250_v29  ;;  %4243 = vpow2.f32 %v3373_v45 }
 0x860   : > { %v2976_v0 = vadd.f32 %v2975_v55, %v2908_v17  ;;  %v3501_v31 = vadd.f32 %v3500_v12, %v6903_v23  ;;  %v4236_v8 = vpop.eup %4235  ;;  %v6920_v26 = vsel %vm6459_vm5, %v4234_v43, 0.0 }
 0x861   : > { %v4238_v53 = vpop.eup %4237  ;;  %v6925_v46 = vsel %vm6471_vm10, %v4236_v8, 0.0  ;;  %4245 = vpow2.f32 %v3377_v19 }
 0x862   : > { %v2977_v21 = vrot.slane %v2976_v0, 4  ;;  %v3502_v39 = vadd.f32 %v3501_v31, %v6910_v32  ;;  %v6930_v49 = vsel %vm6503_vm7, %v4238_v53, 0.0 }
 0x863   : > { %v4240_v35 = vpop.eup %4239 }
 0x864   : > { %v2978_v30 = vadd.f32 %v2977_v21, %v2976_v0  ;;  %v3503_v1 = vadd.f32 %v3502_v39, %v6915_v6  ;;  %v4242_v34 = vpop.eup %4241  ;;  %v3436_v47 = vsel %vm6508_vm14, %v4240_v35, 0.0 }
 0x865   : > { %v4244_v41 = vpop.eup %4243  ;;  %v3438_v9 = vsel %vm6514_vm2, %v4242_v34, 0.0 }
 0x866   : > { %v2979_v10 = vrot.slane %v2978_v30, 2  ;;  %v3504_v11 = vadd.f32 %v3503_v1, %v6920_v26  ;;  %v3440_v54 = vsel %vm6542_vm15, %v4244_v41, 0.0 }
 0x867   : > { %v4246_v12 = vpop.eup %4245 }
 0x868   : > { %v2980_v62 = vadd.f32 %v2979_v10, %v2978_v30  ;;  %v3505_v42 = vadd.f32 %v3504_v11, %v6925_v46  ;;  %v3442_v63 = vsel %vm6601_vm12, %v4246_v12, 0.0 }
 0x86a   : > { %v2981_v55 = vrot.slane %v2980_v62, 1  ;;  %v3506_v0 = vadd.f32 %v3505_v42, %v6930_v49 }
 0x86c   : > { %v2982_v33 = vadd.f32 %v2981_v55, %v2980_v62  ;;  %v3507_v15 = vadd.f32 %v3506_v0, %v3436_v47 }
 0x86e   : > { %4247 = vrcp.f32 %v2982_v33  ;;  %v3508_v21 = vadd.f32 %v3507_v15, %v3438_v9 }
 0x870   : > { %v3509_v24 = vadd.f32 %v3508_v21, %v3440_v54 }
 0x872   : > { %v3510_v31 = vadd.f32 %v3509_v24, %v3442_v63 }
 0x874   : > { %v4248_v29 = vpop.eup %4247  ;;  %v3511_v18 = vrot.slane %v3510_v31, 4 }
 0x875   : > { %v2986_v30 = vmul.f32 0.0, %v4248_v29  ;;  %v3046_v56 = vmul.f32 %v4248_v29, %v6881_v38  ;;  %v3048_v43 = vmul.f32 %v4248_v29, %v2908_v17  ;;  %v3042_v45 = vmul.f32 %v4248_v29, %v6856_v60 }
 0x876   : > { %v3044_v44 = vmul.f32 %v4248_v29, %v6869_v50  ;;  %v3038_v39 = vmul.f32 %v4248_v29, %v6832_v13  ;;  %v3040_v10 = vmul.f32 %v4248_v29, %v6841_v27  ;;  %v3034_v25 = vmul.f32 %v4248_v29, %v6820_v57 }
 0x877   : > { %v6946_v8 = vpack.c.bf16 %v2986_v30, %v2986_v30  ;;  %v3616_v19 = vpack.c.bf16 %v3048_v43, %v3046_v56  ;;  %v3036_v53 = vmul.f32 %v4248_v29, %v6825_v61  ;;  %v3030_v38 = vmul.f32 %v4248_v29, %v6808_v3 }
 0x878   : > { %v3614_v1 = vpack.c.bf16 %v3044_v44, %v3042_v45  ;;  %v3612_v62 = vpack.c.bf16 %v3040_v10, %v3038_v39  ;;  %v3512_v17 = vadd.f32 %v3511_v18, %v3510_v31  ;;  %v3032_v13 = vmul.f32 %v4248_v29, %v6815_v48 }
 0x879   : > { %3643 = vmatpush.bf16.msra.mxu2 %v6946_v8  ;;  %3656 = vmatpush.bf16.msra.mxu3 %v3616_v19  ;;  %v3026_v27 = vmul.f32 %v4248_v29, %v6790_v16  ;;  %v3610_v60 = vpack.c.bf16 %v3036_v53, %v3034_v25  ;;  %v3028_v50 = vmul.f32 %v4248_v29, %v6801_v28 }
 0x87a   : > { %v3022_v11 = vmul.f32 %v4248_v29, %v6768_v20  ;;  %v3024_v57 = vmul.f32 %v4248_v29, %v6779_v14  ;;  %v3513_v55 = vrot.slane %v3512_v17, 2  ;;  %v3608_v35 = vpack.c.bf16 %v3032_v13, %v3030_v38 }
 0x87b   : > { %v3018_v61 = vmul.f32 %v4248_v29, %v6742_v7  ;;  %v3020_v3 = vmul.f32 %v4248_v29, %v6755_v4  ;;  %v3606_v42 = vpack.c.bf16 %v3028_v50, %v3026_v27  ;;  %v7489_v50 = vld [vmem:[#allocation12_spill] sm:$0xff] }
 0x87c   : > { %v3604_v33 = vpack.c.bf16 %v3024_v57, %v3022_v11  ;;  %v3514_v34 = vadd.f32 %v3513_v55, %v3512_v17 }
 0x87d   : > { %3644 = vmatpush.bf16.msra.mxu2 %v6946_v8  ;;  %3657 = vmatpush.bf16.msra.mxu3 %v3614_v1  ;;  %v3602_v16 = vpack.c.bf16 %v3020_v3, %v3018_v61  ;;  %v7488_v1 = vld [vmem:[#allocation10_spill] sm:$0xff] }
 0x87e   : > { %v3515_v48 = vrot.slane %v3514_v34, 1  ;;  %v7490_v3 = vld [vmem:[#allocation18_spill] sm:$0xff] }
 0x880   : > { %v3516_v0 = vadd.f32 %v3515_v48, %v3514_v34 }
 0x881   : > { %3645 = vmatpush.bf16.msra.mxu2 %v6946_v8  ;;  %3658 = vmatpush.bf16.msra.mxu3 %v3612_v62 }
 0x882   : > { %4249 = vrcp.f32 %v3516_v0 }
 0x885   : > { %3646 = vmatpush.bf16.msra.mxu2 %v6946_v8  ;;  %3659 = vmatpush.bf16.msra.mxu3 %v3610_v60 }
 0x888   : > { %v4250_v20 = vpop.eup %4249 }
 0x889   : > { %3647 = vmatpush.bf16.msra.mxu2 %v6946_v8  ;;  %3660 = vmatpush.bf16.msra.mxu3 %v3608_v35  ;;  %v3580_v7 = vmul.f32 %v4250_v20, %v3440_v54  ;;  %v3582_v4 = vmul.f32 %v4250_v20, %v3442_v63  ;;  %v3576_v14 = vmul.f32 %v4250_v20, %v3436_v47  ;;  %v3520_v56 = vmul.f32 0.0, %v4250_v20 }
 0x88a   : > { %v3578_v28 = vmul.f32 %v4250_v20, %v3438_v9  ;;  %v3572_v41 = vmul.f32 %v4250_v20, %v6925_v46  ;;  %v3574_v15 = vmul.f32 %v4250_v20, %v6930_v49  ;;  %v3568_v12 = vmul.f32 %v4250_v20, %v6915_v6 }
 0x88b   : > { %v3702_v21 = vpack.c.bf16 %v3582_v4, %v3580_v7  ;;  %v3570_v24 = vmul.f32 %v4250_v20, %v6920_v26  ;;  %v3564_v29 = vmul.f32 %v4250_v20, %v6903_v23  ;;  %v3566_v54 = vmul.f32 %v4250_v20, %v6910_v32 }
 0x88c   : > { %v3700_v31 = vpack.c.bf16 %v3578_v28, %v3576_v14  ;;  %v3698_v30 = vpack.c.bf16 %v3574_v15, %v3572_v41  ;;  %v3560_v9 = vmul.f32 %v4250_v20, %v6889_v58  ;;  %v3562_v46 = vmul.f32 %v4250_v20, %v6896_v37 }
 0x88d   : > { %3648 = vmatpush.bf16.msra.mxu2 %v6946_v8  ;;  %3661 = vmatpush.bf16.msra.mxu3 %v3606_v42  ;;  %v3696_v47 = vpack.c.bf16 %v3570_v24, %v3568_v12  ;;  %v3556_v49 = vmul.f32 %v4250_v20, %v6865_v22  ;;  %v3694_v6 = vpack.c.bf16 %v3566_v54, %v3564_v29 }
 0x88e   : > { %v3558_v63 = vmul.f32 %v4250_v20, %v6877_v51  ;;  %v3552_v26 = vmul.f32 %v4250_v20, %v6845_v52  ;;  %v3554_v23 = vmul.f32 %v4250_v20, %v6852_v2  ;;  %v3692_v43 = vpack.c.bf16 %v3562_v46, %v3560_v9 }
 0x88f   : > { %v3672_v58 = vpack.c.bf16 %v3520_v56, %v3520_v56 }
 0x890   : > { %v3690_v32 = vpack.c.bf16 %v3558_v63, %v3556_v49  ;;  %v3688_v45 = vpack.c.bf16 %v3554_v23, %v3552_v26 }
 0x891   : > { %3649 = vmatpush.bf16.msra.mxu2 %v6946_v8  ;;  %3662 = vmatpush.bf16.msra.mxu3 %v3604_v33 }
 0x895   : > { %3650 = vmatpush.bf16.msra.mxu2 %v6946_v8  ;;  %3663 = vmatpush.bf16.msra.mxu3 %v3602_v16 }
 0x896   : > { %v3757_v52 = vpop.permute.xlu2 %3756 }
 0x898   : > { %3651 = vmatmul.bf16.vlgmr.msra.gmra.mxu2 %v6634_v40  ;;  %3664 = vmatmul.bf16.vlgmr.msra.gmra.mxu3 %v6637_v36  ;;  %v7487_v36 = vld [vmem:[#allocation13_spill] sm:$0xff] }
 0x899   : > { %3729 = vmatpush.bf16.msrb.mxu2 %v3672_v58  ;;  %3742 = vmatpush.bf16.msrb.mxu3 %v3702_v21 }
 0x89d   : > { %3730 = vmatpush.bf16.msrb.mxu2 %v3672_v58  ;;  %3743 = vmatpush.bf16.msrb.mxu3 %v3700_v31 }
 0x8a1   : > { %3731 = vmatpush.bf16.msrb.mxu2 %v3672_v58  ;;  %3744 = vmatpush.bf16.msrb.mxu3 %v3698_v30 }
 0x8a2   : > { %v3765_v51 = vpop.permute.xlu2 %3764 }
 0x8a5   : > { %3732 = vmatpush.bf16.msrb.mxu2 %v3672_v58  ;;  %3745 = vmatpush.bf16.msrb.mxu3 %v3696_v47 }
 0x8a6   : > { %v3626_v2 = vpop.f32.mrf.mxu0  ;;  %v3639_v22 = vpop.f32.mrf.mxu1 }
 0x8a7   : > { %v3640_v37 = vadd.f32 %v3639_v22, %v3626_v2 }
 0x8a9   : > { %3733 = vmatpush.bf16.msrb.mxu2 %v3672_v58  ;;  %3746 = vmatpush.bf16.msrb.mxu3 %v3694_v6  ;;  %v3767_v40 = vmul.f32 %v3765_v51, %v3640_v37 }
 0x8ab   : > { %v3769_v44 = vadd.f32 %v3767_v40, %v7487_v36 }
 0x8ad   : > { %3734 = vmatpush.bf16.msrb.mxu2 %v3672_v58  ;;  %3747 = vmatpush.bf16.msrb.mxu3 %v3692_v43  ;;  %3773 = vst [vmem:[%s6984_s6 + $0x10] sm:$0xff] %v3769_v44 }
 0x8ae   : > { %v3628_v39 = vpop.f32.mrf.mxu0  ;;  %v3641_v10 = vpop.f32.mrf.mxu1 }
 0x8b1   : > { %3735 = vmatpush.bf16.msrb.mxu2 %v3672_v58  ;;  %3748 = vmatpush.bf16.msrb.mxu3 %v3690_v32 }
 0x8b5   : > { %3736 = vmatpush.bf16.msrb.mxu2 %v3672_v58  ;;  %3749 = vmatpush.bf16.msrb.mxu3 %v3688_v45 }
 0x8b8   : > { %3737 = vmatmul.bf16.vlgmr.msrb.gmra.mxu2 %v6747_v5  ;;  %3750 = vmatmul.bf16.vlgmr.msrb.gmra.mxu3 %v6749_v59 }
 0x8c6   : > { %v3712_v18 = vpop.f32.mrf.mxu0  ;;  %v3725_v8 = vpop.f32.mrf.mxu1 }
 0x8c7   : > { %v3726_v19 = vadd.f32 %v3725_v8, %v3712_v18 }
 0x8c9   : > { %v3759_v25 = vmul.f32 %v3757_v52, %v3726_v19 }
 0x8cb   : > { %v3761_v62 = vadd.f32 %v3759_v25, %v7488_v1 }
 0x8cd   : > { %3771 = vst [vmem:[%s6984_s6] sm:$0xff] %v3761_v62 }
 0x8ce   : > { %v3714_v53 = vpop.f32.mrf.mxu0  ;;  %v3727_v38 = vpop.f32.mrf.mxu1 }
 0x91b   : > { %v3652_v17 = vpop.f32.mrf.mxu2  ;;  %v3665_v13 = vpop.f32.mrf.mxu3 }
 0x91c   : > { %v3666_v27 = vadd.f32 %v3665_v13, %v3652_v17 }
 0x91e   : > { %v3768_v60 = vmul.f32 %v3765_v51, %v3666_v27 }
 0x920   : > { %v3770_v5 = vadd.f32 %v3768_v60, %v7489_v50 }
 0x922   : > { %3774 = vst [vmem:[%s6984_s6 + $0x18] sm:$0xff] %v3770_v5 }
 0x923   : > { %v3654_v59 = vpop.f32.mrf.mxu2  ;;  %v3667_v11 = vpop.f32.mrf.mxu3 }
 0x93b   : > { %v3738_v57 = vpop.f32.mrf.mxu2  ;;  %v3751_v55 = vpop.f32.mrf.mxu3 }
 0x93c   : > { %v3752_v35 = vadd.f32 %v3751_v55, %v3738_v57 }
 0x93e   : > { %v3760_v61 = vmul.f32 %v3757_v52, %v3752_v35 }
 0x940   : > { %v3762_v42 = vadd.f32 %v3760_v61, %v7490_v3 }
 0x942   : > { %3772 = vst [vmem:[%s6984_s6 + $0x8] sm:$0xff] %v3762_v42 }
 0x943   : > { %v3740_v33 = vpop.f32.mrf.mxu2  ;;  %v3753_v34 = vpop.f32.mrf.mxu3 }
 0x944   : > { %4286 = shalt.err (!%p4283_p3)
}
 0x945   : > { %3967 = dma.vmem_to_hbm [thread:$0]  (%p4421_p5), %s3790_s11, 512, %s3792_s17, %s3776_s16  }
 0x946 PF: > { %p3973_p4 = scmp.ge.s32.totalorder %s4321_s15, 2  ;;  %s3803_s29 = sand.u32 1, %s4309_s12  }
 0x947   : > { %s3804_s4 = scalar_lea.sflag [#allocation3], %s3803_s29 }
 0x948   : > { %p3970_p7 = pnand %p3973_p4, %p4425_p6 }
 0x94a   : > { %p3971_p8 = pneg %p3970_p7 }
 0x94c   : > { %4304 = dma.done.wait (%p3971_p8), %s3804_s4, 512  }
 0x94d   : > { %4306 = vsyncadd (%p3971_p8), %s3804_s4, 4294966784  ;;  %p13_p9 = scmp.ge.s32.totalorder %s4408_s18, 4   ;;  %s7491_s12 = smov %s4313_s13 }
 0x94e   : > { %s7492_s13 = smov %s4317_s14  ;;  %s7493_s14 = smov %s4419_s21 }
 0x94f   : > { %s7494_s15 = smov %s4408_s18  ;;  %15 = sbr.rel (!%p13_p9) target bundleno = 3 (0x3), region = 67 }
 0x954   :  { %3810 = vsyncpa [#allocation3], 1 }
 0x955   :  { %3812 = vsyncpa [#allocation3 + $0x1], 1 }

</bundles_post_ra>
